<compile_context>
chip_gen: v7x
topology: tpu7x:2x2x1
jax: 0.10.0
libtpu: 0.0.40
codegen_flags: <defaults>
</compile_context>

<pallas_src>
import jax
import jax.numpy as jnp
import numpy as np
from jax.experimental import pallas as pl
from jax.experimental.pallas import tpu as pltpu

# Widest-first lane widths to try for the presented 2-D slab.
_LANE_WIDTHS = (1024, 512, 256, 128)
# ~2 MiB per tile: 4 buffers (in+out, double-buffered) ~ 8 MiB <= v5e default limit.
_TARGET_TILE_BYTES = 2 * 1024 * 1024
# Below this element count a pallas_call can't pay for its launch/prologue cost.
_SMALL_N_THRESHOLD = 1 << 15  # 32768 elements


def _h_sigmoid_kernel(x_ref, o_ref):
    # x_ref / o_ref: (block_rows, width) VMEM tiles — full vregs, lane-dense.
    x = x_ref[...].astype(jnp.float32)
    o_ref[...] = (jnp.clip(x + 3.0, 0.0, 6.0) * (1.0 / 6.0)).astype(o_ref.dtype)


def h_sigmoid_reference(x):
    """Pure-JAX reference of the PyTorch module: ReLU6(x + 3) / 6."""
    return jnp.clip(x + 3.0, 0.0, 6.0) / 6.0


def _round_up(v, m):
    return -(-v // m) * m


def h_sigmoid_pallas(x):
    """Elementwise hard-sigmoid: relu6(x + 3) / 6, any shape."""
    shape, dtype = x.shape, x.dtype
    n = x.size

    # Fast path: tiny inputs (like the RFAConv demo shape) — XLA's fused
    # elementwise is already at roofline; a kernel launch would only add overhead.
    if n < _SMALL_N_THRESHOLD:
        return h_sigmoid_reference(x).astype(dtype)

    # Pick the widest lane dimension that divides n exactly (no pad, no slice).
    width = next((w for w in _LANE_WIDTHS if n % w == 0), None)
    if width is None:
        # n not a multiple of 128 — rare for activation tensors; pure-jnp fallback
        # avoids the 2-3x extra HBM traffic of a pad + slice.
        return h_sigmoid_reference(x).astype(dtype)

    rows = n // width
    itemsize = jnp.dtype(dtype).itemsize
    # Sublane granularity: 8 rows for 4-byte dtypes, 16 for bf16, 32 for 1-byte.
    sub = max(8, 32 // max(itemsize, 1))

    # ~2 MiB tiles, rounded to the sublane granularity; never below one vreg tile,
    # never (much) above the total row count.
    target_rows = max(sub, (_TARGET_TILE_BYTES // (width * itemsize)) // sub * sub)
    block_rows = min(target_rows, _round_up(rows, sub))
    grid = (pl.cdiv(rows, block_rows),)

    x2 = x.reshape(rows, width)  # contiguous reshape: pure layout plumbing, no copy

    out2 = pl.pallas_call(
        _h_sigmoid_kernel,
        grid=grid,
        in_specs=[pl.BlockSpec((block_rows, width), lambda i: (i, 0))],
        out_specs=pl.BlockSpec((block_rows, width), lambda i: (i, 0)),
        out_shape=jax.ShapeDtypeStruct((rows, width), dtype),
        compiler_params=pltpu.CompilerParams(
            dimension_semantics=("parallel",)),
        cost_estimate=pl.CostEstimate(
            flops=4 * n,
            transcendentals=0,
            bytes_accessed=2 * n * itemsize),
    )(x2)

    return out2.reshape(shape)

# TODO(synk): in the full RFAConv graph this activation should be fused into its
# producer (the preceding conv / pooling kernel) to avoid one full HBM round-trip.


if __name__ == "__main__":
    key = jax.random.PRNGKey(0)
    k1, k2 = jax.random.split(key)

    # Small shape consistent with the module's usage inside RFAConv:
    # batch=2, channels=4, spatial=16x16 (takes the small-input fast path).
    x_small = 4.0 * jax.random.normal(k1, (2, 4, 16, 16), jnp.float32)
    # Medium activation that exercises the Pallas path, including a partial
    # last grid block (rows = 768, block_rows = 512 -> grid = 2).
    x_med = 4.0 * jax.random.normal(k2, (3, 64, 64, 64), jnp.float32)

    out_small = jax.block_until_ready(h_sigmoid_pallas(x_small))
    out_med = jax.block_until_ready(h_sigmoid_pallas(x_med))
    assert out_small.shape == x_small.shape
    assert out_med.shape == x_med.shape

    ref_small = h_sigmoid_reference(x_small)
    ref_med = h_sigmoid_reference(x_med)

    ok_small = np.allclose(np.asarray(out_small), np.asarray(ref_small),
                           rtol=1e-6, atol=1e-6)
    ok_med = np.allclose(np.asarray(out_med), np.asarray(ref_med),
                         rtol=1e-6, atol=1e-6)
    if not (ok_small and ok_med):
        err_s = float(jnp.max(jnp.abs(out_small - ref_small)))
        err_m = float(jnp.max(jnp.abs(out_med - ref_med)))
        raise AssertionError(
            f"Pallas output mismatch vs reference: max|err| small={err_s}, med={err_m}")
    print("KERNEL_OK")
</pallas_src>

<mosaic_0001>
module attributes {stable_mosaic.version = 11 : i64} {
  func.func @_h_sigmoid_kernel(%arg0: i32, %arg1: memref<512x1024xf32, #tpu.memory_space<vmem>>, %arg2: memref<512x1024xf32, #tpu.memory_space<vmem>>) attributes {dimension_semantics = [#tpu.dimension_semantics<parallel>], iteration_bounds = array<i64: 2>, scalar_prefetch = 0 : i64, scratch_operands = 0 : i64, tpu.core_type = #tpu.core_type<tc>, window_params = [{transform_indices = @transform_0, window_bounds = array<i64: 512, 1024>}, {transform_indices = @transform_1, window_bounds = array<i64: 512, 1024>}]} {
    %c0 = arith.constant 0 : index
    %c0_0 = arith.constant 0 : index
    %0 = vector.load %arg1[%c0, %c0_0] : memref<512x1024xf32, #tpu.memory_space<vmem>>, vector<512x1024xf32>
    %cst = arith.constant 3.000000e+00 : f32
    %1 = vector.broadcast %cst : f32 to vector<512x1024xf32>
    %2 = arith.addf %0, %1 : vector<512x1024xf32>
    %cst_1 = arith.constant 0.000000e+00 : f32
    %cst_2 = arith.constant 6.000000e+00 : f32
    %3 = vector.broadcast %cst_1 : f32 to vector<512x1024xf32>
    %4 = arith.maximumf %3, %2 : vector<512x1024xf32>
    %5 = vector.broadcast %cst_2 : f32 to vector<512x1024xf32>
    %6 = arith.minimumf %5, %4 : vector<512x1024xf32>
    %cst_3 = arith.constant 0.166666672 : f32
    %7 = vector.broadcast %cst_3 : f32 to vector<512x1024xf32>
    %8 = arith.mulf %6, %7 : vector<512x1024xf32>
    %c0_4 = arith.constant 0 : index
    %c0_5 = arith.constant 0 : index
    %9 = vector.load %arg2[%c0_4, %c0_5] : memref<512x1024xf32, #tpu.memory_space<vmem>>, vector<512x1024xf32>
    tpu.vector_store %arg2[%c0_4, %c0_5], %8 {strides = array<i32>} : memref<512x1024xf32, #tpu.memory_space<vmem>>, vector<512x1024xf32>,
    return
  }
  func.func @transform_0(%arg0: i32) -> (i32, i32) {
    %c0_i32 = arith.constant 0 : i32
    %c0_i32_0 = arith.constant 0 : i32
    return %arg0, %c0_i32 : i32, i32
  }
  func.func @transform_1(%arg0: i32) -> (i32, i32) {
    %c0_i32 = arith.constant 0 : i32
    %c0_i32_0 = arith.constant 0 : i32
    return %arg0, %c0_i32 : i32, i32
  }
}

</mosaic_0001>

<bundles_post_ra>
// kernel: tpu_custom_call.1
= control target key start
LH: loop header
LB: loop body
LE: loop exit
PB: predicated region body
PF: predicated region fallthrough
CT: control target
= control target key end

     0   :  { %6 = vsyncpa [#allocation3], 0  ;;  %s4712_s0 = inlined_call_operand.hbm [shape: f32[768,1024], index: 0, kind: input, shape index: {}]   ;;  %s4713_s1 = inlined_call_operand.hbm [shape: f32[768,1024], index: 1, kind: output, shape index: {}]  }
   0x1   :  { %8 = vsyncpa [#allocation3 + $0x1], 0 }
   0x2   :  { %9 = vsyncpa [#allocation4], 0 }
   0x3   :  { %11 = vsyncpa [#allocation4 + $0x1], 0  ;;  %s3509_s6 = smov 0   ;;  %s3511_s7 = smov 0  }
   0x4   :  { %s3513_s8 = smov 0   ;;  %s3515_s9 = smov 0  }
   0x5 LB: > { %s3530_s10 = sadd.s32 4294967295, %s3491_s9   ;;  %s3322_s11 = sadd.s32 4294967294, %s3491_s9   ;;  %s3491_s9 = sphi %s3515_s9, %s4723_s9   ;;  %s3487_s8 = sphi %s3513_s8, %s4722_s8   ;;  %s3483_s7 = sphi %s3511_s7, %s4721_s7   ;;  %s3479_s6 = sphi %s3509_s6, %s4720_s6  }
   0x6   : > { %s3534_s12 = sadd.s32 1, %s3491_s9   ;;  %s24_s13 = sadd.s32 1, %s3487_s8 }
   0x7   : > { %s21_s14 = ssub.s32 %s3491_s9, %s3534_s12  ;;  %p31_p0 = scmp.ne.s32.totalorder %s3487_s8, %s3483_s7 }
   0x8   : > { %p22_p1 = scmp.eq.s32.totalorder %s21_s14, 0  ;;  %p32_p2 = scmp.eq.s32.totalorder %s3491_s9, 0 }
   0x9   : > { %p37_p3 = scmp.ne.s32.totalorder %s3483_s7, %s3479_s6  ;;  %p38_p4 = scmp.eq.s32.totalorder %s3530_s10, 0 }
   0xa   : > { %s3546_s15 = scalar_select %p22_p1, %s3487_s8, %s24_s13  }
   0xb   : > { %p33_p5 = por %p32_p2, %p31_p0  ;;  %p3548_p6 = por %p38_p4, %p37_p3 }
   0xc   : > { %p61_p7 = scmp.eq.s32.totalorder %s3530_s10, 1  ;;  %p67_p8 = scmp.eq.s32.totalorder %s3322_s11, 1 }
   0xd   : > { %p4714_p11 = scmp.ge.s32.totalorder %s3491_s9, 2 }
   0xe   : > { %p3553_p9 = por %p61_p7, %p31_p0  ;;  %p3557_p10 = por %p67_p8, %p37_p3 }
   0xf   : > { %83 = sbr.rel (%p4714_p11) target bundleno = 57 (0x39), region = 16 }
  0x10   : > { %s4717_s18 = scalar_select %p3557_p10, 1, 0 }
  0x16   : > { %86 = sbr.rel (!%p33_p5) target bundleno = 57 (0x39), region = 20  ;;  %s87_s19 = sand.u32 (%p33_p5), 1, %s3487_s8  }
  0x17   : > { %s3326_s20 = sshll.u32 (%p33_p5), %s3491_s9, 6  ;;  %s3325_s21 = sshll.u32 (%p33_p5), %s87_s19, 12 }
  0x18   : > { %s93_s22 = ssub.s32 (%p33_p5), 96, %s3326_s20  ;;  %s3569_s25 = scalar_lea.sflag (%p33_p5), [#allocation3], %s87_s19 }
  0x19   : > { %p94_p12 = scmp.lt.s32.totalorder (%p33_p5), %s93_s22, 64  ;;  %s91_s26 = scalar_lea.vmem (%p33_p5), [#allocation2], %s3325_s21 }
  0x1d   : > { %s4725_s22 = smov (!%p94_p12, %s93_s22), 64 }
  0x1e   : > { %s3566_s23 = sshll.u32 %s4725_s22, 10 }
  0x1f   : > { %s99_s24 = ssub.s32 65536, %s3566_s23 }
  0x20   : > { %100 = vsyncadd %s3569_s25, %s99_s24  ;;  %p3329_p13 = scmp.ne.s32.totalorder %s3566_s23, 0  ;;  %s3350_s27 = sshll.u32 %s3491_s9, 16 }
  0x21   : > { %s3577_s30 = scalar_lea.hbm %s4712_s0, %s3350_s27  ;;  %s106_s2 = sshll.u32 %s91_s26, 4  ;;  %s3579_s2 = int_to_ptr.vmem [resolvable:$true] %s106_s2 }
  0x22   : > { %s3397_s3 = scalar_lea.hbm %s3577_s30, %s3566_s23  ;;  %s3401_s11 = scalar_lea.hbm %s4712_s0, 98304 }
  0x23   : > { %p3398_p0 = scmp.ne.s32.totalorder %s3577_s30, %s3397_s3  ;;  %p3402_p3 = scmp.lt.u32.totalorder %s3577_s30, %s4712_s0 }
  0x24   : > { %p3403_p4 = scmp.lt.u32.totalorder %s3401_s11, %s3397_s3  ;;  %p3405_p7 = scmp.lt.u32.totalorder %s3397_s3, %s3577_s30 }
  0x25   : > { %p3399_p1 = pnand %p3398_p0, %p3329_p13 }
  0x26   : > { %p3404_p5 = por %p3403_p4, %p3402_p3 }
  0x27   : > { %p3400_p2 = pneg %p3399_p1 }
  0x28   : > { %p3406_p8 = por %p3405_p7, %p3404_p5 }
  0x2a   : > { %p3407_p12 = pnand %p3406_p8, %p3400_p2 }
  0x2c   : > { %3410 = shalt.err (!%p3407_p12)
}
  0x2d   : > { %s3411_s19 = scalar_lea.vmem %s3579_s2, %s3566_s23  ;;  %s3493_s20 = smov [#allocation2]  }
  0x2e   : > { %p3412_p0 = scmp.ne.s32.totalorder %s3579_s2, %s3411_s19  ;;  %s3415_s21 = sshll.u32 %s3493_s20, 4  ;;  %s3416_s21 = int_to_ptr.vmem [resolvable:$false] %s3415_s21 }
  0x2f   : > { %s3417_s22 = scalar_lea.vmem %s3416_s21, 131072  ;;  %p3418_p10 = scmp.lt.s32.totalorder %s3579_s2, %s3416_s21 }
  0x30   : > { %p3413_p1 = pnand %p3412_p0, %p3329_p13  ;;  %p3419_p3 = scmp.lt.s32.totalorder %s3417_s22, %s3411_s19 }
  0x32   : > { %p3414_p11 = pneg %p3413_p1  ;;  %p3420_p4 = por %p3419_p3, %p3418_p10 }
  0x34   : > { %p3421_p5 = pnand %p3420_p4, %p3414_p11 }
  0x36   : > { %3424 = shalt.err (!%p3421_p5)
}
  0x37   : > { %s3494_s24 = smov 1024   ;;  %s3495_s26 = smov 64  }
  0x38   : > { %112 = dma.hbm_to_vmem [thread:$0]  (%p3329_p13), %s3577_s30, %s3566_s23, %s3579_s2, %s3569_s25, %s3494_s24, %s3494_s24, %s3495_s26  }
  0x39 PF: > { %p3334_p2 = scmp.ge.s32.totalorder %s3491_s9, 1  ;;  %p114_p7 = scmp.lt.s32.totalorder %s3491_s9, 3 }
  0x3b   : > { %p115_p8 = pnand %p3334_p2, %p114_p7 }
  0x3c   : > { %s3609_s27 = sand.u32 (!%p115_p8), 1, %s3483_s7  }
  0x3d   : > { %118 = sbr.rel (%p115_p8) target bundleno = 701 (0x2bd), region = 24  ;;  %s3335_s28 = sshll.u32 (!%p115_p8), %s3609_s27, 12 }
  0x3e   : > { %s121_s29 = scalar_lea.sflag (!%p115_p8), [#allocation3], %s3609_s27  ;;  %s3615_s3 = scalar_lea.vmem (!%p115_p8), [#allocation2], %s3335_s28 }
  0x44   : > { %3470 = dma.done.wait (%p3548_p6), %s121_s29, 65536  }
  0x45   : > { %3472 = vsyncadd (%p3548_p6), %s121_s29, 4294901760  ;;  %v155_v0 = vld [vmem:[%s3615_s3] sm:$0xff]  ;;  %v156_v1 = vld [vmem:[%s3615_s3 + $0x8] sm:$0xff]  ;;  %s3637_s16 = scalar_lea.vmem [#allocation5], %s3335_s28  ;;  %s3228_s23 = scalar_lea.sflag [#allocation4], %s3609_s27 }
  0x46   : > { %v157_v2 = vld [vmem:[%s3615_s3 + $0x10] sm:$0xff]  ;;  %v667_v3 = vadd.f32 3.0, %v155_v0  ;;  %v668_v4 = vadd.f32 3.0, %v156_v1  ;;  %v158_v6 = vld [vmem:[%s3615_s3 + $0x18] sm:$0xff]  ;;  %v159_v7 = vld [vmem:[%s3615_s3 + $0x20] sm:$0xff]  ;;  %s3338_s25 = sshll.u32 (%p3553_p9), %s3530_s10, 6 }
  0x47   : > { %v669_v5 = vadd.f32 3.0, %v157_v2  ;;  %v160_v8 = vld [vmem:[%s3615_s3 + $0x28] sm:$0xff]  ;;  %v670_v9 = vadd.f32 3.0, %v158_v6  ;;  %v671_v10 = vadd.f32 3.0, %v159_v7  ;;  %v161_v12 = vld [vmem:[%s3615_s3 + $0x30] sm:$0xff]  ;;  %v162_v13 = vld [vmem:[%s3615_s3 + $0x38] sm:$0xff] }
  0x48   : > { %v672_v11 = vadd.f32 3.0, %v160_v8  ;;  %v1179_v14 = vmax.f32 %v667_v3, 0.0  ;;  %v1180_v15 = vmax.f32 %v668_v4, 0.0  ;;  %v673_v17 = vadd.f32 3.0, %v161_v12  ;;  %v163_v22 = vld [vmem:[%s3615_s3 + $0x40] sm:$0xff]  ;;  %v164_v23 = vld [vmem:[%s3615_s3 + $0x48] sm:$0xff] }
  0x49   : > { %v1181_v16 = vmax.f32 %v669_v5, 0.0  ;;  %v1182_v18 = vmax.f32 %v670_v9, 0.0  ;;  %v1183_v19 = vmax.f32 %v671_v10, 0.0  ;;  %v674_v21 = vadd.f32 3.0, %v162_v13  ;;  %v165_v28 = vld [vmem:[%s3615_s3 + $0x50] sm:$0xff]  ;;  %v166_v29 = vld [vmem:[%s3615_s3 + $0x58] sm:$0xff] }
  0x4a   : > { %v1184_v20 = vmax.f32 %v672_v11, 0.0  ;;  %v1691_v24 = vmin.f32 %v1179_v14, 6.0  ;;  %v1692_v25 = vmin.f32 %v1180_v15, 6.0  ;;  %v1185_v27 = vmax.f32 %v673_v17, 0.0  ;;  %v167_v34 = vld [vmem:[%s3615_s3 + $0x60] sm:$0xff]  ;;  %v168_v35 = vld [vmem:[%s3615_s3 + $0x68] sm:$0xff] }
  0x4b   : > { %v1693_v26 = vmin.f32 %v1181_v16, 6.0  ;;  %v1694_v30 = vmin.f32 %v1182_v18, 6.0  ;;  %v1695_v31 = vmin.f32 %v1183_v19, 6.0  ;;  %v1186_v33 = vmax.f32 %v674_v21, 0.0  ;;  %v169_v50 = vld [vmem:[%s3615_s3 + $0x70] sm:$0xff]  ;;  %v170_v51 = vld [vmem:[%s3615_s3 + $0x78] sm:$0xff] }
  0x4c   : > { %v1696_v32 = vmin.f32 %v1184_v20, 6.0  ;;  %v2203_v36 = vmul.f32 0.16666667, %v1691_v24  ;;  %v2204_v37 = vmul.f32 0.16666667, %v1692_v25  ;;  %v1697_v42 = vmin.f32 %v1185_v27, 6.0 }
  0x4d   : > { %v2205_v38 = vmul.f32 0.16666667, %v1693_v26  ;;  %v2206_v39 = vmul.f32 0.16666667, %v1694_v30  ;;  %v2207_v40 = vmul.f32 0.16666667, %v1695_v31 }
  0x4e   : > { %v2208_v41 = vmul.f32 0.16666667, %v1696_v32  ;;  %2715 = vst [vmem:[%s3637_s16] sm:$0xff] %v2203_v36  ;;  %2716 = vst [vmem:[%s3637_s16 + $0x8] sm:$0xff] %v2204_v37  ;;  %v1698_v43 = vmin.f32 %v1186_v33, 6.0  ;;  %v675_v44 = vadd.f32 3.0, %v163_v22  ;;  %v676_v45 = vadd.f32 3.0, %v164_v23 }
  0x4f   : > { %2717 = vst [vmem:[%s3637_s16 + $0x10] sm:$0xff] %v2205_v38  ;;  %2718 = vst [vmem:[%s3637_s16 + $0x18] sm:$0xff] %v2206_v39  ;;  %v677_v46 = vadd.f32 3.0, %v165_v28  ;;  %v678_v47 = vadd.f32 3.0, %v166_v29  ;;  %v679_v48 = vadd.f32 3.0, %v167_v34  ;;  %v680_v49 = vadd.f32 3.0, %v168_v35 }
  0x50   : > { %2719 = vst [vmem:[%s3637_s16 + $0x20] sm:$0xff] %v2207_v40  ;;  %2720 = vst [vmem:[%s3637_s16 + $0x28] sm:$0xff] %v2208_v41  ;;  %v2209_v52 = vmul.f32 0.16666667, %v1697_v42  ;;  %v2210_v53 = vmul.f32 0.16666667, %v1698_v43 }
  0x51   : > { %v1187_v54 = vmax.f32 %v675_v44, 0.0  ;;  %v1188_v55 = vmax.f32 %v676_v45, 0.0  ;;  %v1189_v56 = vmax.f32 %v677_v46, 0.0  ;;  %v1190_v57 = vmax.f32 %v678_v47, 0.0  ;;  %v171_v60 = vld [vmem:[%s3615_s3 + $0x80] sm:$0xff]  ;;  %v172_v1 = vld [vmem:[%s3615_s3 + $0x88] sm:$0xff] }
  0x52   : > { %v1191_v58 = vmax.f32 %v679_v48, 0.0  ;;  %v1192_v59 = vmax.f32 %v680_v49, 0.0  ;;  %2721 = vst [vmem:[%s3637_s16 + $0x30] sm:$0xff] %v2209_v52  ;;  %2722 = vst [vmem:[%s3637_s16 + $0x38] sm:$0xff] %v2210_v53  ;;  %v681_v63 = vadd.f32 3.0, %v169_v50  ;;  %v682_v0 = vadd.f32 3.0, %v170_v51 }
  0x53   : > { %v1699_v61 = vmin.f32 %v1187_v54, 6.0  ;;  %v1700_v62 = vmin.f32 %v1188_v55, 6.0  ;;  %v173_v2 = vld [vmem:[%s3615_s3 + $0x90] sm:$0xff]  ;;  %v174_v3 = vld [vmem:[%s3615_s3 + $0x98] sm:$0xff]  ;;  %v1701_v4 = vmin.f32 %v1189_v56, 6.0  ;;  %v1702_v5 = vmin.f32 %v1190_v57, 6.0 }
  0x54   : > { %v1703_v6 = vmin.f32 %v1191_v58, 6.0  ;;  %v1704_v7 = vmin.f32 %v1192_v59, 6.0  ;;  %v175_v8 = vld [vmem:[%s3615_s3 + $0xa0] sm:$0xff]  ;;  %v176_v9 = vld [vmem:[%s3615_s3 + $0xa8] sm:$0xff]  ;;  %v1193_v12 = vmax.f32 %v681_v63, 0.0  ;;  %v1194_v13 = vmax.f32 %v682_v0, 0.0 }
  0x55   : > { %v2211_v10 = vmul.f32 0.16666667, %v1699_v61  ;;  %v2212_v11 = vmul.f32 0.16666667, %v1700_v62  ;;  %v2213_v14 = vmul.f32 0.16666667, %v1701_v4 }
  0x56   : > { %v2214_v15 = vmul.f32 0.16666667, %v1702_v5  ;;  %v2215_v16 = vmul.f32 0.16666667, %v1703_v6  ;;  %v2216_v17 = vmul.f32 0.16666667, %v1704_v7 }
  0x57   : > { %2723 = vst [vmem:[%s3637_s16 + $0x40] sm:$0xff] %v2211_v10  ;;  %2724 = vst [vmem:[%s3637_s16 + $0x48] sm:$0xff] %v2212_v11  ;;  %v1705_v18 = vmin.f32 %v1193_v12, 6.0  ;;  %v1706_v19 = vmin.f32 %v1194_v13, 6.0  ;;  %v683_v20 = vadd.f32 3.0, %v171_v60  ;;  %v684_v21 = vadd.f32 3.0, %v172_v1 }
  0x58   : > { %2725 = vst [vmem:[%s3637_s16 + $0x50] sm:$0xff] %v2213_v14  ;;  %2726 = vst [vmem:[%s3637_s16 + $0x58] sm:$0xff] %v2214_v15  ;;  %v685_v22 = vadd.f32 3.0, %v173_v2  ;;  %v686_v23 = vadd.f32 3.0, %v174_v3  ;;  %v687_v24 = vadd.f32 3.0, %v175_v8  ;;  %v177_v25 = vld [vmem:[%s3615_s3 + $0xb0] sm:$0xff] }
  0x59   : > { %2727 = vst [vmem:[%s3637_s16 + $0x60] sm:$0xff] %v2215_v16  ;;  %v178_v26 = vld [vmem:[%s3615_s3 + $0xb8] sm:$0xff]  ;;  %2728 = vst [vmem:[%s3637_s16 + $0x68] sm:$0xff] %v2216_v17  ;;  %v2217_v27 = vmul.f32 0.16666667, %v1705_v18  ;;  %v1195_v29 = vmax.f32 %v683_v20, 0.0 }
  0x5a   : > { %v2218_v28 = vmul.f32 0.16666667, %v1706_v19  ;;  %v688_v30 = vadd.f32 3.0, %v176_v9  ;;  %v1196_v31 = vmax.f32 %v684_v21, 0.0  ;;  %v1197_v32 = vmax.f32 %v685_v22, 0.0  ;;  %v179_v39 = vld [vmem:[%s3615_s3 + $0xc0] sm:$0xff] }
  0x5b   : > { %v1198_v33 = vmax.f32 %v686_v23, 0.0  ;;  %v1199_v34 = vmax.f32 %v687_v24, 0.0  ;;  %2729 = vst [vmem:[%s3637_s16 + $0x70] sm:$0xff] %v2217_v27  ;;  %v1707_v35 = vmin.f32 %v1195_v29, 6.0  ;;  %v689_v37 = vadd.f32 3.0, %v177_v25  ;;  %v180_v40 = vld [vmem:[%s3615_s3 + $0xc8] sm:$0xff] }
  0x5c   : > { %2730 = vst [vmem:[%s3637_s16 + $0x78] sm:$0xff] %v2218_v28  ;;  %v1200_v36 = vmax.f32 %v688_v30, 0.0  ;;  %v690_v38 = vadd.f32 3.0, %v178_v26  ;;  %v181_v41 = vld [vmem:[%s3615_s3 + $0xd0] sm:$0xff]  ;;  %v1708_v42 = vmin.f32 %v1196_v31, 6.0  ;;  %v1709_v43 = vmin.f32 %v1197_v32, 6.0 }
  0x5d   : > { %v1710_v44 = vmin.f32 %v1198_v33, 6.0  ;;  %v1711_v45 = vmin.f32 %v1199_v34, 6.0  ;;  %v182_v46 = vld [vmem:[%s3615_s3 + $0xd8] sm:$0xff]  ;;  %v183_v47 = vld [vmem:[%s3615_s3 + $0xe0] sm:$0xff]  ;;  %v2219_v48 = vmul.f32 0.16666667, %v1707_v35 }
  0x5e   : > { %v1712_v49 = vmin.f32 %v1200_v36, 6.0  ;;  %v1201_v50 = vmax.f32 %v689_v37, 0.0  ;;  %v1202_v51 = vmax.f32 %v690_v38, 0.0  ;;  %v184_v52 = vld [vmem:[%s3615_s3 + $0xe8] sm:$0xff]  ;;  %v2220_v53 = vmul.f32 0.16666667, %v1708_v42 }
  0x5f   : > { %v2221_v54 = vmul.f32 0.16666667, %v1709_v43  ;;  %v2222_v55 = vmul.f32 0.16666667, %v1710_v44  ;;  %2731 = vst [vmem:[%s3637_s16 + $0x80] sm:$0xff] %v2219_v48  ;;  %v691_v60 = vadd.f32 3.0, %v179_v39 }
  0x60   : > { %v2223_v56 = vmul.f32 0.16666667, %v1711_v45  ;;  %v2224_v57 = vmul.f32 0.16666667, %v1712_v49  ;;  %v1713_v58 = vmin.f32 %v1201_v50, 6.0  ;;  %v1714_v59 = vmin.f32 %v1202_v51, 6.0 }
  0x61   : > { %2732 = vst [vmem:[%s3637_s16 + $0x88] sm:$0xff] %v2220_v53  ;;  %2733 = vst [vmem:[%s3637_s16 + $0x90] sm:$0xff] %v2221_v54  ;;  %v692_v61 = vadd.f32 3.0, %v180_v40  ;;  %v693_v62 = vadd.f32 3.0, %v181_v41  ;;  %v694_v63 = vadd.f32 3.0, %v182_v46  ;;  %v185_v0 = vld [vmem:[%s3615_s3 + $0xf0] sm:$0xff] }
  0x62   : > { %2734 = vst [vmem:[%s3637_s16 + $0x98] sm:$0xff] %v2222_v55  ;;  %v186_v1 = vld [vmem:[%s3615_s3 + $0xf8] sm:$0xff]  ;;  %2735 = vst [vmem:[%s3637_s16 + $0xa0] sm:$0xff] %v2223_v56  ;;  %v2225_v2 = vmul.f32 0.16666667, %v1713_v58  ;;  %v695_v4 = vadd.f32 3.0, %v183_v47 }
  0x63   : > { %2736 = vst [vmem:[%s3637_s16 + $0xa8] sm:$0xff] %v2224_v57  ;;  %v2226_v3 = vmul.f32 0.16666667, %v1714_v59  ;;  %v696_v5 = vadd.f32 3.0, %v184_v52  ;;  %v1203_v6 = vmax.f32 %v691_v60, 0.0  ;;  %v1204_v7 = vmax.f32 %v692_v61, 0.0 }
  0x64   : > { %v1205_v8 = vmax.f32 %v693_v62, 0.0  ;;  %v1206_v9 = vmax.f32 %v694_v63, 0.0  ;;  %2737 = vst [vmem:[%s3637_s16 + $0xb0] sm:$0xff] %v2225_v2  ;;  %v1207_v10 = vmax.f32 %v695_v4, 0.0  ;;  %v697_v12 = vadd.f32 3.0, %v185_v0  ;;  %v187_v14 = vld [vmem:[%s3615_s3 + $0x100] sm:$0xff] }
  0x65   : > { %2738 = vst [vmem:[%s3637_s16 + $0xb8] sm:$0xff] %v2226_v3  ;;  %v1208_v11 = vmax.f32 %v696_v5, 0.0  ;;  %v698_v13 = vadd.f32 3.0, %v186_v1  ;;  %v188_v15 = vld [vmem:[%s3615_s3 + $0x108] sm:$0xff]  ;;  %v1715_v16 = vmin.f32 %v1203_v6, 6.0  ;;  %v1716_v17 = vmin.f32 %v1204_v7, 6.0 }
  0x66   : > { %v1717_v18 = vmin.f32 %v1205_v8, 6.0  ;;  %v1718_v19 = vmin.f32 %v1206_v9, 6.0  ;;  %v189_v20 = vld [vmem:[%s3615_s3 + $0x110] sm:$0xff]  ;;  %v190_v21 = vld [vmem:[%s3615_s3 + $0x118] sm:$0xff]  ;;  %v1719_v22 = vmin.f32 %v1207_v10, 6.0  ;;  %v1209_v24 = vmax.f32 %v697_v12, 0.0 }
  0x67   : > { %v1720_v23 = vmin.f32 %v1208_v11, 6.0  ;;  %v1210_v25 = vmax.f32 %v698_v13, 0.0  ;;  %v191_v26 = vld [vmem:[%s3615_s3 + $0x120] sm:$0xff]  ;;  %v192_v27 = vld [vmem:[%s3615_s3 + $0x128] sm:$0xff]  ;;  %v2227_v28 = vmul.f32 0.16666667, %v1715_v16 }
  0x68   : > { %v2228_v29 = vmul.f32 0.16666667, %v1716_v17  ;;  %v2229_v30 = vmul.f32 0.16666667, %v1717_v18  ;;  %v2230_v31 = vmul.f32 0.16666667, %v1718_v19 }
  0x69   : > { %v2231_v32 = vmul.f32 0.16666667, %v1719_v22  ;;  %v2232_v33 = vmul.f32 0.16666667, %v1720_v23  ;;  %2739 = vst [vmem:[%s3637_s16 + $0xc0] sm:$0xff] %v2227_v28  ;;  %v1721_v34 = vmin.f32 %v1209_v24, 6.0 }
  0x6a   : > { %2740 = vst [vmem:[%s3637_s16 + $0xc8] sm:$0xff] %v2228_v29  ;;  %2741 = vst [vmem:[%s3637_s16 + $0xd0] sm:$0xff] %v2229_v30  ;;  %v1722_v35 = vmin.f32 %v1210_v25, 6.0  ;;  %v699_v36 = vadd.f32 3.0, %v187_v14  ;;  %v700_v37 = vadd.f32 3.0, %v188_v15  ;;  %v701_v38 = vadd.f32 3.0, %v189_v20 }
  0x6b   : > { %2742 = vst [vmem:[%s3637_s16 + $0xd8] sm:$0xff] %v2230_v31  ;;  %2743 = vst [vmem:[%s3637_s16 + $0xe0] sm:$0xff] %v2231_v32  ;;  %v702_v39 = vadd.f32 3.0, %v190_v21  ;;  %v703_v40 = vadd.f32 3.0, %v191_v26  ;;  %v704_v41 = vadd.f32 3.0, %v192_v27  ;;  %v193_v42 = vld [vmem:[%s3615_s3 + $0x130] sm:$0xff] }
  0x6c   : > { %2744 = vst [vmem:[%s3637_s16 + $0xe8] sm:$0xff] %v2232_v33  ;;  %v194_v43 = vld [vmem:[%s3615_s3 + $0x138] sm:$0xff]  ;;  %v2233_v44 = vmul.f32 0.16666667, %v1721_v34  ;;  %v2234_v45 = vmul.f32 0.16666667, %v1722_v35 }
  0x6d   : > { %v1211_v46 = vmax.f32 %v699_v36, 0.0  ;;  %v1212_v47 = vmax.f32 %v700_v37, 0.0  ;;  %v1213_v48 = vmax.f32 %v701_v38, 0.0  ;;  %v1214_v49 = vmax.f32 %v702_v39, 0.0  ;;  %v195_v52 = vld [vmem:[%s3615_s3 + $0x140] sm:$0xff]  ;;  %v196_v57 = vld [vmem:[%s3615_s3 + $0x148] sm:$0xff] }
  0x6e   : > { %v1215_v50 = vmax.f32 %v703_v40, 0.0  ;;  %v1216_v51 = vmax.f32 %v704_v41, 0.0  ;;  %2745 = vst [vmem:[%s3637_s16 + $0xf0] sm:$0xff] %v2233_v44  ;;  %2746 = vst [vmem:[%s3637_s16 + $0xf8] sm:$0xff] %v2234_v45  ;;  %v705_v55 = vadd.f32 3.0, %v193_v42  ;;  %v706_v56 = vadd.f32 3.0, %v194_v43 }
  0x6f   : > { %v1723_v53 = vmin.f32 %v1211_v46, 6.0  ;;  %v1724_v54 = vmin.f32 %v1212_v47, 6.0  ;;  %v197_v58 = vld [vmem:[%s3615_s3 + $0x150] sm:$0xff]  ;;  %v198_v59 = vld [vmem:[%s3615_s3 + $0x158] sm:$0xff]  ;;  %v1725_v60 = vmin.f32 %v1213_v48, 6.0  ;;  %v1726_v61 = vmin.f32 %v1214_v49, 6.0 }
  0x70   : > { %v1727_v62 = vmin.f32 %v1215_v50, 6.0  ;;  %v1728_v63 = vmin.f32 %v1216_v51, 6.0  ;;  %v199_v0 = vld [vmem:[%s3615_s3 + $0x160] sm:$0xff]  ;;  %v200_v1 = vld [vmem:[%s3615_s3 + $0x168] sm:$0xff]  ;;  %v1217_v4 = vmax.f32 %v705_v55, 0.0  ;;  %v1218_v5 = vmax.f32 %v706_v56, 0.0 }
  0x71   : > { %v2235_v2 = vmul.f32 0.16666667, %v1723_v53  ;;  %v2236_v3 = vmul.f32 0.16666667, %v1724_v54  ;;  %v2237_v6 = vmul.f32 0.16666667, %v1725_v60 }
  0x72   : > { %v2238_v7 = vmul.f32 0.16666667, %v1726_v61  ;;  %v2239_v8 = vmul.f32 0.16666667, %v1727_v62  ;;  %v2240_v9 = vmul.f32 0.16666667, %v1728_v63 }
  0x73   : > { %2747 = vst [vmem:[%s3637_s16 + $0x100] sm:$0xff] %v2235_v2  ;;  %2748 = vst [vmem:[%s3637_s16 + $0x108] sm:$0xff] %v2236_v3  ;;  %v1729_v10 = vmin.f32 %v1217_v4, 6.0  ;;  %v1730_v11 = vmin.f32 %v1218_v5, 6.0  ;;  %v707_v12 = vadd.f32 3.0, %v195_v52  ;;  %v708_v13 = vadd.f32 3.0, %v196_v57 }
  0x74   : > { %2749 = vst [vmem:[%s3637_s16 + $0x110] sm:$0xff] %v2237_v6  ;;  %2750 = vst [vmem:[%s3637_s16 + $0x118] sm:$0xff] %v2238_v7  ;;  %v709_v14 = vadd.f32 3.0, %v197_v58  ;;  %v710_v15 = vadd.f32 3.0, %v198_v59  ;;  %v711_v16 = vadd.f32 3.0, %v199_v0  ;;  %v201_v17 = vld [vmem:[%s3615_s3 + $0x170] sm:$0xff] }
  0x75   : > { %2751 = vst [vmem:[%s3637_s16 + $0x120] sm:$0xff] %v2239_v8  ;;  %v202_v18 = vld [vmem:[%s3615_s3 + $0x178] sm:$0xff]  ;;  %2752 = vst [vmem:[%s3637_s16 + $0x128] sm:$0xff] %v2240_v9  ;;  %v2241_v19 = vmul.f32 0.16666667, %v1729_v10  ;;  %v1219_v21 = vmax.f32 %v707_v12, 0.0 }
  0x76   : > { %v2242_v20 = vmul.f32 0.16666667, %v1730_v11  ;;  %v712_v22 = vadd.f32 3.0, %v200_v1  ;;  %v1220_v23 = vmax.f32 %v708_v13, 0.0  ;;  %v1221_v24 = vmax.f32 %v709_v14, 0.0  ;;  %v203_v31 = vld [vmem:[%s3615_s3 + $0x180] sm:$0xff] }
  0x77   : > { %v1222_v25 = vmax.f32 %v710_v15, 0.0  ;;  %v1223_v26 = vmax.f32 %v711_v16, 0.0  ;;  %2753 = vst [vmem:[%s3637_s16 + $0x130] sm:$0xff] %v2241_v19  ;;  %v1731_v27 = vmin.f32 %v1219_v21, 6.0  ;;  %v713_v29 = vadd.f32 3.0, %v201_v17  ;;  %v204_v32 = vld [vmem:[%s3615_s3 + $0x188] sm:$0xff] }
  0x78   : > { %2754 = vst [vmem:[%s3637_s16 + $0x138] sm:$0xff] %v2242_v20  ;;  %v1224_v28 = vmax.f32 %v712_v22, 0.0  ;;  %v714_v30 = vadd.f32 3.0, %v202_v18  ;;  %v205_v33 = vld [vmem:[%s3615_s3 + $0x190] sm:$0xff]  ;;  %v1732_v34 = vmin.f32 %v1220_v23, 6.0  ;;  %v1733_v35 = vmin.f32 %v1221_v24, 6.0 }
  0x79   : > { %v1734_v36 = vmin.f32 %v1222_v25, 6.0  ;;  %v1735_v37 = vmin.f32 %v1223_v26, 6.0  ;;  %v206_v38 = vld [vmem:[%s3615_s3 + $0x198] sm:$0xff]  ;;  %v207_v39 = vld [vmem:[%s3615_s3 + $0x1a0] sm:$0xff]  ;;  %v2243_v40 = vmul.f32 0.16666667, %v1731_v27 }
  0x7a   : > { %v1736_v41 = vmin.f32 %v1224_v28, 6.0  ;;  %v1225_v42 = vmax.f32 %v713_v29, 0.0  ;;  %v1226_v43 = vmax.f32 %v714_v30, 0.0  ;;  %v208_v44 = vld [vmem:[%s3615_s3 + $0x1a8] sm:$0xff]  ;;  %v2244_v45 = vmul.f32 0.16666667, %v1732_v34 }
  0x7b   : > { %v2245_v46 = vmul.f32 0.16666667, %v1733_v35  ;;  %v2246_v47 = vmul.f32 0.16666667, %v1734_v36  ;;  %2755 = vst [vmem:[%s3637_s16 + $0x140] sm:$0xff] %v2243_v40  ;;  %v715_v52 = vadd.f32 3.0, %v203_v31 }
  0x7c   : > { %v2247_v48 = vmul.f32 0.16666667, %v1735_v37  ;;  %v2248_v49 = vmul.f32 0.16666667, %v1736_v41  ;;  %v1737_v50 = vmin.f32 %v1225_v42, 6.0  ;;  %v1738_v51 = vmin.f32 %v1226_v43, 6.0 }
  0x7d   : > { %2756 = vst [vmem:[%s3637_s16 + $0x148] sm:$0xff] %v2244_v45  ;;  %2757 = vst [vmem:[%s3637_s16 + $0x150] sm:$0xff] %v2245_v46  ;;  %v716_v53 = vadd.f32 3.0, %v204_v32  ;;  %v717_v54 = vadd.f32 3.0, %v205_v33  ;;  %v718_v55 = vadd.f32 3.0, %v206_v38  ;;  %v209_v56 = vld [vmem:[%s3615_s3 + $0x1b0] sm:$0xff] }
  0x7e   : > { %2758 = vst [vmem:[%s3637_s16 + $0x158] sm:$0xff] %v2246_v47  ;;  %v210_v57 = vld [vmem:[%s3615_s3 + $0x1b8] sm:$0xff]  ;;  %2759 = vst [vmem:[%s3637_s16 + $0x160] sm:$0xff] %v2247_v48  ;;  %v2249_v58 = vmul.f32 0.16666667, %v1737_v50  ;;  %v719_v60 = vadd.f32 3.0, %v207_v39 }
  0x7f   : > { %2760 = vst [vmem:[%s3637_s16 + $0x168] sm:$0xff] %v2248_v49  ;;  %v2250_v59 = vmul.f32 0.16666667, %v1738_v51  ;;  %v720_v61 = vadd.f32 3.0, %v208_v44  ;;  %v1227_v62 = vmax.f32 %v715_v52, 0.0  ;;  %v1228_v63 = vmax.f32 %v716_v53, 0.0 }
  0x80   : > { %v1229_v0 = vmax.f32 %v717_v54, 0.0  ;;  %v1230_v1 = vmax.f32 %v718_v55, 0.0  ;;  %2761 = vst [vmem:[%s3637_s16 + $0x170] sm:$0xff] %v2249_v58  ;;  %v1231_v2 = vmax.f32 %v719_v60, 0.0  ;;  %v721_v4 = vadd.f32 3.0, %v209_v56  ;;  %v211_v6 = vld [vmem:[%s3615_s3 + $0x1c0] sm:$0xff] }
  0x81   : > { %2762 = vst [vmem:[%s3637_s16 + $0x178] sm:$0xff] %v2250_v59  ;;  %v1232_v3 = vmax.f32 %v720_v61, 0.0  ;;  %v722_v5 = vadd.f32 3.0, %v210_v57  ;;  %v212_v7 = vld [vmem:[%s3615_s3 + $0x1c8] sm:$0xff]  ;;  %v1739_v8 = vmin.f32 %v1227_v62, 6.0  ;;  %v1740_v9 = vmin.f32 %v1228_v63, 6.0 }
  0x82   : > { %v1741_v10 = vmin.f32 %v1229_v0, 6.0  ;;  %v1742_v11 = vmin.f32 %v1230_v1, 6.0  ;;  %v213_v12 = vld [vmem:[%s3615_s3 + $0x1d0] sm:$0xff]  ;;  %v214_v13 = vld [vmem:[%s3615_s3 + $0x1d8] sm:$0xff]  ;;  %v1743_v14 = vmin.f32 %v1231_v2, 6.0  ;;  %v1233_v16 = vmax.f32 %v721_v4, 0.0 }
  0x83   : > { %v1744_v15 = vmin.f32 %v1232_v3, 6.0  ;;  %v1234_v17 = vmax.f32 %v722_v5, 0.0  ;;  %v215_v18 = vld [vmem:[%s3615_s3 + $0x1e0] sm:$0xff]  ;;  %v216_v19 = vld [vmem:[%s3615_s3 + $0x1e8] sm:$0xff]  ;;  %v2251_v20 = vmul.f32 0.16666667, %v1739_v8 }
  0x84   : > { %v2252_v21 = vmul.f32 0.16666667, %v1740_v9  ;;  %v2253_v22 = vmul.f32 0.16666667, %v1741_v10  ;;  %v2254_v23 = vmul.f32 0.16666667, %v1742_v11 }
  0x85   : > { %v2255_v24 = vmul.f32 0.16666667, %v1743_v14  ;;  %v2256_v25 = vmul.f32 0.16666667, %v1744_v15  ;;  %2763 = vst [vmem:[%s3637_s16 + $0x180] sm:$0xff] %v2251_v20  ;;  %v1745_v26 = vmin.f32 %v1233_v16, 6.0 }
  0x86   : > { %2764 = vst [vmem:[%s3637_s16 + $0x188] sm:$0xff] %v2252_v21  ;;  %2765 = vst [vmem:[%s3637_s16 + $0x190] sm:$0xff] %v2253_v22  ;;  %v1746_v27 = vmin.f32 %v1234_v17, 6.0  ;;  %v723_v28 = vadd.f32 3.0, %v211_v6  ;;  %v724_v29 = vadd.f32 3.0, %v212_v7  ;;  %v725_v30 = vadd.f32 3.0, %v213_v12 }
  0x87   : > { %2766 = vst [vmem:[%s3637_s16 + $0x198] sm:$0xff] %v2254_v23  ;;  %2767 = vst [vmem:[%s3637_s16 + $0x1a0] sm:$0xff] %v2255_v24  ;;  %v726_v31 = vadd.f32 3.0, %v214_v13  ;;  %v727_v32 = vadd.f32 3.0, %v215_v18  ;;  %v728_v33 = vadd.f32 3.0, %v216_v19  ;;  %v217_v34 = vld [vmem:[%s3615_s3 + $0x1f0] sm:$0xff] }
  0x88   : > { %2768 = vst [vmem:[%s3637_s16 + $0x1a8] sm:$0xff] %v2256_v25  ;;  %v218_v35 = vld [vmem:[%s3615_s3 + $0x1f8] sm:$0xff]  ;;  %v2257_v36 = vmul.f32 0.16666667, %v1745_v26  ;;  %v2258_v37 = vmul.f32 0.16666667, %v1746_v27 }
  0x89   : > { %v1235_v38 = vmax.f32 %v723_v28, 0.0  ;;  %v1236_v39 = vmax.f32 %v724_v29, 0.0  ;;  %v1237_v40 = vmax.f32 %v725_v30, 0.0  ;;  %v1238_v41 = vmax.f32 %v726_v31, 0.0  ;;  %v219_v44 = vld [vmem:[%s3615_s3 + $0x200] sm:$0xff]  ;;  %v220_v49 = vld [vmem:[%s3615_s3 + $0x208] sm:$0xff] }
  0x8a   : > { %v1239_v42 = vmax.f32 %v727_v32, 0.0  ;;  %v1240_v43 = vmax.f32 %v728_v33, 0.0  ;;  %2769 = vst [vmem:[%s3637_s16 + $0x1b0] sm:$0xff] %v2257_v36  ;;  %2770 = vst [vmem:[%s3637_s16 + $0x1b8] sm:$0xff] %v2258_v37  ;;  %v729_v47 = vadd.f32 3.0, %v217_v34  ;;  %v730_v48 = vadd.f32 3.0, %v218_v35 }
  0x8b   : > { %v1747_v45 = vmin.f32 %v1235_v38, 6.0  ;;  %v1748_v46 = vmin.f32 %v1236_v39, 6.0  ;;  %v221_v50 = vld [vmem:[%s3615_s3 + $0x210] sm:$0xff]  ;;  %v222_v51 = vld [vmem:[%s3615_s3 + $0x218] sm:$0xff]  ;;  %v1749_v52 = vmin.f32 %v1237_v40, 6.0  ;;  %v1750_v53 = vmin.f32 %v1238_v41, 6.0 }
  0x8c   : > { %v1751_v54 = vmin.f32 %v1239_v42, 6.0  ;;  %v1752_v55 = vmin.f32 %v1240_v43, 6.0  ;;  %v223_v56 = vld [vmem:[%s3615_s3 + $0x220] sm:$0xff]  ;;  %v224_v57 = vld [vmem:[%s3615_s3 + $0x228] sm:$0xff]  ;;  %v1241_v60 = vmax.f32 %v729_v47, 0.0  ;;  %v1242_v61 = vmax.f32 %v730_v48, 0.0 }
  0x8d   : > { %v2259_v58 = vmul.f32 0.16666667, %v1747_v45  ;;  %v2260_v59 = vmul.f32 0.16666667, %v1748_v46  ;;  %v2261_v62 = vmul.f32 0.16666667, %v1749_v52 }
  0x8e   : > { %v2262_v63 = vmul.f32 0.16666667, %v1750_v53  ;;  %v2263_v0 = vmul.f32 0.16666667, %v1751_v54  ;;  %v2264_v1 = vmul.f32 0.16666667, %v1752_v55 }
  0x8f   : > { %2771 = vst [vmem:[%s3637_s16 + $0x1c0] sm:$0xff] %v2259_v58  ;;  %2772 = vst [vmem:[%s3637_s16 + $0x1c8] sm:$0xff] %v2260_v59  ;;  %v1753_v2 = vmin.f32 %v1241_v60, 6.0  ;;  %v1754_v3 = vmin.f32 %v1242_v61, 6.0  ;;  %v731_v4 = vadd.f32 3.0, %v219_v44  ;;  %v732_v5 = vadd.f32 3.0, %v220_v49 }
  0x90   : > { %2773 = vst [vmem:[%s3637_s16 + $0x1d0] sm:$0xff] %v2261_v62  ;;  %2774 = vst [vmem:[%s3637_s16 + $0x1d8] sm:$0xff] %v2262_v63  ;;  %v733_v6 = vadd.f32 3.0, %v221_v50  ;;  %v734_v7 = vadd.f32 3.0, %v222_v51  ;;  %v735_v8 = vadd.f32 3.0, %v223_v56  ;;  %v225_v9 = vld [vmem:[%s3615_s3 + $0x230] sm:$0xff] }
  0x91   : > { %2775 = vst [vmem:[%s3637_s16 + $0x1e0] sm:$0xff] %v2263_v0  ;;  %v226_v10 = vld [vmem:[%s3615_s3 + $0x238] sm:$0xff]  ;;  %2776 = vst [vmem:[%s3637_s16 + $0x1e8] sm:$0xff] %v2264_v1  ;;  %v2265_v11 = vmul.f32 0.16666667, %v1753_v2  ;;  %v1243_v13 = vmax.f32 %v731_v4, 0.0 }
  0x92   : > { %v2266_v12 = vmul.f32 0.16666667, %v1754_v3  ;;  %v736_v14 = vadd.f32 3.0, %v224_v57  ;;  %v1244_v15 = vmax.f32 %v732_v5, 0.0  ;;  %v1245_v16 = vmax.f32 %v733_v6, 0.0  ;;  %v227_v23 = vld [vmem:[%s3615_s3 + $0x240] sm:$0xff] }
  0x93   : > { %v1246_v17 = vmax.f32 %v734_v7, 0.0  ;;  %v1247_v18 = vmax.f32 %v735_v8, 0.0  ;;  %2777 = vst [vmem:[%s3637_s16 + $0x1f0] sm:$0xff] %v2265_v11  ;;  %v1755_v19 = vmin.f32 %v1243_v13, 6.0  ;;  %v737_v21 = vadd.f32 3.0, %v225_v9  ;;  %v228_v24 = vld [vmem:[%s3615_s3 + $0x248] sm:$0xff] }
  0x94   : > { %2778 = vst [vmem:[%s3637_s16 + $0x1f8] sm:$0xff] %v2266_v12  ;;  %v1248_v20 = vmax.f32 %v736_v14, 0.0  ;;  %v738_v22 = vadd.f32 3.0, %v226_v10  ;;  %v229_v25 = vld [vmem:[%s3615_s3 + $0x250] sm:$0xff]  ;;  %v1756_v26 = vmin.f32 %v1244_v15, 6.0  ;;  %v1757_v27 = vmin.f32 %v1245_v16, 6.0 }
  0x95   : > { %v1758_v28 = vmin.f32 %v1246_v17, 6.0  ;;  %v1759_v29 = vmin.f32 %v1247_v18, 6.0  ;;  %v230_v30 = vld [vmem:[%s3615_s3 + $0x258] sm:$0xff]  ;;  %v231_v31 = vld [vmem:[%s3615_s3 + $0x260] sm:$0xff]  ;;  %v2267_v32 = vmul.f32 0.16666667, %v1755_v19 }
  0x96   : > { %v1760_v33 = vmin.f32 %v1248_v20, 6.0  ;;  %v1249_v34 = vmax.f32 %v737_v21, 0.0  ;;  %v1250_v35 = vmax.f32 %v738_v22, 0.0  ;;  %v232_v36 = vld [vmem:[%s3615_s3 + $0x268] sm:$0xff]  ;;  %v2268_v37 = vmul.f32 0.16666667, %v1756_v26 }
  0x97   : > { %v2269_v38 = vmul.f32 0.16666667, %v1757_v27  ;;  %v2270_v39 = vmul.f32 0.16666667, %v1758_v28  ;;  %2779 = vst [vmem:[%s3637_s16 + $0x200] sm:$0xff] %v2267_v32  ;;  %v739_v44 = vadd.f32 3.0, %v227_v23 }
  0x98   : > { %v2271_v40 = vmul.f32 0.16666667, %v1759_v29  ;;  %v2272_v41 = vmul.f32 0.16666667, %v1760_v33  ;;  %v1761_v42 = vmin.f32 %v1249_v34, 6.0  ;;  %v1762_v43 = vmin.f32 %v1250_v35, 6.0 }
  0x99   : > { %2780 = vst [vmem:[%s3637_s16 + $0x208] sm:$0xff] %v2268_v37  ;;  %2781 = vst [vmem:[%s3637_s16 + $0x210] sm:$0xff] %v2269_v38  ;;  %v740_v45 = vadd.f32 3.0, %v228_v24  ;;  %v741_v46 = vadd.f32 3.0, %v229_v25  ;;  %v742_v47 = vadd.f32 3.0, %v230_v30  ;;  %v233_v48 = vld [vmem:[%s3615_s3 + $0x270] sm:$0xff] }
  0x9a   : > { %2782 = vst [vmem:[%s3637_s16 + $0x218] sm:$0xff] %v2270_v39  ;;  %v234_v49 = vld [vmem:[%s3615_s3 + $0x278] sm:$0xff]  ;;  %2783 = vst [vmem:[%s3637_s16 + $0x220] sm:$0xff] %v2271_v40  ;;  %v2273_v50 = vmul.f32 0.16666667, %v1761_v42  ;;  %v743_v52 = vadd.f32 3.0, %v231_v31 }
  0x9b   : > { %2784 = vst [vmem:[%s3637_s16 + $0x228] sm:$0xff] %v2272_v41  ;;  %v2274_v51 = vmul.f32 0.16666667, %v1762_v43  ;;  %v744_v53 = vadd.f32 3.0, %v232_v36  ;;  %v1251_v54 = vmax.f32 %v739_v44, 0.0  ;;  %v1252_v55 = vmax.f32 %v740_v45, 0.0 }
  0x9c   : > { %v1253_v56 = vmax.f32 %v741_v46, 0.0  ;;  %v1254_v57 = vmax.f32 %v742_v47, 0.0  ;;  %2785 = vst [vmem:[%s3637_s16 + $0x230] sm:$0xff] %v2273_v50  ;;  %v1255_v58 = vmax.f32 %v743_v52, 0.0  ;;  %v745_v60 = vadd.f32 3.0, %v233_v48  ;;  %v235_v62 = vld [vmem:[%s3615_s3 + $0x280] sm:$0xff] }
  0x9d   : > { %2786 = vst [vmem:[%s3637_s16 + $0x238] sm:$0xff] %v2274_v51  ;;  %v1256_v59 = vmax.f32 %v744_v53, 0.0  ;;  %v746_v61 = vadd.f32 3.0, %v234_v49  ;;  %v236_v63 = vld [vmem:[%s3615_s3 + $0x288] sm:$0xff]  ;;  %v1763_v0 = vmin.f32 %v1251_v54, 6.0  ;;  %v1764_v1 = vmin.f32 %v1252_v55, 6.0 }
  0x9e   : > { %v1765_v2 = vmin.f32 %v1253_v56, 6.0  ;;  %v1766_v3 = vmin.f32 %v1254_v57, 6.0  ;;  %v237_v4 = vld [vmem:[%s3615_s3 + $0x290] sm:$0xff]  ;;  %v238_v5 = vld [vmem:[%s3615_s3 + $0x298] sm:$0xff]  ;;  %v1767_v6 = vmin.f32 %v1255_v58, 6.0  ;;  %v1257_v8 = vmax.f32 %v745_v60, 0.0 }
  0x9f   : > { %v1768_v7 = vmin.f32 %v1256_v59, 6.0  ;;  %v1258_v9 = vmax.f32 %v746_v61, 0.0  ;;  %v239_v10 = vld [vmem:[%s3615_s3 + $0x2a0] sm:$0xff]  ;;  %v240_v11 = vld [vmem:[%s3615_s3 + $0x2a8] sm:$0xff]  ;;  %v2275_v12 = vmul.f32 0.16666667, %v1763_v0 }
  0xa0   : > { %v2276_v13 = vmul.f32 0.16666667, %v1764_v1  ;;  %v2277_v14 = vmul.f32 0.16666667, %v1765_v2  ;;  %v2278_v15 = vmul.f32 0.16666667, %v1766_v3 }
  0xa1   : > { %v2279_v16 = vmul.f32 0.16666667, %v1767_v6  ;;  %v2280_v17 = vmul.f32 0.16666667, %v1768_v7  ;;  %2787 = vst [vmem:[%s3637_s16 + $0x240] sm:$0xff] %v2275_v12  ;;  %v1769_v18 = vmin.f32 %v1257_v8, 6.0 }
  0xa2   : > { %2788 = vst [vmem:[%s3637_s16 + $0x248] sm:$0xff] %v2276_v13  ;;  %2789 = vst [vmem:[%s3637_s16 + $0x250] sm:$0xff] %v2277_v14  ;;  %v1770_v19 = vmin.f32 %v1258_v9, 6.0  ;;  %v747_v20 = vadd.f32 3.0, %v235_v62  ;;  %v748_v21 = vadd.f32 3.0, %v236_v63  ;;  %v749_v22 = vadd.f32 3.0, %v237_v4 }
  0xa3   : > { %2790 = vst [vmem:[%s3637_s16 + $0x258] sm:$0xff] %v2278_v15  ;;  %2791 = vst [vmem:[%s3637_s16 + $0x260] sm:$0xff] %v2279_v16  ;;  %v750_v23 = vadd.f32 3.0, %v238_v5  ;;  %v751_v24 = vadd.f32 3.0, %v239_v10  ;;  %v752_v25 = vadd.f32 3.0, %v240_v11  ;;  %v241_v26 = vld [vmem:[%s3615_s3 + $0x2b0] sm:$0xff] }
  0xa4   : > { %2792 = vst [vmem:[%s3637_s16 + $0x268] sm:$0xff] %v2280_v17  ;;  %v242_v27 = vld [vmem:[%s3615_s3 + $0x2b8] sm:$0xff]  ;;  %v2281_v28 = vmul.f32 0.16666667, %v1769_v18  ;;  %v2282_v29 = vmul.f32 0.16666667, %v1770_v19 }
  0xa5   : > { %v1259_v30 = vmax.f32 %v747_v20, 0.0  ;;  %v1260_v31 = vmax.f32 %v748_v21, 0.0  ;;  %v1261_v32 = vmax.f32 %v749_v22, 0.0  ;;  %v1262_v33 = vmax.f32 %v750_v23, 0.0  ;;  %v243_v36 = vld [vmem:[%s3615_s3 + $0x2c0] sm:$0xff]  ;;  %v244_v41 = vld [vmem:[%s3615_s3 + $0x2c8] sm:$0xff] }
  0xa6   : > { %v1263_v34 = vmax.f32 %v751_v24, 0.0  ;;  %v1264_v35 = vmax.f32 %v752_v25, 0.0  ;;  %2793 = vst [vmem:[%s3637_s16 + $0x270] sm:$0xff] %v2281_v28  ;;  %2794 = vst [vmem:[%s3637_s16 + $0x278] sm:$0xff] %v2282_v29  ;;  %v753_v39 = vadd.f32 3.0, %v241_v26  ;;  %v754_v40 = vadd.f32 3.0, %v242_v27 }
  0xa7   : > { %v1771_v37 = vmin.f32 %v1259_v30, 6.0  ;;  %v1772_v38 = vmin.f32 %v1260_v31, 6.0  ;;  %v245_v42 = vld [vmem:[%s3615_s3 + $0x2d0] sm:$0xff]  ;;  %v246_v43 = vld [vmem:[%s3615_s3 + $0x2d8] sm:$0xff]  ;;  %v1773_v44 = vmin.f32 %v1261_v32, 6.0  ;;  %v1774_v45 = vmin.f32 %v1262_v33, 6.0 }
  0xa8   : > { %v1775_v46 = vmin.f32 %v1263_v34, 6.0  ;;  %v1776_v47 = vmin.f32 %v1264_v35, 6.0  ;;  %v247_v48 = vld [vmem:[%s3615_s3 + $0x2e0] sm:$0xff]  ;;  %v248_v49 = vld [vmem:[%s3615_s3 + $0x2e8] sm:$0xff]  ;;  %v1265_v52 = vmax.f32 %v753_v39, 0.0  ;;  %v1266_v53 = vmax.f32 %v754_v40, 0.0 }
  0xa9   : > { %v2283_v50 = vmul.f32 0.16666667, %v1771_v37  ;;  %v2284_v51 = vmul.f32 0.16666667, %v1772_v38  ;;  %v2285_v54 = vmul.f32 0.16666667, %v1773_v44 }
  0xaa   : > { %v2286_v55 = vmul.f32 0.16666667, %v1774_v45  ;;  %v2287_v56 = vmul.f32 0.16666667, %v1775_v46  ;;  %v2288_v57 = vmul.f32 0.16666667, %v1776_v47 }
  0xab   : > { %2795 = vst [vmem:[%s3637_s16 + $0x280] sm:$0xff] %v2283_v50  ;;  %2796 = vst [vmem:[%s3637_s16 + $0x288] sm:$0xff] %v2284_v51  ;;  %v1777_v58 = vmin.f32 %v1265_v52, 6.0  ;;  %v1778_v59 = vmin.f32 %v1266_v53, 6.0  ;;  %v755_v60 = vadd.f32 3.0, %v243_v36  ;;  %v756_v61 = vadd.f32 3.0, %v244_v41 }
  0xac   : > { %2797 = vst [vmem:[%s3637_s16 + $0x290] sm:$0xff] %v2285_v54  ;;  %2798 = vst [vmem:[%s3637_s16 + $0x298] sm:$0xff] %v2286_v55  ;;  %v757_v62 = vadd.f32 3.0, %v245_v42  ;;  %v758_v63 = vadd.f32 3.0, %v246_v43  ;;  %v759_v0 = vadd.f32 3.0, %v247_v48  ;;  %v249_v1 = vld [vmem:[%s3615_s3 + $0x2f0] sm:$0xff] }
  0xad   : > { %2799 = vst [vmem:[%s3637_s16 + $0x2a0] sm:$0xff] %v2287_v56  ;;  %v250_v2 = vld [vmem:[%s3615_s3 + $0x2f8] sm:$0xff]  ;;  %2800 = vst [vmem:[%s3637_s16 + $0x2a8] sm:$0xff] %v2288_v57  ;;  %v2289_v3 = vmul.f32 0.16666667, %v1777_v58  ;;  %v1267_v5 = vmax.f32 %v755_v60, 0.0 }
  0xae   : > { %v2290_v4 = vmul.f32 0.16666667, %v1778_v59  ;;  %v760_v6 = vadd.f32 3.0, %v248_v49  ;;  %v1268_v7 = vmax.f32 %v756_v61, 0.0  ;;  %v1269_v8 = vmax.f32 %v757_v62, 0.0  ;;  %v251_v15 = vld [vmem:[%s3615_s3 + $0x300] sm:$0xff] }
  0xaf   : > { %v1270_v9 = vmax.f32 %v758_v63, 0.0  ;;  %v1271_v10 = vmax.f32 %v759_v0, 0.0  ;;  %2801 = vst [vmem:[%s3637_s16 + $0x2b0] sm:$0xff] %v2289_v3  ;;  %v1779_v11 = vmin.f32 %v1267_v5, 6.0  ;;  %v761_v13 = vadd.f32 3.0, %v249_v1  ;;  %v252_v16 = vld [vmem:[%s3615_s3 + $0x308] sm:$0xff] }
  0xb0   : > { %2802 = vst [vmem:[%s3637_s16 + $0x2b8] sm:$0xff] %v2290_v4  ;;  %v1272_v12 = vmax.f32 %v760_v6, 0.0  ;;  %v762_v14 = vadd.f32 3.0, %v250_v2  ;;  %v253_v17 = vld [vmem:[%s3615_s3 + $0x310] sm:$0xff]  ;;  %v1780_v18 = vmin.f32 %v1268_v7, 6.0  ;;  %v1781_v19 = vmin.f32 %v1269_v8, 6.0 }
  0xb1   : > { %v1782_v20 = vmin.f32 %v1270_v9, 6.0  ;;  %v1783_v21 = vmin.f32 %v1271_v10, 6.0  ;;  %v254_v22 = vld [vmem:[%s3615_s3 + $0x318] sm:$0xff]  ;;  %v255_v23 = vld [vmem:[%s3615_s3 + $0x320] sm:$0xff]  ;;  %v2291_v24 = vmul.f32 0.16666667, %v1779_v11 }
  0xb2   : > { %v1784_v25 = vmin.f32 %v1272_v12, 6.0  ;;  %v1273_v26 = vmax.f32 %v761_v13, 0.0  ;;  %v1274_v27 = vmax.f32 %v762_v14, 0.0  ;;  %v256_v28 = vld [vmem:[%s3615_s3 + $0x328] sm:$0xff]  ;;  %v2292_v29 = vmul.f32 0.16666667, %v1780_v18 }
  0xb3   : > { %v2293_v30 = vmul.f32 0.16666667, %v1781_v19  ;;  %v2294_v31 = vmul.f32 0.16666667, %v1782_v20  ;;  %2803 = vst [vmem:[%s3637_s16 + $0x2c0] sm:$0xff] %v2291_v24  ;;  %v763_v36 = vadd.f32 3.0, %v251_v15 }
  0xb4   : > { %v2295_v32 = vmul.f32 0.16666667, %v1783_v21  ;;  %v2296_v33 = vmul.f32 0.16666667, %v1784_v25  ;;  %v1785_v34 = vmin.f32 %v1273_v26, 6.0  ;;  %v1786_v35 = vmin.f32 %v1274_v27, 6.0 }
  0xb5   : > { %2804 = vst [vmem:[%s3637_s16 + $0x2c8] sm:$0xff] %v2292_v29  ;;  %2805 = vst [vmem:[%s3637_s16 + $0x2d0] sm:$0xff] %v2293_v30  ;;  %v764_v37 = vadd.f32 3.0, %v252_v16  ;;  %v765_v38 = vadd.f32 3.0, %v253_v17  ;;  %v766_v39 = vadd.f32 3.0, %v254_v22  ;;  %v257_v40 = vld [vmem:[%s3615_s3 + $0x330] sm:$0xff] }
  0xb6   : > { %2806 = vst [vmem:[%s3637_s16 + $0x2d8] sm:$0xff] %v2294_v31  ;;  %v258_v41 = vld [vmem:[%s3615_s3 + $0x338] sm:$0xff]  ;;  %2807 = vst [vmem:[%s3637_s16 + $0x2e0] sm:$0xff] %v2295_v32  ;;  %v2297_v42 = vmul.f32 0.16666667, %v1785_v34  ;;  %v767_v44 = vadd.f32 3.0, %v255_v23 }
  0xb7   : > { %2808 = vst [vmem:[%s3637_s16 + $0x2e8] sm:$0xff] %v2296_v33  ;;  %v2298_v43 = vmul.f32 0.16666667, %v1786_v35  ;;  %v768_v45 = vadd.f32 3.0, %v256_v28  ;;  %v1275_v46 = vmax.f32 %v763_v36, 0.0  ;;  %v1276_v47 = vmax.f32 %v764_v37, 0.0 }
  0xb8   : > { %v1277_v48 = vmax.f32 %v765_v38, 0.0  ;;  %v1278_v49 = vmax.f32 %v766_v39, 0.0  ;;  %2809 = vst [vmem:[%s3637_s16 + $0x2f0] sm:$0xff] %v2297_v42  ;;  %v1279_v50 = vmax.f32 %v767_v44, 0.0  ;;  %v769_v52 = vadd.f32 3.0, %v257_v40  ;;  %v259_v54 = vld [vmem:[%s3615_s3 + $0x340] sm:$0xff] }
  0xb9   : > { %2810 = vst [vmem:[%s3637_s16 + $0x2f8] sm:$0xff] %v2298_v43  ;;  %v1280_v51 = vmax.f32 %v768_v45, 0.0  ;;  %v770_v53 = vadd.f32 3.0, %v258_v41  ;;  %v260_v55 = vld [vmem:[%s3615_s3 + $0x348] sm:$0xff]  ;;  %v1787_v56 = vmin.f32 %v1275_v46, 6.0  ;;  %v1788_v57 = vmin.f32 %v1276_v47, 6.0 }
  0xba   : > { %v1789_v58 = vmin.f32 %v1277_v48, 6.0  ;;  %v1790_v59 = vmin.f32 %v1278_v49, 6.0  ;;  %v261_v60 = vld [vmem:[%s3615_s3 + $0x350] sm:$0xff]  ;;  %v262_v61 = vld [vmem:[%s3615_s3 + $0x358] sm:$0xff]  ;;  %v1791_v62 = vmin.f32 %v1279_v50, 6.0  ;;  %v1281_v0 = vmax.f32 %v769_v52, 0.0 }
  0xbb   : > { %v1792_v63 = vmin.f32 %v1280_v51, 6.0  ;;  %v1282_v1 = vmax.f32 %v770_v53, 0.0  ;;  %v263_v2 = vld [vmem:[%s3615_s3 + $0x360] sm:$0xff]  ;;  %v264_v3 = vld [vmem:[%s3615_s3 + $0x368] sm:$0xff]  ;;  %v2299_v4 = vmul.f32 0.16666667, %v1787_v56 }
  0xbc   : > { %v2300_v5 = vmul.f32 0.16666667, %v1788_v57  ;;  %v2301_v6 = vmul.f32 0.16666667, %v1789_v58  ;;  %v2302_v7 = vmul.f32 0.16666667, %v1790_v59 }
  0xbd   : > { %v2303_v8 = vmul.f32 0.16666667, %v1791_v62  ;;  %v2304_v9 = vmul.f32 0.16666667, %v1792_v63  ;;  %2811 = vst [vmem:[%s3637_s16 + $0x300] sm:$0xff] %v2299_v4  ;;  %v1793_v10 = vmin.f32 %v1281_v0, 6.0 }
  0xbe   : > { %2812 = vst [vmem:[%s3637_s16 + $0x308] sm:$0xff] %v2300_v5  ;;  %2813 = vst [vmem:[%s3637_s16 + $0x310] sm:$0xff] %v2301_v6  ;;  %v1794_v11 = vmin.f32 %v1282_v1, 6.0  ;;  %v771_v12 = vadd.f32 3.0, %v259_v54  ;;  %v772_v13 = vadd.f32 3.0, %v260_v55  ;;  %v773_v14 = vadd.f32 3.0, %v261_v60 }
  0xbf   : > { %2814 = vst [vmem:[%s3637_s16 + $0x318] sm:$0xff] %v2302_v7  ;;  %2815 = vst [vmem:[%s3637_s16 + $0x320] sm:$0xff] %v2303_v8  ;;  %v774_v15 = vadd.f32 3.0, %v262_v61  ;;  %v775_v16 = vadd.f32 3.0, %v263_v2  ;;  %v776_v17 = vadd.f32 3.0, %v264_v3  ;;  %v265_v18 = vld [vmem:[%s3615_s3 + $0x370] sm:$0xff] }
  0xc0   : > { %2816 = vst [vmem:[%s3637_s16 + $0x328] sm:$0xff] %v2304_v9  ;;  %v266_v19 = vld [vmem:[%s3615_s3 + $0x378] sm:$0xff]  ;;  %v2305_v20 = vmul.f32 0.16666667, %v1793_v10  ;;  %v2306_v21 = vmul.f32 0.16666667, %v1794_v11 }
  0xc1   : > { %v1283_v22 = vmax.f32 %v771_v12, 0.0  ;;  %v1284_v23 = vmax.f32 %v772_v13, 0.0  ;;  %v1285_v24 = vmax.f32 %v773_v14, 0.0  ;;  %v1286_v25 = vmax.f32 %v774_v15, 0.0  ;;  %v267_v28 = vld [vmem:[%s3615_s3 + $0x380] sm:$0xff]  ;;  %v268_v33 = vld [vmem:[%s3615_s3 + $0x388] sm:$0xff] }
  0xc2   : > { %v1287_v26 = vmax.f32 %v775_v16, 0.0  ;;  %v1288_v27 = vmax.f32 %v776_v17, 0.0  ;;  %2817 = vst [vmem:[%s3637_s16 + $0x330] sm:$0xff] %v2305_v20  ;;  %2818 = vst [vmem:[%s3637_s16 + $0x338] sm:$0xff] %v2306_v21  ;;  %v777_v31 = vadd.f32 3.0, %v265_v18  ;;  %v778_v32 = vadd.f32 3.0, %v266_v19 }
  0xc3   : > { %v1795_v29 = vmin.f32 %v1283_v22, 6.0  ;;  %v1796_v30 = vmin.f32 %v1284_v23, 6.0  ;;  %v269_v34 = vld [vmem:[%s3615_s3 + $0x390] sm:$0xff]  ;;  %v270_v35 = vld [vmem:[%s3615_s3 + $0x398] sm:$0xff]  ;;  %v1797_v36 = vmin.f32 %v1285_v24, 6.0  ;;  %v1798_v37 = vmin.f32 %v1286_v25, 6.0 }
  0xc4   : > { %v1799_v38 = vmin.f32 %v1287_v26, 6.0  ;;  %v1800_v39 = vmin.f32 %v1288_v27, 6.0  ;;  %v271_v40 = vld [vmem:[%s3615_s3 + $0x3a0] sm:$0xff]  ;;  %v272_v41 = vld [vmem:[%s3615_s3 + $0x3a8] sm:$0xff]  ;;  %v1289_v44 = vmax.f32 %v777_v31, 0.0  ;;  %v1290_v45 = vmax.f32 %v778_v32, 0.0 }
  0xc5   : > { %v2307_v42 = vmul.f32 0.16666667, %v1795_v29  ;;  %v2308_v43 = vmul.f32 0.16666667, %v1796_v30  ;;  %v2309_v46 = vmul.f32 0.16666667, %v1797_v36 }
  0xc6   : > { %v2310_v47 = vmul.f32 0.16666667, %v1798_v37  ;;  %v2311_v48 = vmul.f32 0.16666667, %v1799_v38  ;;  %v2312_v49 = vmul.f32 0.16666667, %v1800_v39 }
  0xc7   : > { %2819 = vst [vmem:[%s3637_s16 + $0x340] sm:$0xff] %v2307_v42  ;;  %2820 = vst [vmem:[%s3637_s16 + $0x348] sm:$0xff] %v2308_v43  ;;  %v1801_v50 = vmin.f32 %v1289_v44, 6.0  ;;  %v1802_v51 = vmin.f32 %v1290_v45, 6.0  ;;  %v779_v52 = vadd.f32 3.0, %v267_v28  ;;  %v780_v53 = vadd.f32 3.0, %v268_v33 }
  0xc8   : > { %2821 = vst [vmem:[%s3637_s16 + $0x350] sm:$0xff] %v2309_v46  ;;  %2822 = vst [vmem:[%s3637_s16 + $0x358] sm:$0xff] %v2310_v47  ;;  %v781_v54 = vadd.f32 3.0, %v269_v34  ;;  %v782_v55 = vadd.f32 3.0, %v270_v35  ;;  %v783_v56 = vadd.f32 3.0, %v271_v40  ;;  %v273_v57 = vld [vmem:[%s3615_s3 + $0x3b0] sm:$0xff] }
  0xc9   : > { %2823 = vst [vmem:[%s3637_s16 + $0x360] sm:$0xff] %v2311_v48  ;;  %v274_v58 = vld [vmem:[%s3615_s3 + $0x3b8] sm:$0xff]  ;;  %2824 = vst [vmem:[%s3637_s16 + $0x368] sm:$0xff] %v2312_v49  ;;  %v2313_v59 = vmul.f32 0.16666667, %v1801_v50  ;;  %v1291_v61 = vmax.f32 %v779_v52, 0.0 }
  0xca   : > { %v2314_v60 = vmul.f32 0.16666667, %v1802_v51  ;;  %v784_v62 = vadd.f32 3.0, %v272_v41  ;;  %v1292_v63 = vmax.f32 %v780_v53, 0.0  ;;  %v1293_v0 = vmax.f32 %v781_v54, 0.0  ;;  %v275_v7 = vld [vmem:[%s3615_s3 + $0x3c0] sm:$0xff] }
  0xcb   : > { %v1294_v1 = vmax.f32 %v782_v55, 0.0  ;;  %v1295_v2 = vmax.f32 %v783_v56, 0.0  ;;  %2825 = vst [vmem:[%s3637_s16 + $0x370] sm:$0xff] %v2313_v59  ;;  %v1803_v3 = vmin.f32 %v1291_v61, 6.0  ;;  %v785_v5 = vadd.f32 3.0, %v273_v57  ;;  %v276_v8 = vld [vmem:[%s3615_s3 + $0x3c8] sm:$0xff] }
  0xcc   : > { %2826 = vst [vmem:[%s3637_s16 + $0x378] sm:$0xff] %v2314_v60  ;;  %v1296_v4 = vmax.f32 %v784_v62, 0.0  ;;  %v786_v6 = vadd.f32 3.0, %v274_v58  ;;  %v277_v9 = vld [vmem:[%s3615_s3 + $0x3d0] sm:$0xff]  ;;  %v1804_v10 = vmin.f32 %v1292_v63, 6.0  ;;  %v1805_v11 = vmin.f32 %v1293_v0, 6.0 }
  0xcd   : > { %v1806_v12 = vmin.f32 %v1294_v1, 6.0  ;;  %v1807_v13 = vmin.f32 %v1295_v2, 6.0  ;;  %v278_v14 = vld [vmem:[%s3615_s3 + $0x3d8] sm:$0xff]  ;;  %v279_v15 = vld [vmem:[%s3615_s3 + $0x3e0] sm:$0xff]  ;;  %v2315_v16 = vmul.f32 0.16666667, %v1803_v3 }
  0xce   : > { %v1808_v17 = vmin.f32 %v1296_v4, 6.0  ;;  %v1297_v18 = vmax.f32 %v785_v5, 0.0  ;;  %v1298_v19 = vmax.f32 %v786_v6, 0.0  ;;  %v280_v20 = vld [vmem:[%s3615_s3 + $0x3e8] sm:$0xff]  ;;  %v2316_v21 = vmul.f32 0.16666667, %v1804_v10 }
  0xcf   : > { %v2317_v22 = vmul.f32 0.16666667, %v1805_v11  ;;  %v2318_v23 = vmul.f32 0.16666667, %v1806_v12  ;;  %2827 = vst [vmem:[%s3637_s16 + $0x380] sm:$0xff] %v2315_v16  ;;  %v787_v28 = vadd.f32 3.0, %v275_v7 }
  0xd0   : > { %v2319_v24 = vmul.f32 0.16666667, %v1807_v13  ;;  %v2320_v25 = vmul.f32 0.16666667, %v1808_v17  ;;  %v1809_v26 = vmin.f32 %v1297_v18, 6.0  ;;  %v1810_v27 = vmin.f32 %v1298_v19, 6.0 }
  0xd1   : > { %2828 = vst [vmem:[%s3637_s16 + $0x388] sm:$0xff] %v2316_v21  ;;  %2829 = vst [vmem:[%s3637_s16 + $0x390] sm:$0xff] %v2317_v22  ;;  %v788_v29 = vadd.f32 3.0, %v276_v8  ;;  %v789_v30 = vadd.f32 3.0, %v277_v9  ;;  %v790_v31 = vadd.f32 3.0, %v278_v14  ;;  %v281_v32 = vld [vmem:[%s3615_s3 + $0x3f0] sm:$0xff] }
  0xd2   : > { %2830 = vst [vmem:[%s3637_s16 + $0x398] sm:$0xff] %v2318_v23  ;;  %v282_v33 = vld [vmem:[%s3615_s3 + $0x3f8] sm:$0xff]  ;;  %2831 = vst [vmem:[%s3637_s16 + $0x3a0] sm:$0xff] %v2319_v24  ;;  %v2321_v34 = vmul.f32 0.16666667, %v1809_v26  ;;  %v791_v36 = vadd.f32 3.0, %v279_v15 }
  0xd3   : > { %2832 = vst [vmem:[%s3637_s16 + $0x3a8] sm:$0xff] %v2320_v25  ;;  %v2322_v35 = vmul.f32 0.16666667, %v1810_v27  ;;  %v792_v37 = vadd.f32 3.0, %v280_v20  ;;  %v1299_v38 = vmax.f32 %v787_v28, 0.0  ;;  %v1300_v39 = vmax.f32 %v788_v29, 0.0 }
  0xd4   : > { %v1301_v40 = vmax.f32 %v789_v30, 0.0  ;;  %v1302_v41 = vmax.f32 %v790_v31, 0.0  ;;  %2833 = vst [vmem:[%s3637_s16 + $0x3b0] sm:$0xff] %v2321_v34  ;;  %v1303_v42 = vmax.f32 %v791_v36, 0.0  ;;  %v793_v44 = vadd.f32 3.0, %v281_v32  ;;  %v283_v46 = vld [vmem:[%s3615_s3 + $0x400] sm:$0xff] }
  0xd5   : > { %2834 = vst [vmem:[%s3637_s16 + $0x3b8] sm:$0xff] %v2322_v35  ;;  %v1304_v43 = vmax.f32 %v792_v37, 0.0  ;;  %v794_v45 = vadd.f32 3.0, %v282_v33  ;;  %v284_v47 = vld [vmem:[%s3615_s3 + $0x408] sm:$0xff]  ;;  %v1811_v48 = vmin.f32 %v1299_v38, 6.0  ;;  %v1812_v49 = vmin.f32 %v1300_v39, 6.0 }
  0xd6   : > { %v1813_v50 = vmin.f32 %v1301_v40, 6.0  ;;  %v1814_v51 = vmin.f32 %v1302_v41, 6.0  ;;  %v285_v52 = vld [vmem:[%s3615_s3 + $0x410] sm:$0xff]  ;;  %v286_v53 = vld [vmem:[%s3615_s3 + $0x418] sm:$0xff]  ;;  %v1815_v54 = vmin.f32 %v1303_v42, 6.0  ;;  %v1305_v56 = vmax.f32 %v793_v44, 0.0 }
  0xd7   : > { %v1816_v55 = vmin.f32 %v1304_v43, 6.0  ;;  %v1306_v57 = vmax.f32 %v794_v45, 0.0  ;;  %v287_v58 = vld [vmem:[%s3615_s3 + $0x420] sm:$0xff]  ;;  %v288_v59 = vld [vmem:[%s3615_s3 + $0x428] sm:$0xff]  ;;  %v2323_v60 = vmul.f32 0.16666667, %v1811_v48 }
  0xd8   : > { %v2324_v61 = vmul.f32 0.16666667, %v1812_v49  ;;  %v2325_v62 = vmul.f32 0.16666667, %v1813_v50  ;;  %v2326_v63 = vmul.f32 0.16666667, %v1814_v51 }
  0xd9   : > { %v2327_v0 = vmul.f32 0.16666667, %v1815_v54  ;;  %v2328_v1 = vmul.f32 0.16666667, %v1816_v55  ;;  %2835 = vst [vmem:[%s3637_s16 + $0x3c0] sm:$0xff] %v2323_v60  ;;  %v1817_v2 = vmin.f32 %v1305_v56, 6.0 }
  0xda   : > { %2836 = vst [vmem:[%s3637_s16 + $0x3c8] sm:$0xff] %v2324_v61  ;;  %2837 = vst [vmem:[%s3637_s16 + $0x3d0] sm:$0xff] %v2325_v62  ;;  %v1818_v3 = vmin.f32 %v1306_v57, 6.0  ;;  %v795_v4 = vadd.f32 3.0, %v283_v46  ;;  %v796_v5 = vadd.f32 3.0, %v284_v47  ;;  %v797_v6 = vadd.f32 3.0, %v285_v52 }
  0xdb   : > { %2838 = vst [vmem:[%s3637_s16 + $0x3d8] sm:$0xff] %v2326_v63  ;;  %2839 = vst [vmem:[%s3637_s16 + $0x3e0] sm:$0xff] %v2327_v0  ;;  %v798_v7 = vadd.f32 3.0, %v286_v53  ;;  %v799_v8 = vadd.f32 3.0, %v287_v58  ;;  %v800_v9 = vadd.f32 3.0, %v288_v59  ;;  %v289_v10 = vld [vmem:[%s3615_s3 + $0x430] sm:$0xff] }
  0xdc   : > { %2840 = vst [vmem:[%s3637_s16 + $0x3e8] sm:$0xff] %v2328_v1  ;;  %v290_v11 = vld [vmem:[%s3615_s3 + $0x438] sm:$0xff]  ;;  %v2329_v12 = vmul.f32 0.16666667, %v1817_v2  ;;  %v2330_v13 = vmul.f32 0.16666667, %v1818_v3 }
  0xdd   : > { %v1307_v14 = vmax.f32 %v795_v4, 0.0  ;;  %v1308_v15 = vmax.f32 %v796_v5, 0.0  ;;  %v1309_v16 = vmax.f32 %v797_v6, 0.0  ;;  %v1310_v17 = vmax.f32 %v798_v7, 0.0  ;;  %v291_v20 = vld [vmem:[%s3615_s3 + $0x440] sm:$0xff]  ;;  %v292_v25 = vld [vmem:[%s3615_s3 + $0x448] sm:$0xff] }
  0xde   : > { %v1311_v18 = vmax.f32 %v799_v8, 0.0  ;;  %v1312_v19 = vmax.f32 %v800_v9, 0.0  ;;  %2841 = vst [vmem:[%s3637_s16 + $0x3f0] sm:$0xff] %v2329_v12  ;;  %2842 = vst [vmem:[%s3637_s16 + $0x3f8] sm:$0xff] %v2330_v13  ;;  %v801_v23 = vadd.f32 3.0, %v289_v10  ;;  %v802_v24 = vadd.f32 3.0, %v290_v11 }
  0xdf   : > { %v1819_v21 = vmin.f32 %v1307_v14, 6.0  ;;  %v1820_v22 = vmin.f32 %v1308_v15, 6.0  ;;  %v293_v26 = vld [vmem:[%s3615_s3 + $0x450] sm:$0xff]  ;;  %v294_v27 = vld [vmem:[%s3615_s3 + $0x458] sm:$0xff]  ;;  %v1821_v28 = vmin.f32 %v1309_v16, 6.0  ;;  %v1822_v29 = vmin.f32 %v1310_v17, 6.0 }
  0xe0   : > { %v1823_v30 = vmin.f32 %v1311_v18, 6.0  ;;  %v1824_v31 = vmin.f32 %v1312_v19, 6.0  ;;  %v295_v32 = vld [vmem:[%s3615_s3 + $0x460] sm:$0xff]  ;;  %v296_v33 = vld [vmem:[%s3615_s3 + $0x468] sm:$0xff]  ;;  %v1313_v36 = vmax.f32 %v801_v23, 0.0  ;;  %v1314_v37 = vmax.f32 %v802_v24, 0.0 }
  0xe1   : > { %v2331_v34 = vmul.f32 0.16666667, %v1819_v21  ;;  %v2332_v35 = vmul.f32 0.16666667, %v1820_v22  ;;  %v2333_v38 = vmul.f32 0.16666667, %v1821_v28 }
  0xe2   : > { %v2334_v39 = vmul.f32 0.16666667, %v1822_v29  ;;  %v2335_v40 = vmul.f32 0.16666667, %v1823_v30  ;;  %v2336_v41 = vmul.f32 0.16666667, %v1824_v31 }
  0xe3   : > { %2843 = vst [vmem:[%s3637_s16 + $0x400] sm:$0xff] %v2331_v34  ;;  %2844 = vst [vmem:[%s3637_s16 + $0x408] sm:$0xff] %v2332_v35  ;;  %v1825_v42 = vmin.f32 %v1313_v36, 6.0  ;;  %v1826_v43 = vmin.f32 %v1314_v37, 6.0  ;;  %v803_v44 = vadd.f32 3.0, %v291_v20  ;;  %v804_v45 = vadd.f32 3.0, %v292_v25 }
  0xe4   : > { %2845 = vst [vmem:[%s3637_s16 + $0x410] sm:$0xff] %v2333_v38  ;;  %2846 = vst [vmem:[%s3637_s16 + $0x418] sm:$0xff] %v2334_v39  ;;  %v805_v46 = vadd.f32 3.0, %v293_v26  ;;  %v806_v47 = vadd.f32 3.0, %v294_v27  ;;  %v807_v48 = vadd.f32 3.0, %v295_v32  ;;  %v297_v49 = vld [vmem:[%s3615_s3 + $0x470] sm:$0xff] }
  0xe5   : > { %2847 = vst [vmem:[%s3637_s16 + $0x420] sm:$0xff] %v2335_v40  ;;  %v298_v50 = vld [vmem:[%s3615_s3 + $0x478] sm:$0xff]  ;;  %2848 = vst [vmem:[%s3637_s16 + $0x428] sm:$0xff] %v2336_v41  ;;  %v2337_v51 = vmul.f32 0.16666667, %v1825_v42  ;;  %v1315_v53 = vmax.f32 %v803_v44, 0.0 }
  0xe6   : > { %v2338_v52 = vmul.f32 0.16666667, %v1826_v43  ;;  %v808_v54 = vadd.f32 3.0, %v296_v33  ;;  %v1316_v55 = vmax.f32 %v804_v45, 0.0  ;;  %v1317_v56 = vmax.f32 %v805_v46, 0.0  ;;  %v299_v63 = vld [vmem:[%s3615_s3 + $0x480] sm:$0xff] }
  0xe7   : > { %v1318_v57 = vmax.f32 %v806_v47, 0.0  ;;  %v1319_v58 = vmax.f32 %v807_v48, 0.0  ;;  %2849 = vst [vmem:[%s3637_s16 + $0x430] sm:$0xff] %v2337_v51  ;;  %v1827_v59 = vmin.f32 %v1315_v53, 6.0  ;;  %v809_v61 = vadd.f32 3.0, %v297_v49  ;;  %v300_v0 = vld [vmem:[%s3615_s3 + $0x488] sm:$0xff] }
  0xe8   : > { %2850 = vst [vmem:[%s3637_s16 + $0x438] sm:$0xff] %v2338_v52  ;;  %v1320_v60 = vmax.f32 %v808_v54, 0.0  ;;  %v810_v62 = vadd.f32 3.0, %v298_v50  ;;  %v301_v1 = vld [vmem:[%s3615_s3 + $0x490] sm:$0xff]  ;;  %v1828_v2 = vmin.f32 %v1316_v55, 6.0  ;;  %v1829_v3 = vmin.f32 %v1317_v56, 6.0 }
  0xe9   : > { %v1830_v4 = vmin.f32 %v1318_v57, 6.0  ;;  %v1831_v5 = vmin.f32 %v1319_v58, 6.0  ;;  %v302_v6 = vld [vmem:[%s3615_s3 + $0x498] sm:$0xff]  ;;  %v303_v7 = vld [vmem:[%s3615_s3 + $0x4a0] sm:$0xff]  ;;  %v2339_v8 = vmul.f32 0.16666667, %v1827_v59 }
  0xea   : > { %v1832_v9 = vmin.f32 %v1320_v60, 6.0  ;;  %v1321_v10 = vmax.f32 %v809_v61, 0.0  ;;  %v1322_v11 = vmax.f32 %v810_v62, 0.0  ;;  %v304_v12 = vld [vmem:[%s3615_s3 + $0x4a8] sm:$0xff]  ;;  %v2340_v13 = vmul.f32 0.16666667, %v1828_v2 }
  0xeb   : > { %v2341_v14 = vmul.f32 0.16666667, %v1829_v3  ;;  %v2342_v15 = vmul.f32 0.16666667, %v1830_v4  ;;  %2851 = vst [vmem:[%s3637_s16 + $0x440] sm:$0xff] %v2339_v8  ;;  %v811_v20 = vadd.f32 3.0, %v299_v63 }
  0xec   : > { %v2343_v16 = vmul.f32 0.16666667, %v1831_v5  ;;  %v2344_v17 = vmul.f32 0.16666667, %v1832_v9  ;;  %v1833_v18 = vmin.f32 %v1321_v10, 6.0  ;;  %v1834_v19 = vmin.f32 %v1322_v11, 6.0 }
  0xed   : > { %2852 = vst [vmem:[%s3637_s16 + $0x448] sm:$0xff] %v2340_v13  ;;  %2853 = vst [vmem:[%s3637_s16 + $0x450] sm:$0xff] %v2341_v14  ;;  %v812_v21 = vadd.f32 3.0, %v300_v0  ;;  %v813_v22 = vadd.f32 3.0, %v301_v1  ;;  %v814_v23 = vadd.f32 3.0, %v302_v6  ;;  %v305_v24 = vld [vmem:[%s3615_s3 + $0x4b0] sm:$0xff] }
  0xee   : > { %2854 = vst [vmem:[%s3637_s16 + $0x458] sm:$0xff] %v2342_v15  ;;  %v306_v25 = vld [vmem:[%s3615_s3 + $0x4b8] sm:$0xff]  ;;  %2855 = vst [vmem:[%s3637_s16 + $0x460] sm:$0xff] %v2343_v16  ;;  %v2345_v26 = vmul.f32 0.16666667, %v1833_v18  ;;  %v815_v28 = vadd.f32 3.0, %v303_v7 }
  0xef   : > { %2856 = vst [vmem:[%s3637_s16 + $0x468] sm:$0xff] %v2344_v17  ;;  %v2346_v27 = vmul.f32 0.16666667, %v1834_v19  ;;  %v816_v29 = vadd.f32 3.0, %v304_v12  ;;  %v1323_v30 = vmax.f32 %v811_v20, 0.0  ;;  %v1324_v31 = vmax.f32 %v812_v21, 0.0 }
  0xf0   : > { %v1325_v32 = vmax.f32 %v813_v22, 0.0  ;;  %v1326_v33 = vmax.f32 %v814_v23, 0.0  ;;  %2857 = vst [vmem:[%s3637_s16 + $0x470] sm:$0xff] %v2345_v26  ;;  %v1327_v34 = vmax.f32 %v815_v28, 0.0  ;;  %v817_v36 = vadd.f32 3.0, %v305_v24  ;;  %v307_v38 = vld [vmem:[%s3615_s3 + $0x4c0] sm:$0xff] }
  0xf1   : > { %2858 = vst [vmem:[%s3637_s16 + $0x478] sm:$0xff] %v2346_v27  ;;  %v1328_v35 = vmax.f32 %v816_v29, 0.0  ;;  %v818_v37 = vadd.f32 3.0, %v306_v25  ;;  %v308_v39 = vld [vmem:[%s3615_s3 + $0x4c8] sm:$0xff]  ;;  %v1835_v40 = vmin.f32 %v1323_v30, 6.0  ;;  %v1836_v41 = vmin.f32 %v1324_v31, 6.0 }
  0xf2   : > { %v1837_v42 = vmin.f32 %v1325_v32, 6.0  ;;  %v1838_v43 = vmin.f32 %v1326_v33, 6.0  ;;  %v309_v44 = vld [vmem:[%s3615_s3 + $0x4d0] sm:$0xff]  ;;  %v310_v45 = vld [vmem:[%s3615_s3 + $0x4d8] sm:$0xff]  ;;  %v1839_v46 = vmin.f32 %v1327_v34, 6.0  ;;  %v1329_v48 = vmax.f32 %v817_v36, 0.0 }
  0xf3   : > { %v1840_v47 = vmin.f32 %v1328_v35, 6.0  ;;  %v1330_v49 = vmax.f32 %v818_v37, 0.0  ;;  %v311_v50 = vld [vmem:[%s3615_s3 + $0x4e0] sm:$0xff]  ;;  %v312_v51 = vld [vmem:[%s3615_s3 + $0x4e8] sm:$0xff]  ;;  %v2347_v52 = vmul.f32 0.16666667, %v1835_v40 }
  0xf4   : > { %v2348_v53 = vmul.f32 0.16666667, %v1836_v41  ;;  %v2349_v54 = vmul.f32 0.16666667, %v1837_v42  ;;  %v2350_v55 = vmul.f32 0.16666667, %v1838_v43 }
  0xf5   : > { %v2351_v56 = vmul.f32 0.16666667, %v1839_v46  ;;  %v2352_v57 = vmul.f32 0.16666667, %v1840_v47  ;;  %2859 = vst [vmem:[%s3637_s16 + $0x480] sm:$0xff] %v2347_v52  ;;  %v1841_v58 = vmin.f32 %v1329_v48, 6.0 }
  0xf6   : > { %2860 = vst [vmem:[%s3637_s16 + $0x488] sm:$0xff] %v2348_v53  ;;  %2861 = vst [vmem:[%s3637_s16 + $0x490] sm:$0xff] %v2349_v54  ;;  %v1842_v59 = vmin.f32 %v1330_v49, 6.0  ;;  %v819_v60 = vadd.f32 3.0, %v307_v38  ;;  %v820_v61 = vadd.f32 3.0, %v308_v39  ;;  %v821_v62 = vadd.f32 3.0, %v309_v44 }
  0xf7   : > { %2862 = vst [vmem:[%s3637_s16 + $0x498] sm:$0xff] %v2350_v55  ;;  %2863 = vst [vmem:[%s3637_s16 + $0x4a0] sm:$0xff] %v2351_v56  ;;  %v822_v63 = vadd.f32 3.0, %v310_v45  ;;  %v823_v0 = vadd.f32 3.0, %v311_v50  ;;  %v824_v1 = vadd.f32 3.0, %v312_v51  ;;  %v313_v2 = vld [vmem:[%s3615_s3 + $0x4f0] sm:$0xff] }
  0xf8   : > { %2864 = vst [vmem:[%s3637_s16 + $0x4a8] sm:$0xff] %v2352_v57  ;;  %v314_v3 = vld [vmem:[%s3615_s3 + $0x4f8] sm:$0xff]  ;;  %v2353_v4 = vmul.f32 0.16666667, %v1841_v58  ;;  %v2354_v5 = vmul.f32 0.16666667, %v1842_v59 }
  0xf9   : > { %v1331_v6 = vmax.f32 %v819_v60, 0.0  ;;  %v1332_v7 = vmax.f32 %v820_v61, 0.0  ;;  %v1333_v8 = vmax.f32 %v821_v62, 0.0  ;;  %v1334_v9 = vmax.f32 %v822_v63, 0.0  ;;  %v315_v12 = vld [vmem:[%s3615_s3 + $0x500] sm:$0xff]  ;;  %v316_v17 = vld [vmem:[%s3615_s3 + $0x508] sm:$0xff] }
  0xfa   : > { %v1335_v10 = vmax.f32 %v823_v0, 0.0  ;;  %v1336_v11 = vmax.f32 %v824_v1, 0.0  ;;  %2865 = vst [vmem:[%s3637_s16 + $0x4b0] sm:$0xff] %v2353_v4  ;;  %2866 = vst [vmem:[%s3637_s16 + $0x4b8] sm:$0xff] %v2354_v5  ;;  %v825_v15 = vadd.f32 3.0, %v313_v2  ;;  %v826_v16 = vadd.f32 3.0, %v314_v3 }
  0xfb   : > { %v1843_v13 = vmin.f32 %v1331_v6, 6.0  ;;  %v1844_v14 = vmin.f32 %v1332_v7, 6.0  ;;  %v317_v18 = vld [vmem:[%s3615_s3 + $0x510] sm:$0xff]  ;;  %v318_v19 = vld [vmem:[%s3615_s3 + $0x518] sm:$0xff]  ;;  %v1845_v20 = vmin.f32 %v1333_v8, 6.0  ;;  %v1846_v21 = vmin.f32 %v1334_v9, 6.0 }
  0xfc   : > { %v1847_v22 = vmin.f32 %v1335_v10, 6.0  ;;  %v1848_v23 = vmin.f32 %v1336_v11, 6.0  ;;  %v319_v24 = vld [vmem:[%s3615_s3 + $0x520] sm:$0xff]  ;;  %v320_v25 = vld [vmem:[%s3615_s3 + $0x528] sm:$0xff]  ;;  %v1337_v28 = vmax.f32 %v825_v15, 0.0  ;;  %v1338_v29 = vmax.f32 %v826_v16, 0.0 }
  0xfd   : > { %v2355_v26 = vmul.f32 0.16666667, %v1843_v13  ;;  %v2356_v27 = vmul.f32 0.16666667, %v1844_v14  ;;  %v2357_v30 = vmul.f32 0.16666667, %v1845_v20 }
  0xfe   : > { %v2358_v31 = vmul.f32 0.16666667, %v1846_v21  ;;  %v2359_v32 = vmul.f32 0.16666667, %v1847_v22  ;;  %v2360_v33 = vmul.f32 0.16666667, %v1848_v23 }
  0xff   : > { %2867 = vst [vmem:[%s3637_s16 + $0x4c0] sm:$0xff] %v2355_v26  ;;  %2868 = vst [vmem:[%s3637_s16 + $0x4c8] sm:$0xff] %v2356_v27  ;;  %v1849_v34 = vmin.f32 %v1337_v28, 6.0  ;;  %v1850_v35 = vmin.f32 %v1338_v29, 6.0  ;;  %v827_v36 = vadd.f32 3.0, %v315_v12  ;;  %v828_v37 = vadd.f32 3.0, %v316_v17 }
 0x100   : > { %2869 = vst [vmem:[%s3637_s16 + $0x4d0] sm:$0xff] %v2357_v30  ;;  %2870 = vst [vmem:[%s3637_s16 + $0x4d8] sm:$0xff] %v2358_v31  ;;  %v829_v38 = vadd.f32 3.0, %v317_v18  ;;  %v830_v39 = vadd.f32 3.0, %v318_v19  ;;  %v831_v40 = vadd.f32 3.0, %v319_v24  ;;  %v321_v41 = vld [vmem:[%s3615_s3 + $0x530] sm:$0xff] }
 0x101   : > { %2871 = vst [vmem:[%s3637_s16 + $0x4e0] sm:$0xff] %v2359_v32  ;;  %v322_v42 = vld [vmem:[%s3615_s3 + $0x538] sm:$0xff]  ;;  %2872 = vst [vmem:[%s3637_s16 + $0x4e8] sm:$0xff] %v2360_v33  ;;  %v2361_v43 = vmul.f32 0.16666667, %v1849_v34  ;;  %v1339_v45 = vmax.f32 %v827_v36, 0.0 }
 0x102   : > { %v2362_v44 = vmul.f32 0.16666667, %v1850_v35  ;;  %v832_v46 = vadd.f32 3.0, %v320_v25  ;;  %v1340_v47 = vmax.f32 %v828_v37, 0.0  ;;  %v1341_v48 = vmax.f32 %v829_v38, 0.0  ;;  %v323_v55 = vld [vmem:[%s3615_s3 + $0x540] sm:$0xff] }
 0x103   : > { %v1342_v49 = vmax.f32 %v830_v39, 0.0  ;;  %v1343_v50 = vmax.f32 %v831_v40, 0.0  ;;  %2873 = vst [vmem:[%s3637_s16 + $0x4f0] sm:$0xff] %v2361_v43  ;;  %v1851_v51 = vmin.f32 %v1339_v45, 6.0  ;;  %v833_v53 = vadd.f32 3.0, %v321_v41  ;;  %v324_v56 = vld [vmem:[%s3615_s3 + $0x548] sm:$0xff] }
 0x104   : > { %2874 = vst [vmem:[%s3637_s16 + $0x4f8] sm:$0xff] %v2362_v44  ;;  %v1344_v52 = vmax.f32 %v832_v46, 0.0  ;;  %v834_v54 = vadd.f32 3.0, %v322_v42  ;;  %v325_v57 = vld [vmem:[%s3615_s3 + $0x550] sm:$0xff]  ;;  %v1852_v58 = vmin.f32 %v1340_v47, 6.0  ;;  %v1853_v59 = vmin.f32 %v1341_v48, 6.0 }
 0x105   : > { %v1854_v60 = vmin.f32 %v1342_v49, 6.0  ;;  %v1855_v61 = vmin.f32 %v1343_v50, 6.0  ;;  %v326_v62 = vld [vmem:[%s3615_s3 + $0x558] sm:$0xff]  ;;  %v327_v63 = vld [vmem:[%s3615_s3 + $0x560] sm:$0xff]  ;;  %v2363_v0 = vmul.f32 0.16666667, %v1851_v51 }
 0x106   : > { %v1856_v1 = vmin.f32 %v1344_v52, 6.0  ;;  %v1345_v2 = vmax.f32 %v833_v53, 0.0  ;;  %v1346_v3 = vmax.f32 %v834_v54, 0.0  ;;  %v328_v4 = vld [vmem:[%s3615_s3 + $0x568] sm:$0xff]  ;;  %v2364_v5 = vmul.f32 0.16666667, %v1852_v58 }
 0x107   : > { %v2365_v6 = vmul.f32 0.16666667, %v1853_v59  ;;  %v2366_v7 = vmul.f32 0.16666667, %v1854_v60  ;;  %2875 = vst [vmem:[%s3637_s16 + $0x500] sm:$0xff] %v2363_v0  ;;  %v835_v12 = vadd.f32 3.0, %v323_v55 }
 0x108   : > { %v2367_v8 = vmul.f32 0.16666667, %v1855_v61  ;;  %v2368_v9 = vmul.f32 0.16666667, %v1856_v1  ;;  %v1857_v10 = vmin.f32 %v1345_v2, 6.0  ;;  %v1858_v11 = vmin.f32 %v1346_v3, 6.0 }
 0x109   : > { %2876 = vst [vmem:[%s3637_s16 + $0x508] sm:$0xff] %v2364_v5  ;;  %2877 = vst [vmem:[%s3637_s16 + $0x510] sm:$0xff] %v2365_v6  ;;  %v836_v13 = vadd.f32 3.0, %v324_v56  ;;  %v837_v14 = vadd.f32 3.0, %v325_v57  ;;  %v838_v15 = vadd.f32 3.0, %v326_v62  ;;  %v329_v16 = vld [vmem:[%s3615_s3 + $0x570] sm:$0xff] }
 0x10a   : > { %2878 = vst [vmem:[%s3637_s16 + $0x518] sm:$0xff] %v2366_v7  ;;  %v330_v17 = vld [vmem:[%s3615_s3 + $0x578] sm:$0xff]  ;;  %2879 = vst [vmem:[%s3637_s16 + $0x520] sm:$0xff] %v2367_v8  ;;  %v2369_v18 = vmul.f32 0.16666667, %v1857_v10  ;;  %v839_v20 = vadd.f32 3.0, %v327_v63 }
 0x10b   : > { %2880 = vst [vmem:[%s3637_s16 + $0x528] sm:$0xff] %v2368_v9  ;;  %v2370_v19 = vmul.f32 0.16666667, %v1858_v11  ;;  %v840_v21 = vadd.f32 3.0, %v328_v4  ;;  %v1347_v22 = vmax.f32 %v835_v12, 0.0  ;;  %v1348_v23 = vmax.f32 %v836_v13, 0.0 }
 0x10c   : > { %v1349_v24 = vmax.f32 %v837_v14, 0.0  ;;  %v1350_v25 = vmax.f32 %v838_v15, 0.0  ;;  %2881 = vst [vmem:[%s3637_s16 + $0x530] sm:$0xff] %v2369_v18  ;;  %v1351_v26 = vmax.f32 %v839_v20, 0.0  ;;  %v841_v28 = vadd.f32 3.0, %v329_v16  ;;  %v331_v30 = vld [vmem:[%s3615_s3 + $0x580] sm:$0xff] }
 0x10d   : > { %2882 = vst [vmem:[%s3637_s16 + $0x538] sm:$0xff] %v2370_v19  ;;  %v1352_v27 = vmax.f32 %v840_v21, 0.0  ;;  %v842_v29 = vadd.f32 3.0, %v330_v17  ;;  %v332_v31 = vld [vmem:[%s3615_s3 + $0x588] sm:$0xff]  ;;  %v1859_v32 = vmin.f32 %v1347_v22, 6.0  ;;  %v1860_v33 = vmin.f32 %v1348_v23, 6.0 }
 0x10e   : > { %v1861_v34 = vmin.f32 %v1349_v24, 6.0  ;;  %v1862_v35 = vmin.f32 %v1350_v25, 6.0  ;;  %v333_v36 = vld [vmem:[%s3615_s3 + $0x590] sm:$0xff]  ;;  %v334_v37 = vld [vmem:[%s3615_s3 + $0x598] sm:$0xff]  ;;  %v1863_v38 = vmin.f32 %v1351_v26, 6.0  ;;  %v1353_v40 = vmax.f32 %v841_v28, 0.0 }
 0x10f   : > { %v1864_v39 = vmin.f32 %v1352_v27, 6.0  ;;  %v1354_v41 = vmax.f32 %v842_v29, 0.0  ;;  %v335_v42 = vld [vmem:[%s3615_s3 + $0x5a0] sm:$0xff]  ;;  %v336_v43 = vld [vmem:[%s3615_s3 + $0x5a8] sm:$0xff]  ;;  %v2371_v44 = vmul.f32 0.16666667, %v1859_v32 }
 0x110   : > { %v2372_v45 = vmul.f32 0.16666667, %v1860_v33  ;;  %v2373_v46 = vmul.f32 0.16666667, %v1861_v34  ;;  %v2374_v47 = vmul.f32 0.16666667, %v1862_v35 }
 0x111   : > { %v2375_v48 = vmul.f32 0.16666667, %v1863_v38  ;;  %v2376_v49 = vmul.f32 0.16666667, %v1864_v39  ;;  %2883 = vst [vmem:[%s3637_s16 + $0x540] sm:$0xff] %v2371_v44  ;;  %v1865_v50 = vmin.f32 %v1353_v40, 6.0 }
 0x112   : > { %2884 = vst [vmem:[%s3637_s16 + $0x548] sm:$0xff] %v2372_v45  ;;  %2885 = vst [vmem:[%s3637_s16 + $0x550] sm:$0xff] %v2373_v46  ;;  %v1866_v51 = vmin.f32 %v1354_v41, 6.0  ;;  %v843_v52 = vadd.f32 3.0, %v331_v30  ;;  %v844_v53 = vadd.f32 3.0, %v332_v31  ;;  %v845_v54 = vadd.f32 3.0, %v333_v36 }
 0x113   : > { %2886 = vst [vmem:[%s3637_s16 + $0x558] sm:$0xff] %v2374_v47  ;;  %2887 = vst [vmem:[%s3637_s16 + $0x560] sm:$0xff] %v2375_v48  ;;  %v846_v55 = vadd.f32 3.0, %v334_v37  ;;  %v847_v56 = vadd.f32 3.0, %v335_v42  ;;  %v848_v57 = vadd.f32 3.0, %v336_v43  ;;  %v337_v58 = vld [vmem:[%s3615_s3 + $0x5b0] sm:$0xff] }
 0x114   : > { %2888 = vst [vmem:[%s3637_s16 + $0x568] sm:$0xff] %v2376_v49  ;;  %v338_v59 = vld [vmem:[%s3615_s3 + $0x5b8] sm:$0xff]  ;;  %v2377_v60 = vmul.f32 0.16666667, %v1865_v50  ;;  %v2378_v61 = vmul.f32 0.16666667, %v1866_v51 }
 0x115   : > { %v1355_v62 = vmax.f32 %v843_v52, 0.0  ;;  %v1356_v63 = vmax.f32 %v844_v53, 0.0  ;;  %v1357_v0 = vmax.f32 %v845_v54, 0.0  ;;  %v1358_v1 = vmax.f32 %v846_v55, 0.0  ;;  %v339_v4 = vld [vmem:[%s3615_s3 + $0x5c0] sm:$0xff]  ;;  %v340_v9 = vld [vmem:[%s3615_s3 + $0x5c8] sm:$0xff] }
 0x116   : > { %v1359_v2 = vmax.f32 %v847_v56, 0.0  ;;  %v1360_v3 = vmax.f32 %v848_v57, 0.0  ;;  %2889 = vst [vmem:[%s3637_s16 + $0x570] sm:$0xff] %v2377_v60  ;;  %2890 = vst [vmem:[%s3637_s16 + $0x578] sm:$0xff] %v2378_v61  ;;  %v849_v7 = vadd.f32 3.0, %v337_v58  ;;  %v850_v8 = vadd.f32 3.0, %v338_v59 }
 0x117   : > { %v1867_v5 = vmin.f32 %v1355_v62, 6.0  ;;  %v1868_v6 = vmin.f32 %v1356_v63, 6.0  ;;  %v341_v10 = vld [vmem:[%s3615_s3 + $0x5d0] sm:$0xff]  ;;  %v342_v11 = vld [vmem:[%s3615_s3 + $0x5d8] sm:$0xff]  ;;  %v1869_v12 = vmin.f32 %v1357_v0, 6.0  ;;  %v1870_v13 = vmin.f32 %v1358_v1, 6.0 }
 0x118   : > { %v1871_v14 = vmin.f32 %v1359_v2, 6.0  ;;  %v1872_v15 = vmin.f32 %v1360_v3, 6.0  ;;  %v343_v16 = vld [vmem:[%s3615_s3 + $0x5e0] sm:$0xff]  ;;  %v344_v17 = vld [vmem:[%s3615_s3 + $0x5e8] sm:$0xff]  ;;  %v1361_v20 = vmax.f32 %v849_v7, 0.0  ;;  %v1362_v21 = vmax.f32 %v850_v8, 0.0 }
 0x119   : > { %v2379_v18 = vmul.f32 0.16666667, %v1867_v5  ;;  %v2380_v19 = vmul.f32 0.16666667, %v1868_v6  ;;  %v2381_v22 = vmul.f32 0.16666667, %v1869_v12 }
 0x11a   : > { %v2382_v23 = vmul.f32 0.16666667, %v1870_v13  ;;  %v2383_v24 = vmul.f32 0.16666667, %v1871_v14  ;;  %v2384_v25 = vmul.f32 0.16666667, %v1872_v15 }
 0x11b   : > { %2891 = vst [vmem:[%s3637_s16 + $0x580] sm:$0xff] %v2379_v18  ;;  %2892 = vst [vmem:[%s3637_s16 + $0x588] sm:$0xff] %v2380_v19  ;;  %v1873_v26 = vmin.f32 %v1361_v20, 6.0  ;;  %v1874_v27 = vmin.f32 %v1362_v21, 6.0  ;;  %v851_v28 = vadd.f32 3.0, %v339_v4  ;;  %v852_v29 = vadd.f32 3.0, %v340_v9 }
 0x11c   : > { %2893 = vst [vmem:[%s3637_s16 + $0x590] sm:$0xff] %v2381_v22  ;;  %2894 = vst [vmem:[%s3637_s16 + $0x598] sm:$0xff] %v2382_v23  ;;  %v853_v30 = vadd.f32 3.0, %v341_v10  ;;  %v854_v31 = vadd.f32 3.0, %v342_v11  ;;  %v855_v32 = vadd.f32 3.0, %v343_v16  ;;  %v345_v33 = vld [vmem:[%s3615_s3 + $0x5f0] sm:$0xff] }
 0x11d   : > { %2895 = vst [vmem:[%s3637_s16 + $0x5a0] sm:$0xff] %v2383_v24  ;;  %v346_v34 = vld [vmem:[%s3615_s3 + $0x5f8] sm:$0xff]  ;;  %2896 = vst [vmem:[%s3637_s16 + $0x5a8] sm:$0xff] %v2384_v25  ;;  %v2385_v35 = vmul.f32 0.16666667, %v1873_v26  ;;  %v1363_v37 = vmax.f32 %v851_v28, 0.0 }
 0x11e   : > { %v2386_v36 = vmul.f32 0.16666667, %v1874_v27  ;;  %v856_v38 = vadd.f32 3.0, %v344_v17  ;;  %v1364_v39 = vmax.f32 %v852_v29, 0.0  ;;  %v1365_v40 = vmax.f32 %v853_v30, 0.0  ;;  %v347_v47 = vld [vmem:[%s3615_s3 + $0x600] sm:$0xff] }
 0x11f   : > { %v1366_v41 = vmax.f32 %v854_v31, 0.0  ;;  %v1367_v42 = vmax.f32 %v855_v32, 0.0  ;;  %2897 = vst [vmem:[%s3637_s16 + $0x5b0] sm:$0xff] %v2385_v35  ;;  %v1875_v43 = vmin.f32 %v1363_v37, 6.0  ;;  %v857_v45 = vadd.f32 3.0, %v345_v33  ;;  %v348_v48 = vld [vmem:[%s3615_s3 + $0x608] sm:$0xff] }
 0x120   : > { %2898 = vst [vmem:[%s3637_s16 + $0x5b8] sm:$0xff] %v2386_v36  ;;  %v1368_v44 = vmax.f32 %v856_v38, 0.0  ;;  %v858_v46 = vadd.f32 3.0, %v346_v34  ;;  %v349_v49 = vld [vmem:[%s3615_s3 + $0x610] sm:$0xff]  ;;  %v1876_v50 = vmin.f32 %v1364_v39, 6.0  ;;  %v1877_v51 = vmin.f32 %v1365_v40, 6.0 }
 0x121   : > { %v1878_v52 = vmin.f32 %v1366_v41, 6.0  ;;  %v1879_v53 = vmin.f32 %v1367_v42, 6.0  ;;  %v350_v54 = vld [vmem:[%s3615_s3 + $0x618] sm:$0xff]  ;;  %v351_v55 = vld [vmem:[%s3615_s3 + $0x620] sm:$0xff]  ;;  %v2387_v56 = vmul.f32 0.16666667, %v1875_v43 }
 0x122   : > { %v1880_v57 = vmin.f32 %v1368_v44, 6.0  ;;  %v1369_v58 = vmax.f32 %v857_v45, 0.0  ;;  %v1370_v59 = vmax.f32 %v858_v46, 0.0  ;;  %v352_v60 = vld [vmem:[%s3615_s3 + $0x628] sm:$0xff]  ;;  %v2388_v61 = vmul.f32 0.16666667, %v1876_v50 }
 0x123   : > { %v2389_v62 = vmul.f32 0.16666667, %v1877_v51  ;;  %v2390_v63 = vmul.f32 0.16666667, %v1878_v52  ;;  %2899 = vst [vmem:[%s3637_s16 + $0x5c0] sm:$0xff] %v2387_v56  ;;  %v859_v4 = vadd.f32 3.0, %v347_v47 }
 0x124   : > { %v2391_v0 = vmul.f32 0.16666667, %v1879_v53  ;;  %v2392_v1 = vmul.f32 0.16666667, %v1880_v57  ;;  %v1881_v2 = vmin.f32 %v1369_v58, 6.0  ;;  %v1882_v3 = vmin.f32 %v1370_v59, 6.0 }
 0x125   : > { %2900 = vst [vmem:[%s3637_s16 + $0x5c8] sm:$0xff] %v2388_v61  ;;  %2901 = vst [vmem:[%s3637_s16 + $0x5d0] sm:$0xff] %v2389_v62  ;;  %v860_v5 = vadd.f32 3.0, %v348_v48  ;;  %v861_v6 = vadd.f32 3.0, %v349_v49  ;;  %v862_v7 = vadd.f32 3.0, %v350_v54  ;;  %v353_v8 = vld [vmem:[%s3615_s3 + $0x630] sm:$0xff] }
 0x126   : > { %2902 = vst [vmem:[%s3637_s16 + $0x5d8] sm:$0xff] %v2390_v63  ;;  %v354_v9 = vld [vmem:[%s3615_s3 + $0x638] sm:$0xff]  ;;  %2903 = vst [vmem:[%s3637_s16 + $0x5e0] sm:$0xff] %v2391_v0  ;;  %v2393_v10 = vmul.f32 0.16666667, %v1881_v2  ;;  %v863_v12 = vadd.f32 3.0, %v351_v55 }
 0x127   : > { %2904 = vst [vmem:[%s3637_s16 + $0x5e8] sm:$0xff] %v2392_v1  ;;  %v2394_v11 = vmul.f32 0.16666667, %v1882_v3  ;;  %v864_v13 = vadd.f32 3.0, %v352_v60  ;;  %v1371_v14 = vmax.f32 %v859_v4, 0.0  ;;  %v1372_v15 = vmax.f32 %v860_v5, 0.0 }
 0x128   : > { %v1373_v16 = vmax.f32 %v861_v6, 0.0  ;;  %v1374_v17 = vmax.f32 %v862_v7, 0.0  ;;  %2905 = vst [vmem:[%s3637_s16 + $0x5f0] sm:$0xff] %v2393_v10  ;;  %v1375_v18 = vmax.f32 %v863_v12, 0.0  ;;  %v865_v20 = vadd.f32 3.0, %v353_v8  ;;  %v355_v22 = vld [vmem:[%s3615_s3 + $0x640] sm:$0xff] }
 0x129   : > { %2906 = vst [vmem:[%s3637_s16 + $0x5f8] sm:$0xff] %v2394_v11  ;;  %v1376_v19 = vmax.f32 %v864_v13, 0.0  ;;  %v866_v21 = vadd.f32 3.0, %v354_v9  ;;  %v356_v23 = vld [vmem:[%s3615_s3 + $0x648] sm:$0xff]  ;;  %v1883_v24 = vmin.f32 %v1371_v14, 6.0  ;;  %v1884_v25 = vmin.f32 %v1372_v15, 6.0 }
 0x12a   : > { %v1885_v26 = vmin.f32 %v1373_v16, 6.0  ;;  %v1886_v27 = vmin.f32 %v1374_v17, 6.0  ;;  %v357_v28 = vld [vmem:[%s3615_s3 + $0x650] sm:$0xff]  ;;  %v358_v29 = vld [vmem:[%s3615_s3 + $0x658] sm:$0xff]  ;;  %v1887_v30 = vmin.f32 %v1375_v18, 6.0  ;;  %v1377_v32 = vmax.f32 %v865_v20, 0.0 }
 0x12b   : > { %v1888_v31 = vmin.f32 %v1376_v19, 6.0  ;;  %v1378_v33 = vmax.f32 %v866_v21, 0.0  ;;  %v359_v34 = vld [vmem:[%s3615_s3 + $0x660] sm:$0xff]  ;;  %v360_v35 = vld [vmem:[%s3615_s3 + $0x668] sm:$0xff]  ;;  %v2395_v36 = vmul.f32 0.16666667, %v1883_v24 }
 0x12c   : > { %v2396_v37 = vmul.f32 0.16666667, %v1884_v25  ;;  %v2397_v38 = vmul.f32 0.16666667, %v1885_v26  ;;  %v2398_v39 = vmul.f32 0.16666667, %v1886_v27 }
 0x12d   : > { %v2399_v40 = vmul.f32 0.16666667, %v1887_v30  ;;  %v2400_v41 = vmul.f32 0.16666667, %v1888_v31  ;;  %2907 = vst [vmem:[%s3637_s16 + $0x600] sm:$0xff] %v2395_v36  ;;  %v1889_v42 = vmin.f32 %v1377_v32, 6.0 }
 0x12e   : > { %2908 = vst [vmem:[%s3637_s16 + $0x608] sm:$0xff] %v2396_v37  ;;  %2909 = vst [vmem:[%s3637_s16 + $0x610] sm:$0xff] %v2397_v38  ;;  %v1890_v43 = vmin.f32 %v1378_v33, 6.0  ;;  %v867_v44 = vadd.f32 3.0, %v355_v22  ;;  %v868_v45 = vadd.f32 3.0, %v356_v23  ;;  %v869_v46 = vadd.f32 3.0, %v357_v28 }
 0x12f   : > { %2910 = vst [vmem:[%s3637_s16 + $0x618] sm:$0xff] %v2398_v39  ;;  %2911 = vst [vmem:[%s3637_s16 + $0x620] sm:$0xff] %v2399_v40  ;;  %v870_v47 = vadd.f32 3.0, %v358_v29  ;;  %v871_v48 = vadd.f32 3.0, %v359_v34  ;;  %v872_v49 = vadd.f32 3.0, %v360_v35  ;;  %v361_v50 = vld [vmem:[%s3615_s3 + $0x670] sm:$0xff] }
 0x130   : > { %2912 = vst [vmem:[%s3637_s16 + $0x628] sm:$0xff] %v2400_v41  ;;  %v362_v51 = vld [vmem:[%s3615_s3 + $0x678] sm:$0xff]  ;;  %v2401_v52 = vmul.f32 0.16666667, %v1889_v42  ;;  %v2402_v53 = vmul.f32 0.16666667, %v1890_v43 }
 0x131   : > { %v1379_v54 = vmax.f32 %v867_v44, 0.0  ;;  %v1380_v55 = vmax.f32 %v868_v45, 0.0  ;;  %v1381_v56 = vmax.f32 %v869_v46, 0.0  ;;  %v1382_v57 = vmax.f32 %v870_v47, 0.0  ;;  %v363_v60 = vld [vmem:[%s3615_s3 + $0x680] sm:$0xff]  ;;  %v364_v1 = vld [vmem:[%s3615_s3 + $0x688] sm:$0xff] }
 0x132   : > { %v1383_v58 = vmax.f32 %v871_v48, 0.0  ;;  %v1384_v59 = vmax.f32 %v872_v49, 0.0  ;;  %2913 = vst [vmem:[%s3637_s16 + $0x630] sm:$0xff] %v2401_v52  ;;  %2914 = vst [vmem:[%s3637_s16 + $0x638] sm:$0xff] %v2402_v53  ;;  %v873_v63 = vadd.f32 3.0, %v361_v50  ;;  %v874_v0 = vadd.f32 3.0, %v362_v51 }
 0x133   : > { %v1891_v61 = vmin.f32 %v1379_v54, 6.0  ;;  %v1892_v62 = vmin.f32 %v1380_v55, 6.0  ;;  %v365_v2 = vld [vmem:[%s3615_s3 + $0x690] sm:$0xff]  ;;  %v366_v3 = vld [vmem:[%s3615_s3 + $0x698] sm:$0xff]  ;;  %v1893_v4 = vmin.f32 %v1381_v56, 6.0  ;;  %v1894_v5 = vmin.f32 %v1382_v57, 6.0 }
 0x134   : > { %v1895_v6 = vmin.f32 %v1383_v58, 6.0  ;;  %v1896_v7 = vmin.f32 %v1384_v59, 6.0  ;;  %v367_v8 = vld [vmem:[%s3615_s3 + $0x6a0] sm:$0xff]  ;;  %v368_v9 = vld [vmem:[%s3615_s3 + $0x6a8] sm:$0xff]  ;;  %v1385_v12 = vmax.f32 %v873_v63, 0.0  ;;  %v1386_v13 = vmax.f32 %v874_v0, 0.0 }
 0x135   : > { %v2403_v10 = vmul.f32 0.16666667, %v1891_v61  ;;  %v2404_v11 = vmul.f32 0.16666667, %v1892_v62  ;;  %v2405_v14 = vmul.f32 0.16666667, %v1893_v4 }
 0x136   : > { %v2406_v15 = vmul.f32 0.16666667, %v1894_v5  ;;  %v2407_v16 = vmul.f32 0.16666667, %v1895_v6  ;;  %v2408_v17 = vmul.f32 0.16666667, %v1896_v7 }
 0x137   : > { %2915 = vst [vmem:[%s3637_s16 + $0x640] sm:$0xff] %v2403_v10  ;;  %2916 = vst [vmem:[%s3637_s16 + $0x648] sm:$0xff] %v2404_v11  ;;  %v1897_v18 = vmin.f32 %v1385_v12, 6.0  ;;  %v1898_v19 = vmin.f32 %v1386_v13, 6.0  ;;  %v875_v20 = vadd.f32 3.0, %v363_v60  ;;  %v876_v21 = vadd.f32 3.0, %v364_v1 }
 0x138   : > { %2917 = vst [vmem:[%s3637_s16 + $0x650] sm:$0xff] %v2405_v14  ;;  %2918 = vst [vmem:[%s3637_s16 + $0x658] sm:$0xff] %v2406_v15  ;;  %v877_v22 = vadd.f32 3.0, %v365_v2  ;;  %v878_v23 = vadd.f32 3.0, %v366_v3  ;;  %v879_v24 = vadd.f32 3.0, %v367_v8  ;;  %v369_v25 = vld [vmem:[%s3615_s3 + $0x6b0] sm:$0xff] }
 0x139   : > { %2919 = vst [vmem:[%s3637_s16 + $0x660] sm:$0xff] %v2407_v16  ;;  %v370_v26 = vld [vmem:[%s3615_s3 + $0x6b8] sm:$0xff]  ;;  %2920 = vst [vmem:[%s3637_s16 + $0x668] sm:$0xff] %v2408_v17  ;;  %v2409_v27 = vmul.f32 0.16666667, %v1897_v18  ;;  %v1387_v29 = vmax.f32 %v875_v20, 0.0 }
 0x13a   : > { %v2410_v28 = vmul.f32 0.16666667, %v1898_v19  ;;  %v880_v30 = vadd.f32 3.0, %v368_v9  ;;  %v1388_v31 = vmax.f32 %v876_v21, 0.0  ;;  %v1389_v32 = vmax.f32 %v877_v22, 0.0  ;;  %v371_v39 = vld [vmem:[%s3615_s3 + $0x6c0] sm:$0xff] }
 0x13b   : > { %v1390_v33 = vmax.f32 %v878_v23, 0.0  ;;  %v1391_v34 = vmax.f32 %v879_v24, 0.0  ;;  %2921 = vst [vmem:[%s3637_s16 + $0x670] sm:$0xff] %v2409_v27  ;;  %v1899_v35 = vmin.f32 %v1387_v29, 6.0  ;;  %v881_v37 = vadd.f32 3.0, %v369_v25  ;;  %v372_v40 = vld [vmem:[%s3615_s3 + $0x6c8] sm:$0xff] }
 0x13c   : > { %2922 = vst [vmem:[%s3637_s16 + $0x678] sm:$0xff] %v2410_v28  ;;  %v1392_v36 = vmax.f32 %v880_v30, 0.0  ;;  %v882_v38 = vadd.f32 3.0, %v370_v26  ;;  %v373_v41 = vld [vmem:[%s3615_s3 + $0x6d0] sm:$0xff]  ;;  %v1900_v42 = vmin.f32 %v1388_v31, 6.0  ;;  %v1901_v43 = vmin.f32 %v1389_v32, 6.0 }
 0x13d   : > { %v1902_v44 = vmin.f32 %v1390_v33, 6.0  ;;  %v1903_v45 = vmin.f32 %v1391_v34, 6.0  ;;  %v374_v46 = vld [vmem:[%s3615_s3 + $0x6d8] sm:$0xff]  ;;  %v375_v47 = vld [vmem:[%s3615_s3 + $0x6e0] sm:$0xff]  ;;  %v2411_v48 = vmul.f32 0.16666667, %v1899_v35 }
 0x13e   : > { %v1904_v49 = vmin.f32 %v1392_v36, 6.0  ;;  %v1393_v50 = vmax.f32 %v881_v37, 0.0  ;;  %v1394_v51 = vmax.f32 %v882_v38, 0.0  ;;  %v376_v52 = vld [vmem:[%s3615_s3 + $0x6e8] sm:$0xff]  ;;  %v2412_v53 = vmul.f32 0.16666667, %v1900_v42 }
 0x13f   : > { %v2413_v54 = vmul.f32 0.16666667, %v1901_v43  ;;  %v2414_v55 = vmul.f32 0.16666667, %v1902_v44  ;;  %2923 = vst [vmem:[%s3637_s16 + $0x680] sm:$0xff] %v2411_v48  ;;  %v883_v60 = vadd.f32 3.0, %v371_v39 }
 0x140   : > { %v2415_v56 = vmul.f32 0.16666667, %v1903_v45  ;;  %v2416_v57 = vmul.f32 0.16666667, %v1904_v49  ;;  %v1905_v58 = vmin.f32 %v1393_v50, 6.0  ;;  %v1906_v59 = vmin.f32 %v1394_v51, 6.0 }
 0x141   : > { %2924 = vst [vmem:[%s3637_s16 + $0x688] sm:$0xff] %v2412_v53  ;;  %2925 = vst [vmem:[%s3637_s16 + $0x690] sm:$0xff] %v2413_v54  ;;  %v884_v61 = vadd.f32 3.0, %v372_v40  ;;  %v885_v62 = vadd.f32 3.0, %v373_v41  ;;  %v886_v63 = vadd.f32 3.0, %v374_v46  ;;  %v377_v0 = vld [vmem:[%s3615_s3 + $0x6f0] sm:$0xff] }
 0x142   : > { %2926 = vst [vmem:[%s3637_s16 + $0x698] sm:$0xff] %v2414_v55  ;;  %v378_v1 = vld [vmem:[%s3615_s3 + $0x6f8] sm:$0xff]  ;;  %2927 = vst [vmem:[%s3637_s16 + $0x6a0] sm:$0xff] %v2415_v56  ;;  %v2417_v2 = vmul.f32 0.16666667, %v1905_v58  ;;  %v887_v4 = vadd.f32 3.0, %v375_v47 }
 0x143   : > { %2928 = vst [vmem:[%s3637_s16 + $0x6a8] sm:$0xff] %v2416_v57  ;;  %v2418_v3 = vmul.f32 0.16666667, %v1906_v59  ;;  %v888_v5 = vadd.f32 3.0, %v376_v52  ;;  %v1395_v6 = vmax.f32 %v883_v60, 0.0  ;;  %v1396_v7 = vmax.f32 %v884_v61, 0.0 }
 0x144   : > { %v1397_v8 = vmax.f32 %v885_v62, 0.0  ;;  %v1398_v9 = vmax.f32 %v886_v63, 0.0  ;;  %2929 = vst [vmem:[%s3637_s16 + $0x6b0] sm:$0xff] %v2417_v2  ;;  %v1399_v10 = vmax.f32 %v887_v4, 0.0  ;;  %v889_v12 = vadd.f32 3.0, %v377_v0  ;;  %v379_v14 = vld [vmem:[%s3615_s3 + $0x700] sm:$0xff] }
 0x145   : > { %2930 = vst [vmem:[%s3637_s16 + $0x6b8] sm:$0xff] %v2418_v3  ;;  %v1400_v11 = vmax.f32 %v888_v5, 0.0  ;;  %v890_v13 = vadd.f32 3.0, %v378_v1  ;;  %v380_v15 = vld [vmem:[%s3615_s3 + $0x708] sm:$0xff]  ;;  %v1907_v16 = vmin.f32 %v1395_v6, 6.0  ;;  %v1908_v17 = vmin.f32 %v1396_v7, 6.0 }
 0x146   : > { %v1909_v18 = vmin.f32 %v1397_v8, 6.0  ;;  %v1910_v19 = vmin.f32 %v1398_v9, 6.0  ;;  %v381_v20 = vld [vmem:[%s3615_s3 + $0x710] sm:$0xff]  ;;  %v382_v21 = vld [vmem:[%s3615_s3 + $0x718] sm:$0xff]  ;;  %v1911_v22 = vmin.f32 %v1399_v10, 6.0  ;;  %v1401_v24 = vmax.f32 %v889_v12, 0.0 }
 0x147   : > { %v1912_v23 = vmin.f32 %v1400_v11, 6.0  ;;  %v1402_v25 = vmax.f32 %v890_v13, 0.0  ;;  %v383_v26 = vld [vmem:[%s3615_s3 + $0x720] sm:$0xff]  ;;  %v384_v27 = vld [vmem:[%s3615_s3 + $0x728] sm:$0xff]  ;;  %v2419_v28 = vmul.f32 0.16666667, %v1907_v16 }
 0x148   : > { %v2420_v29 = vmul.f32 0.16666667, %v1908_v17  ;;  %v2421_v30 = vmul.f32 0.16666667, %v1909_v18  ;;  %v2422_v31 = vmul.f32 0.16666667, %v1910_v19 }
 0x149   : > { %v2423_v32 = vmul.f32 0.16666667, %v1911_v22  ;;  %v2424_v33 = vmul.f32 0.16666667, %v1912_v23  ;;  %2931 = vst [vmem:[%s3637_s16 + $0x6c0] sm:$0xff] %v2419_v28  ;;  %v1913_v34 = vmin.f32 %v1401_v24, 6.0 }
 0x14a   : > { %2932 = vst [vmem:[%s3637_s16 + $0x6c8] sm:$0xff] %v2420_v29  ;;  %2933 = vst [vmem:[%s3637_s16 + $0x6d0] sm:$0xff] %v2421_v30  ;;  %v1914_v35 = vmin.f32 %v1402_v25, 6.0  ;;  %v891_v36 = vadd.f32 3.0, %v379_v14  ;;  %v892_v37 = vadd.f32 3.0, %v380_v15  ;;  %v893_v38 = vadd.f32 3.0, %v381_v20 }
 0x14b   : > { %2934 = vst [vmem:[%s3637_s16 + $0x6d8] sm:$0xff] %v2422_v31  ;;  %2935 = vst [vmem:[%s3637_s16 + $0x6e0] sm:$0xff] %v2423_v32  ;;  %v894_v39 = vadd.f32 3.0, %v382_v21  ;;  %v895_v40 = vadd.f32 3.0, %v383_v26  ;;  %v896_v41 = vadd.f32 3.0, %v384_v27  ;;  %v385_v42 = vld [vmem:[%s3615_s3 + $0x730] sm:$0xff] }
 0x14c   : > { %2936 = vst [vmem:[%s3637_s16 + $0x6e8] sm:$0xff] %v2424_v33  ;;  %v386_v43 = vld [vmem:[%s3615_s3 + $0x738] sm:$0xff]  ;;  %v2425_v44 = vmul.f32 0.16666667, %v1913_v34  ;;  %v2426_v45 = vmul.f32 0.16666667, %v1914_v35 }
 0x14d   : > { %v1403_v46 = vmax.f32 %v891_v36, 0.0  ;;  %v1404_v47 = vmax.f32 %v892_v37, 0.0  ;;  %v1405_v48 = vmax.f32 %v893_v38, 0.0  ;;  %v1406_v49 = vmax.f32 %v894_v39, 0.0  ;;  %v387_v52 = vld [vmem:[%s3615_s3 + $0x740] sm:$0xff]  ;;  %v388_v57 = vld [vmem:[%s3615_s3 + $0x748] sm:$0xff] }
 0x14e   : > { %v1407_v50 = vmax.f32 %v895_v40, 0.0  ;;  %v1408_v51 = vmax.f32 %v896_v41, 0.0  ;;  %2937 = vst [vmem:[%s3637_s16 + $0x6f0] sm:$0xff] %v2425_v44  ;;  %2938 = vst [vmem:[%s3637_s16 + $0x6f8] sm:$0xff] %v2426_v45  ;;  %v897_v55 = vadd.f32 3.0, %v385_v42  ;;  %v898_v56 = vadd.f32 3.0, %v386_v43 }
 0x14f   : > { %v1915_v53 = vmin.f32 %v1403_v46, 6.0  ;;  %v1916_v54 = vmin.f32 %v1404_v47, 6.0  ;;  %v389_v58 = vld [vmem:[%s3615_s3 + $0x750] sm:$0xff]  ;;  %v390_v59 = vld [vmem:[%s3615_s3 + $0x758] sm:$0xff]  ;;  %v1917_v60 = vmin.f32 %v1405_v48, 6.0  ;;  %v1918_v61 = vmin.f32 %v1406_v49, 6.0 }
 0x150   : > { %v1919_v62 = vmin.f32 %v1407_v50, 6.0  ;;  %v1920_v63 = vmin.f32 %v1408_v51, 6.0  ;;  %v391_v0 = vld [vmem:[%s3615_s3 + $0x760] sm:$0xff]  ;;  %v392_v1 = vld [vmem:[%s3615_s3 + $0x768] sm:$0xff]  ;;  %v1409_v4 = vmax.f32 %v897_v55, 0.0  ;;  %v1410_v5 = vmax.f32 %v898_v56, 0.0 }
 0x151   : > { %v2427_v2 = vmul.f32 0.16666667, %v1915_v53  ;;  %v2428_v3 = vmul.f32 0.16666667, %v1916_v54  ;;  %v2429_v6 = vmul.f32 0.16666667, %v1917_v60 }
 0x152   : > { %v2430_v7 = vmul.f32 0.16666667, %v1918_v61  ;;  %v2431_v8 = vmul.f32 0.16666667, %v1919_v62  ;;  %v2432_v9 = vmul.f32 0.16666667, %v1920_v63 }
 0x153   : > { %2939 = vst [vmem:[%s3637_s16 + $0x700] sm:$0xff] %v2427_v2  ;;  %2940 = vst [vmem:[%s3637_s16 + $0x708] sm:$0xff] %v2428_v3  ;;  %v1921_v10 = vmin.f32 %v1409_v4, 6.0  ;;  %v1922_v11 = vmin.f32 %v1410_v5, 6.0  ;;  %v899_v12 = vadd.f32 3.0, %v387_v52  ;;  %v900_v13 = vadd.f32 3.0, %v388_v57 }
 0x154   : > { %2941 = vst [vmem:[%s3637_s16 + $0x710] sm:$0xff] %v2429_v6  ;;  %2942 = vst [vmem:[%s3637_s16 + $0x718] sm:$0xff] %v2430_v7  ;;  %v901_v14 = vadd.f32 3.0, %v389_v58  ;;  %v902_v15 = vadd.f32 3.0, %v390_v59  ;;  %v903_v16 = vadd.f32 3.0, %v391_v0  ;;  %v393_v17 = vld [vmem:[%s3615_s3 + $0x770] sm:$0xff] }
 0x155   : > { %2943 = vst [vmem:[%s3637_s16 + $0x720] sm:$0xff] %v2431_v8  ;;  %v394_v18 = vld [vmem:[%s3615_s3 + $0x778] sm:$0xff]  ;;  %2944 = vst [vmem:[%s3637_s16 + $0x728] sm:$0xff] %v2432_v9  ;;  %v2433_v19 = vmul.f32 0.16666667, %v1921_v10  ;;  %v1411_v21 = vmax.f32 %v899_v12, 0.0 }
 0x156   : > { %v2434_v20 = vmul.f32 0.16666667, %v1922_v11  ;;  %v904_v22 = vadd.f32 3.0, %v392_v1  ;;  %v1412_v23 = vmax.f32 %v900_v13, 0.0  ;;  %v1413_v24 = vmax.f32 %v901_v14, 0.0  ;;  %v395_v31 = vld [vmem:[%s3615_s3 + $0x780] sm:$0xff] }
 0x157   : > { %v1414_v25 = vmax.f32 %v902_v15, 0.0  ;;  %v1415_v26 = vmax.f32 %v903_v16, 0.0  ;;  %2945 = vst [vmem:[%s3637_s16 + $0x730] sm:$0xff] %v2433_v19  ;;  %v1923_v27 = vmin.f32 %v1411_v21, 6.0  ;;  %v905_v29 = vadd.f32 3.0, %v393_v17  ;;  %v396_v32 = vld [vmem:[%s3615_s3 + $0x788] sm:$0xff] }
 0x158   : > { %2946 = vst [vmem:[%s3637_s16 + $0x738] sm:$0xff] %v2434_v20  ;;  %v1416_v28 = vmax.f32 %v904_v22, 0.0  ;;  %v906_v30 = vadd.f32 3.0, %v394_v18  ;;  %v397_v33 = vld [vmem:[%s3615_s3 + $0x790] sm:$0xff]  ;;  %v1924_v34 = vmin.f32 %v1412_v23, 6.0  ;;  %v1925_v35 = vmin.f32 %v1413_v24, 6.0 }
 0x159   : > { %v1926_v36 = vmin.f32 %v1414_v25, 6.0  ;;  %v1927_v37 = vmin.f32 %v1415_v26, 6.0  ;;  %v398_v38 = vld [vmem:[%s3615_s3 + $0x798] sm:$0xff]  ;;  %v399_v39 = vld [vmem:[%s3615_s3 + $0x7a0] sm:$0xff]  ;;  %v2435_v40 = vmul.f32 0.16666667, %v1923_v27 }
 0x15a   : > { %v1928_v41 = vmin.f32 %v1416_v28, 6.0  ;;  %v1417_v42 = vmax.f32 %v905_v29, 0.0  ;;  %v1418_v43 = vmax.f32 %v906_v30, 0.0  ;;  %v400_v44 = vld [vmem:[%s3615_s3 + $0x7a8] sm:$0xff]  ;;  %v2436_v45 = vmul.f32 0.16666667, %v1924_v34 }
 0x15b   : > { %v2437_v46 = vmul.f32 0.16666667, %v1925_v35  ;;  %v2438_v47 = vmul.f32 0.16666667, %v1926_v36  ;;  %2947 = vst [vmem:[%s3637_s16 + $0x740] sm:$0xff] %v2435_v40  ;;  %v907_v52 = vadd.f32 3.0, %v395_v31 }
 0x15c   : > { %v2439_v48 = vmul.f32 0.16666667, %v1927_v37  ;;  %v2440_v49 = vmul.f32 0.16666667, %v1928_v41  ;;  %v1929_v50 = vmin.f32 %v1417_v42, 6.0  ;;  %v1930_v51 = vmin.f32 %v1418_v43, 6.0 }
 0x15d   : > { %2948 = vst [vmem:[%s3637_s16 + $0x748] sm:$0xff] %v2436_v45  ;;  %2949 = vst [vmem:[%s3637_s16 + $0x750] sm:$0xff] %v2437_v46  ;;  %v908_v53 = vadd.f32 3.0, %v396_v32  ;;  %v909_v54 = vadd.f32 3.0, %v397_v33  ;;  %v910_v55 = vadd.f32 3.0, %v398_v38  ;;  %v401_v56 = vld [vmem:[%s3615_s3 + $0x7b0] sm:$0xff] }
 0x15e   : > { %2950 = vst [vmem:[%s3637_s16 + $0x758] sm:$0xff] %v2438_v47  ;;  %v402_v57 = vld [vmem:[%s3615_s3 + $0x7b8] sm:$0xff]  ;;  %2951 = vst [vmem:[%s3637_s16 + $0x760] sm:$0xff] %v2439_v48  ;;  %v2441_v58 = vmul.f32 0.16666667, %v1929_v50  ;;  %v911_v60 = vadd.f32 3.0, %v399_v39 }
 0x15f   : > { %2952 = vst [vmem:[%s3637_s16 + $0x768] sm:$0xff] %v2440_v49  ;;  %v2442_v59 = vmul.f32 0.16666667, %v1930_v51  ;;  %v912_v61 = vadd.f32 3.0, %v400_v44  ;;  %v1419_v62 = vmax.f32 %v907_v52, 0.0  ;;  %v1420_v63 = vmax.f32 %v908_v53, 0.0 }
 0x160   : > { %v1421_v0 = vmax.f32 %v909_v54, 0.0  ;;  %v1422_v1 = vmax.f32 %v910_v55, 0.0  ;;  %2953 = vst [vmem:[%s3637_s16 + $0x770] sm:$0xff] %v2441_v58  ;;  %v1423_v2 = vmax.f32 %v911_v60, 0.0  ;;  %v913_v4 = vadd.f32 3.0, %v401_v56  ;;  %v403_v6 = vld [vmem:[%s3615_s3 + $0x7c0] sm:$0xff] }
 0x161   : > { %2954 = vst [vmem:[%s3637_s16 + $0x778] sm:$0xff] %v2442_v59  ;;  %v1424_v3 = vmax.f32 %v912_v61, 0.0  ;;  %v914_v5 = vadd.f32 3.0, %v402_v57  ;;  %v404_v7 = vld [vmem:[%s3615_s3 + $0x7c8] sm:$0xff]  ;;  %v1931_v8 = vmin.f32 %v1419_v62, 6.0  ;;  %v1932_v9 = vmin.f32 %v1420_v63, 6.0 }
 0x162   : > { %v1933_v10 = vmin.f32 %v1421_v0, 6.0  ;;  %v1934_v11 = vmin.f32 %v1422_v1, 6.0  ;;  %v405_v12 = vld [vmem:[%s3615_s3 + $0x7d0] sm:$0xff]  ;;  %v406_v13 = vld [vmem:[%s3615_s3 + $0x7d8] sm:$0xff]  ;;  %v1935_v14 = vmin.f32 %v1423_v2, 6.0  ;;  %v1425_v16 = vmax.f32 %v913_v4, 0.0 }
 0x163   : > { %v1936_v15 = vmin.f32 %v1424_v3, 6.0  ;;  %v1426_v17 = vmax.f32 %v914_v5, 0.0  ;;  %v407_v18 = vld [vmem:[%s3615_s3 + $0x7e0] sm:$0xff]  ;;  %v408_v19 = vld [vmem:[%s3615_s3 + $0x7e8] sm:$0xff]  ;;  %v2443_v20 = vmul.f32 0.16666667, %v1931_v8 }
 0x164   : > { %v2444_v21 = vmul.f32 0.16666667, %v1932_v9  ;;  %v2445_v22 = vmul.f32 0.16666667, %v1933_v10  ;;  %v2446_v23 = vmul.f32 0.16666667, %v1934_v11 }
 0x165   : > { %v2447_v24 = vmul.f32 0.16666667, %v1935_v14  ;;  %v2448_v25 = vmul.f32 0.16666667, %v1936_v15  ;;  %2955 = vst [vmem:[%s3637_s16 + $0x780] sm:$0xff] %v2443_v20  ;;  %v1937_v26 = vmin.f32 %v1425_v16, 6.0 }
 0x166   : > { %2956 = vst [vmem:[%s3637_s16 + $0x788] sm:$0xff] %v2444_v21  ;;  %2957 = vst [vmem:[%s3637_s16 + $0x790] sm:$0xff] %v2445_v22  ;;  %v1938_v27 = vmin.f32 %v1426_v17, 6.0  ;;  %v915_v28 = vadd.f32 3.0, %v403_v6  ;;  %v916_v29 = vadd.f32 3.0, %v404_v7  ;;  %v917_v30 = vadd.f32 3.0, %v405_v12 }
 0x167   : > { %2958 = vst [vmem:[%s3637_s16 + $0x798] sm:$0xff] %v2446_v23  ;;  %2959 = vst [vmem:[%s3637_s16 + $0x7a0] sm:$0xff] %v2447_v24  ;;  %v918_v31 = vadd.f32 3.0, %v406_v13  ;;  %v919_v32 = vadd.f32 3.0, %v407_v18  ;;  %v920_v33 = vadd.f32 3.0, %v408_v19  ;;  %v409_v34 = vld [vmem:[%s3615_s3 + $0x7f0] sm:$0xff] }
 0x168   : > { %2960 = vst [vmem:[%s3637_s16 + $0x7a8] sm:$0xff] %v2448_v25  ;;  %v410_v35 = vld [vmem:[%s3615_s3 + $0x7f8] sm:$0xff]  ;;  %v2449_v36 = vmul.f32 0.16666667, %v1937_v26  ;;  %v2450_v37 = vmul.f32 0.16666667, %v1938_v27 }
 0x169   : > { %v1427_v38 = vmax.f32 %v915_v28, 0.0  ;;  %v1428_v39 = vmax.f32 %v916_v29, 0.0  ;;  %v1429_v40 = vmax.f32 %v917_v30, 0.0  ;;  %v1430_v41 = vmax.f32 %v918_v31, 0.0  ;;  %v411_v44 = vld [vmem:[%s3615_s3 + $0x800] sm:$0xff]  ;;  %v412_v49 = vld [vmem:[%s3615_s3 + $0x808] sm:$0xff] }
 0x16a   : > { %v1431_v42 = vmax.f32 %v919_v32, 0.0  ;;  %v1432_v43 = vmax.f32 %v920_v33, 0.0  ;;  %2961 = vst [vmem:[%s3637_s16 + $0x7b0] sm:$0xff] %v2449_v36  ;;  %2962 = vst [vmem:[%s3637_s16 + $0x7b8] sm:$0xff] %v2450_v37  ;;  %v921_v47 = vadd.f32 3.0, %v409_v34  ;;  %v922_v48 = vadd.f32 3.0, %v410_v35 }
 0x16b   : > { %v1939_v45 = vmin.f32 %v1427_v38, 6.0  ;;  %v1940_v46 = vmin.f32 %v1428_v39, 6.0  ;;  %v413_v50 = vld [vmem:[%s3615_s3 + $0x810] sm:$0xff]  ;;  %v414_v51 = vld [vmem:[%s3615_s3 + $0x818] sm:$0xff]  ;;  %v1941_v52 = vmin.f32 %v1429_v40, 6.0  ;;  %v1942_v53 = vmin.f32 %v1430_v41, 6.0 }
 0x16c   : > { %v1943_v54 = vmin.f32 %v1431_v42, 6.0  ;;  %v1944_v55 = vmin.f32 %v1432_v43, 6.0  ;;  %v415_v56 = vld [vmem:[%s3615_s3 + $0x820] sm:$0xff]  ;;  %v416_v57 = vld [vmem:[%s3615_s3 + $0x828] sm:$0xff]  ;;  %v1433_v60 = vmax.f32 %v921_v47, 0.0  ;;  %v1434_v61 = vmax.f32 %v922_v48, 0.0 }
 0x16d   : > { %v2451_v58 = vmul.f32 0.16666667, %v1939_v45  ;;  %v2452_v59 = vmul.f32 0.16666667, %v1940_v46  ;;  %v2453_v62 = vmul.f32 0.16666667, %v1941_v52 }
 0x16e   : > { %v2454_v63 = vmul.f32 0.16666667, %v1942_v53  ;;  %v2455_v0 = vmul.f32 0.16666667, %v1943_v54  ;;  %v2456_v1 = vmul.f32 0.16666667, %v1944_v55 }
 0x16f   : > { %2963 = vst [vmem:[%s3637_s16 + $0x7c0] sm:$0xff] %v2451_v58  ;;  %2964 = vst [vmem:[%s3637_s16 + $0x7c8] sm:$0xff] %v2452_v59  ;;  %v1945_v2 = vmin.f32 %v1433_v60, 6.0  ;;  %v1946_v3 = vmin.f32 %v1434_v61, 6.0  ;;  %v923_v4 = vadd.f32 3.0, %v411_v44  ;;  %v924_v5 = vadd.f32 3.0, %v412_v49 }
 0x170   : > { %2965 = vst [vmem:[%s3637_s16 + $0x7d0] sm:$0xff] %v2453_v62  ;;  %2966 = vst [vmem:[%s3637_s16 + $0x7d8] sm:$0xff] %v2454_v63  ;;  %v925_v6 = vadd.f32 3.0, %v413_v50  ;;  %v926_v7 = vadd.f32 3.0, %v414_v51  ;;  %v927_v8 = vadd.f32 3.0, %v415_v56  ;;  %v417_v9 = vld [vmem:[%s3615_s3 + $0x830] sm:$0xff] }
 0x171   : > { %2967 = vst [vmem:[%s3637_s16 + $0x7e0] sm:$0xff] %v2455_v0  ;;  %v418_v10 = vld [vmem:[%s3615_s3 + $0x838] sm:$0xff]  ;;  %2968 = vst [vmem:[%s3637_s16 + $0x7e8] sm:$0xff] %v2456_v1  ;;  %v2457_v11 = vmul.f32 0.16666667, %v1945_v2  ;;  %v1435_v13 = vmax.f32 %v923_v4, 0.0 }
 0x172   : > { %v2458_v12 = vmul.f32 0.16666667, %v1946_v3  ;;  %v928_v14 = vadd.f32 3.0, %v416_v57  ;;  %v1436_v15 = vmax.f32 %v924_v5, 0.0  ;;  %v1437_v16 = vmax.f32 %v925_v6, 0.0  ;;  %v419_v23 = vld [vmem:[%s3615_s3 + $0x840] sm:$0xff] }
 0x173   : > { %v1438_v17 = vmax.f32 %v926_v7, 0.0  ;;  %v1439_v18 = vmax.f32 %v927_v8, 0.0  ;;  %2969 = vst [vmem:[%s3637_s16 + $0x7f0] sm:$0xff] %v2457_v11  ;;  %v1947_v19 = vmin.f32 %v1435_v13, 6.0  ;;  %v929_v21 = vadd.f32 3.0, %v417_v9  ;;  %v420_v24 = vld [vmem:[%s3615_s3 + $0x848] sm:$0xff] }
 0x174   : > { %2970 = vst [vmem:[%s3637_s16 + $0x7f8] sm:$0xff] %v2458_v12  ;;  %v1440_v20 = vmax.f32 %v928_v14, 0.0  ;;  %v930_v22 = vadd.f32 3.0, %v418_v10  ;;  %v421_v25 = vld [vmem:[%s3615_s3 + $0x850] sm:$0xff]  ;;  %v1948_v26 = vmin.f32 %v1436_v15, 6.0  ;;  %v1949_v27 = vmin.f32 %v1437_v16, 6.0 }
 0x175   : > { %v1950_v28 = vmin.f32 %v1438_v17, 6.0  ;;  %v1951_v29 = vmin.f32 %v1439_v18, 6.0  ;;  %v422_v30 = vld [vmem:[%s3615_s3 + $0x858] sm:$0xff]  ;;  %v423_v31 = vld [vmem:[%s3615_s3 + $0x860] sm:$0xff]  ;;  %v2459_v32 = vmul.f32 0.16666667, %v1947_v19 }
 0x176   : > { %v1952_v33 = vmin.f32 %v1440_v20, 6.0  ;;  %v1441_v34 = vmax.f32 %v929_v21, 0.0  ;;  %v1442_v35 = vmax.f32 %v930_v22, 0.0  ;;  %v424_v36 = vld [vmem:[%s3615_s3 + $0x868] sm:$0xff]  ;;  %v2460_v37 = vmul.f32 0.16666667, %v1948_v26 }
 0x177   : > { %v2461_v38 = vmul.f32 0.16666667, %v1949_v27  ;;  %v2462_v39 = vmul.f32 0.16666667, %v1950_v28  ;;  %2971 = vst [vmem:[%s3637_s16 + $0x800] sm:$0xff] %v2459_v32  ;;  %v931_v44 = vadd.f32 3.0, %v419_v23 }
 0x178   : > { %v2463_v40 = vmul.f32 0.16666667, %v1951_v29  ;;  %v2464_v41 = vmul.f32 0.16666667, %v1952_v33  ;;  %v1953_v42 = vmin.f32 %v1441_v34, 6.0  ;;  %v1954_v43 = vmin.f32 %v1442_v35, 6.0 }
 0x179   : > { %2972 = vst [vmem:[%s3637_s16 + $0x808] sm:$0xff] %v2460_v37  ;;  %2973 = vst [vmem:[%s3637_s16 + $0x810] sm:$0xff] %v2461_v38  ;;  %v932_v45 = vadd.f32 3.0, %v420_v24  ;;  %v933_v46 = vadd.f32 3.0, %v421_v25  ;;  %v934_v47 = vadd.f32 3.0, %v422_v30  ;;  %v425_v48 = vld [vmem:[%s3615_s3 + $0x870] sm:$0xff] }
 0x17a   : > { %2974 = vst [vmem:[%s3637_s16 + $0x818] sm:$0xff] %v2462_v39  ;;  %v426_v49 = vld [vmem:[%s3615_s3 + $0x878] sm:$0xff]  ;;  %2975 = vst [vmem:[%s3637_s16 + $0x820] sm:$0xff] %v2463_v40  ;;  %v2465_v50 = vmul.f32 0.16666667, %v1953_v42  ;;  %v935_v52 = vadd.f32 3.0, %v423_v31 }
 0x17b   : > { %2976 = vst [vmem:[%s3637_s16 + $0x828] sm:$0xff] %v2464_v41  ;;  %v2466_v51 = vmul.f32 0.16666667, %v1954_v43  ;;  %v936_v53 = vadd.f32 3.0, %v424_v36  ;;  %v1443_v54 = vmax.f32 %v931_v44, 0.0  ;;  %v1444_v55 = vmax.f32 %v932_v45, 0.0 }
 0x17c   : > { %v1445_v56 = vmax.f32 %v933_v46, 0.0  ;;  %v1446_v57 = vmax.f32 %v934_v47, 0.0  ;;  %2977 = vst [vmem:[%s3637_s16 + $0x830] sm:$0xff] %v2465_v50  ;;  %v1447_v58 = vmax.f32 %v935_v52, 0.0  ;;  %v937_v60 = vadd.f32 3.0, %v425_v48  ;;  %v427_v62 = vld [vmem:[%s3615_s3 + $0x880] sm:$0xff] }
 0x17d   : > { %2978 = vst [vmem:[%s3637_s16 + $0x838] sm:$0xff] %v2466_v51  ;;  %v1448_v59 = vmax.f32 %v936_v53, 0.0  ;;  %v938_v61 = vadd.f32 3.0, %v426_v49  ;;  %v428_v63 = vld [vmem:[%s3615_s3 + $0x888] sm:$0xff]  ;;  %v1955_v0 = vmin.f32 %v1443_v54, 6.0  ;;  %v1956_v1 = vmin.f32 %v1444_v55, 6.0 }
 0x17e   : > { %v1957_v2 = vmin.f32 %v1445_v56, 6.0  ;;  %v1958_v3 = vmin.f32 %v1446_v57, 6.0  ;;  %v429_v4 = vld [vmem:[%s3615_s3 + $0x890] sm:$0xff]  ;;  %v430_v5 = vld [vmem:[%s3615_s3 + $0x898] sm:$0xff]  ;;  %v1959_v6 = vmin.f32 %v1447_v58, 6.0  ;;  %v1449_v8 = vmax.f32 %v937_v60, 0.0 }
 0x17f   : > { %v1960_v7 = vmin.f32 %v1448_v59, 6.0  ;;  %v1450_v9 = vmax.f32 %v938_v61, 0.0  ;;  %v431_v10 = vld [vmem:[%s3615_s3 + $0x8a0] sm:$0xff]  ;;  %v432_v11 = vld [vmem:[%s3615_s3 + $0x8a8] sm:$0xff]  ;;  %v2467_v12 = vmul.f32 0.16666667, %v1955_v0 }
 0x180   : > { %v2468_v13 = vmul.f32 0.16666667, %v1956_v1  ;;  %v2469_v14 = vmul.f32 0.16666667, %v1957_v2  ;;  %v2470_v15 = vmul.f32 0.16666667, %v1958_v3 }
 0x181   : > { %v2471_v16 = vmul.f32 0.16666667, %v1959_v6  ;;  %v2472_v17 = vmul.f32 0.16666667, %v1960_v7  ;;  %2979 = vst [vmem:[%s3637_s16 + $0x840] sm:$0xff] %v2467_v12  ;;  %v1961_v18 = vmin.f32 %v1449_v8, 6.0 }
 0x182   : > { %2980 = vst [vmem:[%s3637_s16 + $0x848] sm:$0xff] %v2468_v13  ;;  %2981 = vst [vmem:[%s3637_s16 + $0x850] sm:$0xff] %v2469_v14  ;;  %v1962_v19 = vmin.f32 %v1450_v9, 6.0  ;;  %v939_v20 = vadd.f32 3.0, %v427_v62  ;;  %v940_v21 = vadd.f32 3.0, %v428_v63  ;;  %v941_v22 = vadd.f32 3.0, %v429_v4 }
 0x183   : > { %2982 = vst [vmem:[%s3637_s16 + $0x858] sm:$0xff] %v2470_v15  ;;  %2983 = vst [vmem:[%s3637_s16 + $0x860] sm:$0xff] %v2471_v16  ;;  %v942_v23 = vadd.f32 3.0, %v430_v5  ;;  %v943_v24 = vadd.f32 3.0, %v431_v10  ;;  %v944_v25 = vadd.f32 3.0, %v432_v11  ;;  %v433_v26 = vld [vmem:[%s3615_s3 + $0x8b0] sm:$0xff] }
 0x184   : > { %2984 = vst [vmem:[%s3637_s16 + $0x868] sm:$0xff] %v2472_v17  ;;  %v434_v27 = vld [vmem:[%s3615_s3 + $0x8b8] sm:$0xff]  ;;  %v2473_v28 = vmul.f32 0.16666667, %v1961_v18  ;;  %v2474_v29 = vmul.f32 0.16666667, %v1962_v19 }
 0x185   : > { %v1451_v30 = vmax.f32 %v939_v20, 0.0  ;;  %v1452_v31 = vmax.f32 %v940_v21, 0.0  ;;  %v1453_v32 = vmax.f32 %v941_v22, 0.0  ;;  %v1454_v33 = vmax.f32 %v942_v23, 0.0  ;;  %v435_v36 = vld [vmem:[%s3615_s3 + $0x8c0] sm:$0xff]  ;;  %v436_v41 = vld [vmem:[%s3615_s3 + $0x8c8] sm:$0xff] }
 0x186   : > { %v1455_v34 = vmax.f32 %v943_v24, 0.0  ;;  %v1456_v35 = vmax.f32 %v944_v25, 0.0  ;;  %2985 = vst [vmem:[%s3637_s16 + $0x870] sm:$0xff] %v2473_v28  ;;  %2986 = vst [vmem:[%s3637_s16 + $0x878] sm:$0xff] %v2474_v29  ;;  %v945_v39 = vadd.f32 3.0, %v433_v26  ;;  %v946_v40 = vadd.f32 3.0, %v434_v27 }
 0x187   : > { %v1963_v37 = vmin.f32 %v1451_v30, 6.0  ;;  %v1964_v38 = vmin.f32 %v1452_v31, 6.0  ;;  %v437_v42 = vld [vmem:[%s3615_s3 + $0x8d0] sm:$0xff]  ;;  %v438_v43 = vld [vmem:[%s3615_s3 + $0x8d8] sm:$0xff]  ;;  %v1965_v44 = vmin.f32 %v1453_v32, 6.0  ;;  %v1966_v45 = vmin.f32 %v1454_v33, 6.0 }
 0x188   : > { %v1967_v46 = vmin.f32 %v1455_v34, 6.0  ;;  %v1968_v47 = vmin.f32 %v1456_v35, 6.0  ;;  %v439_v48 = vld [vmem:[%s3615_s3 + $0x8e0] sm:$0xff]  ;;  %v440_v49 = vld [vmem:[%s3615_s3 + $0x8e8] sm:$0xff]  ;;  %v1457_v52 = vmax.f32 %v945_v39, 0.0  ;;  %v1458_v53 = vmax.f32 %v946_v40, 0.0 }
 0x189   : > { %v2475_v50 = vmul.f32 0.16666667, %v1963_v37  ;;  %v2476_v51 = vmul.f32 0.16666667, %v1964_v38  ;;  %v2477_v54 = vmul.f32 0.16666667, %v1965_v44 }
 0x18a   : > { %v2478_v55 = vmul.f32 0.16666667, %v1966_v45  ;;  %v2479_v56 = vmul.f32 0.16666667, %v1967_v46  ;;  %v2480_v57 = vmul.f32 0.16666667, %v1968_v47 }
 0x18b   : > { %2987 = vst [vmem:[%s3637_s16 + $0x880] sm:$0xff] %v2475_v50  ;;  %2988 = vst [vmem:[%s3637_s16 + $0x888] sm:$0xff] %v2476_v51  ;;  %v1969_v58 = vmin.f32 %v1457_v52, 6.0  ;;  %v1970_v59 = vmin.f32 %v1458_v53, 6.0  ;;  %v947_v60 = vadd.f32 3.0, %v435_v36  ;;  %v948_v61 = vadd.f32 3.0, %v436_v41 }
 0x18c   : > { %2989 = vst [vmem:[%s3637_s16 + $0x890] sm:$0xff] %v2477_v54  ;;  %2990 = vst [vmem:[%s3637_s16 + $0x898] sm:$0xff] %v2478_v55  ;;  %v949_v62 = vadd.f32 3.0, %v437_v42  ;;  %v950_v63 = vadd.f32 3.0, %v438_v43  ;;  %v951_v0 = vadd.f32 3.0, %v439_v48  ;;  %v441_v1 = vld [vmem:[%s3615_s3 + $0x8f0] sm:$0xff] }
 0x18d   : > { %2991 = vst [vmem:[%s3637_s16 + $0x8a0] sm:$0xff] %v2479_v56  ;;  %v442_v2 = vld [vmem:[%s3615_s3 + $0x8f8] sm:$0xff]  ;;  %2992 = vst [vmem:[%s3637_s16 + $0x8a8] sm:$0xff] %v2480_v57  ;;  %v2481_v3 = vmul.f32 0.16666667, %v1969_v58  ;;  %v1459_v5 = vmax.f32 %v947_v60, 0.0 }
 0x18e   : > { %v2482_v4 = vmul.f32 0.16666667, %v1970_v59  ;;  %v952_v6 = vadd.f32 3.0, %v440_v49  ;;  %v1460_v7 = vmax.f32 %v948_v61, 0.0  ;;  %v1461_v8 = vmax.f32 %v949_v62, 0.0  ;;  %v443_v15 = vld [vmem:[%s3615_s3 + $0x900] sm:$0xff] }
 0x18f   : > { %v1462_v9 = vmax.f32 %v950_v63, 0.0  ;;  %v1463_v10 = vmax.f32 %v951_v0, 0.0  ;;  %2993 = vst [vmem:[%s3637_s16 + $0x8b0] sm:$0xff] %v2481_v3  ;;  %v1971_v11 = vmin.f32 %v1459_v5, 6.0  ;;  %v953_v13 = vadd.f32 3.0, %v441_v1  ;;  %v444_v16 = vld [vmem:[%s3615_s3 + $0x908] sm:$0xff] }
 0x190   : > { %2994 = vst [vmem:[%s3637_s16 + $0x8b8] sm:$0xff] %v2482_v4  ;;  %v1464_v12 = vmax.f32 %v952_v6, 0.0  ;;  %v954_v14 = vadd.f32 3.0, %v442_v2  ;;  %v445_v17 = vld [vmem:[%s3615_s3 + $0x910] sm:$0xff]  ;;  %v1972_v18 = vmin.f32 %v1460_v7, 6.0  ;;  %v1973_v19 = vmin.f32 %v1461_v8, 6.0 }
 0x191   : > { %v1974_v20 = vmin.f32 %v1462_v9, 6.0  ;;  %v1975_v21 = vmin.f32 %v1463_v10, 6.0  ;;  %v446_v22 = vld [vmem:[%s3615_s3 + $0x918] sm:$0xff]  ;;  %v447_v23 = vld [vmem:[%s3615_s3 + $0x920] sm:$0xff]  ;;  %v2483_v24 = vmul.f32 0.16666667, %v1971_v11 }
 0x192   : > { %v1976_v25 = vmin.f32 %v1464_v12, 6.0  ;;  %v1465_v26 = vmax.f32 %v953_v13, 0.0  ;;  %v1466_v27 = vmax.f32 %v954_v14, 0.0  ;;  %v448_v28 = vld [vmem:[%s3615_s3 + $0x928] sm:$0xff]  ;;  %v2484_v29 = vmul.f32 0.16666667, %v1972_v18 }
 0x193   : > { %v2485_v30 = vmul.f32 0.16666667, %v1973_v19  ;;  %v2486_v31 = vmul.f32 0.16666667, %v1974_v20  ;;  %2995 = vst [vmem:[%s3637_s16 + $0x8c0] sm:$0xff] %v2483_v24  ;;  %v955_v36 = vadd.f32 3.0, %v443_v15 }
 0x194   : > { %v2487_v32 = vmul.f32 0.16666667, %v1975_v21  ;;  %v2488_v33 = vmul.f32 0.16666667, %v1976_v25  ;;  %v1977_v34 = vmin.f32 %v1465_v26, 6.0  ;;  %v1978_v35 = vmin.f32 %v1466_v27, 6.0 }
 0x195   : > { %2996 = vst [vmem:[%s3637_s16 + $0x8c8] sm:$0xff] %v2484_v29  ;;  %2997 = vst [vmem:[%s3637_s16 + $0x8d0] sm:$0xff] %v2485_v30  ;;  %v956_v37 = vadd.f32 3.0, %v444_v16  ;;  %v957_v38 = vadd.f32 3.0, %v445_v17  ;;  %v958_v39 = vadd.f32 3.0, %v446_v22  ;;  %v449_v40 = vld [vmem:[%s3615_s3 + $0x930] sm:$0xff] }
 0x196   : > { %2998 = vst [vmem:[%s3637_s16 + $0x8d8] sm:$0xff] %v2486_v31  ;;  %v450_v41 = vld [vmem:[%s3615_s3 + $0x938] sm:$0xff]  ;;  %2999 = vst [vmem:[%s3637_s16 + $0x8e0] sm:$0xff] %v2487_v32  ;;  %v2489_v42 = vmul.f32 0.16666667, %v1977_v34  ;;  %v959_v44 = vadd.f32 3.0, %v447_v23 }
 0x197   : > { %3000 = vst [vmem:[%s3637_s16 + $0x8e8] sm:$0xff] %v2488_v33  ;;  %v2490_v43 = vmul.f32 0.16666667, %v1978_v35  ;;  %v960_v45 = vadd.f32 3.0, %v448_v28  ;;  %v1467_v46 = vmax.f32 %v955_v36, 0.0  ;;  %v1468_v47 = vmax.f32 %v956_v37, 0.0 }
 0x198   : > { %v1469_v48 = vmax.f32 %v957_v38, 0.0  ;;  %v1470_v49 = vmax.f32 %v958_v39, 0.0  ;;  %3001 = vst [vmem:[%s3637_s16 + $0x8f0] sm:$0xff] %v2489_v42  ;;  %v1471_v50 = vmax.f32 %v959_v44, 0.0  ;;  %v961_v52 = vadd.f32 3.0, %v449_v40  ;;  %v451_v54 = vld [vmem:[%s3615_s3 + $0x940] sm:$0xff] }
 0x199   : > { %3002 = vst [vmem:[%s3637_s16 + $0x8f8] sm:$0xff] %v2490_v43  ;;  %v1472_v51 = vmax.f32 %v960_v45, 0.0  ;;  %v962_v53 = vadd.f32 3.0, %v450_v41  ;;  %v452_v55 = vld [vmem:[%s3615_s3 + $0x948] sm:$0xff]  ;;  %v1979_v56 = vmin.f32 %v1467_v46, 6.0  ;;  %v1980_v57 = vmin.f32 %v1468_v47, 6.0 }
 0x19a   : > { %v1981_v58 = vmin.f32 %v1469_v48, 6.0  ;;  %v1982_v59 = vmin.f32 %v1470_v49, 6.0  ;;  %v453_v60 = vld [vmem:[%s3615_s3 + $0x950] sm:$0xff]  ;;  %v454_v61 = vld [vmem:[%s3615_s3 + $0x958] sm:$0xff]  ;;  %v1983_v62 = vmin.f32 %v1471_v50, 6.0  ;;  %v1473_v0 = vmax.f32 %v961_v52, 0.0 }
 0x19b   : > { %v1984_v63 = vmin.f32 %v1472_v51, 6.0  ;;  %v1474_v1 = vmax.f32 %v962_v53, 0.0  ;;  %v455_v2 = vld [vmem:[%s3615_s3 + $0x960] sm:$0xff]  ;;  %v456_v3 = vld [vmem:[%s3615_s3 + $0x968] sm:$0xff]  ;;  %v2491_v4 = vmul.f32 0.16666667, %v1979_v56 }
 0x19c   : > { %v2492_v5 = vmul.f32 0.16666667, %v1980_v57  ;;  %v2493_v6 = vmul.f32 0.16666667, %v1981_v58  ;;  %v2494_v7 = vmul.f32 0.16666667, %v1982_v59 }
 0x19d   : > { %v2495_v8 = vmul.f32 0.16666667, %v1983_v62  ;;  %v2496_v9 = vmul.f32 0.16666667, %v1984_v63  ;;  %3003 = vst [vmem:[%s3637_s16 + $0x900] sm:$0xff] %v2491_v4  ;;  %v1985_v10 = vmin.f32 %v1473_v0, 6.0 }
 0x19e   : > { %3004 = vst [vmem:[%s3637_s16 + $0x908] sm:$0xff] %v2492_v5  ;;  %3005 = vst [vmem:[%s3637_s16 + $0x910] sm:$0xff] %v2493_v6  ;;  %v1986_v11 = vmin.f32 %v1474_v1, 6.0  ;;  %v963_v12 = vadd.f32 3.0, %v451_v54  ;;  %v964_v13 = vadd.f32 3.0, %v452_v55  ;;  %v965_v14 = vadd.f32 3.0, %v453_v60 }
 0x19f   : > { %3006 = vst [vmem:[%s3637_s16 + $0x918] sm:$0xff] %v2494_v7  ;;  %3007 = vst [vmem:[%s3637_s16 + $0x920] sm:$0xff] %v2495_v8  ;;  %v966_v15 = vadd.f32 3.0, %v454_v61  ;;  %v967_v16 = vadd.f32 3.0, %v455_v2  ;;  %v968_v17 = vadd.f32 3.0, %v456_v3  ;;  %v457_v18 = vld [vmem:[%s3615_s3 + $0x970] sm:$0xff] }
 0x1a0   : > { %3008 = vst [vmem:[%s3637_s16 + $0x928] sm:$0xff] %v2496_v9  ;;  %v458_v19 = vld [vmem:[%s3615_s3 + $0x978] sm:$0xff]  ;;  %v2497_v20 = vmul.f32 0.16666667, %v1985_v10  ;;  %v2498_v21 = vmul.f32 0.16666667, %v1986_v11 }
 0x1a1   : > { %v1475_v22 = vmax.f32 %v963_v12, 0.0  ;;  %v1476_v23 = vmax.f32 %v964_v13, 0.0  ;;  %v1477_v24 = vmax.f32 %v965_v14, 0.0  ;;  %v1478_v25 = vmax.f32 %v966_v15, 0.0  ;;  %v459_v28 = vld [vmem:[%s3615_s3 + $0x980] sm:$0xff]  ;;  %v460_v33 = vld [vmem:[%s3615_s3 + $0x988] sm:$0xff] }
 0x1a2   : > { %v1479_v26 = vmax.f32 %v967_v16, 0.0  ;;  %v1480_v27 = vmax.f32 %v968_v17, 0.0  ;;  %3009 = vst [vmem:[%s3637_s16 + $0x930] sm:$0xff] %v2497_v20  ;;  %3010 = vst [vmem:[%s3637_s16 + $0x938] sm:$0xff] %v2498_v21  ;;  %v969_v31 = vadd.f32 3.0, %v457_v18  ;;  %v970_v32 = vadd.f32 3.0, %v458_v19 }
 0x1a3   : > { %v1987_v29 = vmin.f32 %v1475_v22, 6.0  ;;  %v1988_v30 = vmin.f32 %v1476_v23, 6.0  ;;  %v461_v34 = vld [vmem:[%s3615_s3 + $0x990] sm:$0xff]  ;;  %v462_v35 = vld [vmem:[%s3615_s3 + $0x998] sm:$0xff]  ;;  %v1989_v36 = vmin.f32 %v1477_v24, 6.0  ;;  %v1990_v37 = vmin.f32 %v1478_v25, 6.0 }
 0x1a4   : > { %v1991_v38 = vmin.f32 %v1479_v26, 6.0  ;;  %v1992_v39 = vmin.f32 %v1480_v27, 6.0  ;;  %v463_v40 = vld [vmem:[%s3615_s3 + $0x9a0] sm:$0xff]  ;;  %v464_v41 = vld [vmem:[%s3615_s3 + $0x9a8] sm:$0xff]  ;;  %v1481_v44 = vmax.f32 %v969_v31, 0.0  ;;  %v1482_v45 = vmax.f32 %v970_v32, 0.0 }
 0x1a5   : > { %v2499_v42 = vmul.f32 0.16666667, %v1987_v29  ;;  %v2500_v43 = vmul.f32 0.16666667, %v1988_v30  ;;  %v2501_v46 = vmul.f32 0.16666667, %v1989_v36 }
 0x1a6   : > { %v2502_v47 = vmul.f32 0.16666667, %v1990_v37  ;;  %v2503_v48 = vmul.f32 0.16666667, %v1991_v38  ;;  %v2504_v49 = vmul.f32 0.16666667, %v1992_v39 }
 0x1a7   : > { %3011 = vst [vmem:[%s3637_s16 + $0x940] sm:$0xff] %v2499_v42  ;;  %3012 = vst [vmem:[%s3637_s16 + $0x948] sm:$0xff] %v2500_v43  ;;  %v1993_v50 = vmin.f32 %v1481_v44, 6.0  ;;  %v1994_v51 = vmin.f32 %v1482_v45, 6.0  ;;  %v971_v52 = vadd.f32 3.0, %v459_v28  ;;  %v972_v53 = vadd.f32 3.0, %v460_v33 }
 0x1a8   : > { %3013 = vst [vmem:[%s3637_s16 + $0x950] sm:$0xff] %v2501_v46  ;;  %3014 = vst [vmem:[%s3637_s16 + $0x958] sm:$0xff] %v2502_v47  ;;  %v973_v54 = vadd.f32 3.0, %v461_v34  ;;  %v974_v55 = vadd.f32 3.0, %v462_v35  ;;  %v975_v56 = vadd.f32 3.0, %v463_v40  ;;  %v465_v57 = vld [vmem:[%s3615_s3 + $0x9b0] sm:$0xff] }
 0x1a9   : > { %3015 = vst [vmem:[%s3637_s16 + $0x960] sm:$0xff] %v2503_v48  ;;  %v466_v58 = vld [vmem:[%s3615_s3 + $0x9b8] sm:$0xff]  ;;  %3016 = vst [vmem:[%s3637_s16 + $0x968] sm:$0xff] %v2504_v49  ;;  %v2505_v59 = vmul.f32 0.16666667, %v1993_v50  ;;  %v1483_v61 = vmax.f32 %v971_v52, 0.0 }
 0x1aa   : > { %v2506_v60 = vmul.f32 0.16666667, %v1994_v51  ;;  %v976_v62 = vadd.f32 3.0, %v464_v41  ;;  %v1484_v63 = vmax.f32 %v972_v53, 0.0  ;;  %v1485_v0 = vmax.f32 %v973_v54, 0.0  ;;  %v467_v7 = vld [vmem:[%s3615_s3 + $0x9c0] sm:$0xff] }
 0x1ab   : > { %v1486_v1 = vmax.f32 %v974_v55, 0.0  ;;  %v1487_v2 = vmax.f32 %v975_v56, 0.0  ;;  %3017 = vst [vmem:[%s3637_s16 + $0x970] sm:$0xff] %v2505_v59  ;;  %v1995_v3 = vmin.f32 %v1483_v61, 6.0  ;;  %v977_v5 = vadd.f32 3.0, %v465_v57  ;;  %v468_v8 = vld [vmem:[%s3615_s3 + $0x9c8] sm:$0xff] }
 0x1ac   : > { %3018 = vst [vmem:[%s3637_s16 + $0x978] sm:$0xff] %v2506_v60  ;;  %v1488_v4 = vmax.f32 %v976_v62, 0.0  ;;  %v978_v6 = vadd.f32 3.0, %v466_v58  ;;  %v469_v9 = vld [vmem:[%s3615_s3 + $0x9d0] sm:$0xff]  ;;  %v1996_v10 = vmin.f32 %v1484_v63, 6.0  ;;  %v1997_v11 = vmin.f32 %v1485_v0, 6.0 }
 0x1ad   : > { %v1998_v12 = vmin.f32 %v1486_v1, 6.0  ;;  %v1999_v13 = vmin.f32 %v1487_v2, 6.0  ;;  %v470_v14 = vld [vmem:[%s3615_s3 + $0x9d8] sm:$0xff]  ;;  %v471_v15 = vld [vmem:[%s3615_s3 + $0x9e0] sm:$0xff]  ;;  %v2507_v16 = vmul.f32 0.16666667, %v1995_v3 }
 0x1ae   : > { %v2000_v17 = vmin.f32 %v1488_v4, 6.0  ;;  %v1489_v18 = vmax.f32 %v977_v5, 0.0  ;;  %v1490_v19 = vmax.f32 %v978_v6, 0.0  ;;  %v472_v20 = vld [vmem:[%s3615_s3 + $0x9e8] sm:$0xff]  ;;  %v2508_v21 = vmul.f32 0.16666667, %v1996_v10 }
 0x1af   : > { %v2509_v22 = vmul.f32 0.16666667, %v1997_v11  ;;  %v2510_v23 = vmul.f32 0.16666667, %v1998_v12  ;;  %3019 = vst [vmem:[%s3637_s16 + $0x980] sm:$0xff] %v2507_v16  ;;  %v979_v28 = vadd.f32 3.0, %v467_v7 }
 0x1b0   : > { %v2511_v24 = vmul.f32 0.16666667, %v1999_v13  ;;  %v2512_v25 = vmul.f32 0.16666667, %v2000_v17  ;;  %v2001_v26 = vmin.f32 %v1489_v18, 6.0  ;;  %v2002_v27 = vmin.f32 %v1490_v19, 6.0 }
 0x1b1   : > { %3020 = vst [vmem:[%s3637_s16 + $0x988] sm:$0xff] %v2508_v21  ;;  %3021 = vst [vmem:[%s3637_s16 + $0x990] sm:$0xff] %v2509_v22  ;;  %v980_v29 = vadd.f32 3.0, %v468_v8  ;;  %v981_v30 = vadd.f32 3.0, %v469_v9  ;;  %v982_v31 = vadd.f32 3.0, %v470_v14  ;;  %v473_v32 = vld [vmem:[%s3615_s3 + $0x9f0] sm:$0xff] }
 0x1b2   : > { %3022 = vst [vmem:[%s3637_s16 + $0x998] sm:$0xff] %v2510_v23  ;;  %v474_v33 = vld [vmem:[%s3615_s3 + $0x9f8] sm:$0xff]  ;;  %3023 = vst [vmem:[%s3637_s16 + $0x9a0] sm:$0xff] %v2511_v24  ;;  %v2513_v34 = vmul.f32 0.16666667, %v2001_v26  ;;  %v983_v36 = vadd.f32 3.0, %v471_v15 }
 0x1b3   : > { %3024 = vst [vmem:[%s3637_s16 + $0x9a8] sm:$0xff] %v2512_v25  ;;  %v2514_v35 = vmul.f32 0.16666667, %v2002_v27  ;;  %v984_v37 = vadd.f32 3.0, %v472_v20  ;;  %v1491_v38 = vmax.f32 %v979_v28, 0.0  ;;  %v1492_v39 = vmax.f32 %v980_v29, 0.0 }
 0x1b4   : > { %v1493_v40 = vmax.f32 %v981_v30, 0.0  ;;  %v1494_v41 = vmax.f32 %v982_v31, 0.0  ;;  %3025 = vst [vmem:[%s3637_s16 + $0x9b0] sm:$0xff] %v2513_v34  ;;  %v1495_v42 = vmax.f32 %v983_v36, 0.0  ;;  %v985_v44 = vadd.f32 3.0, %v473_v32  ;;  %v475_v46 = vld [vmem:[%s3615_s3 + $0xa00] sm:$0xff] }
 0x1b5   : > { %3026 = vst [vmem:[%s3637_s16 + $0x9b8] sm:$0xff] %v2514_v35  ;;  %v1496_v43 = vmax.f32 %v984_v37, 0.0  ;;  %v986_v45 = vadd.f32 3.0, %v474_v33  ;;  %v476_v47 = vld [vmem:[%s3615_s3 + $0xa08] sm:$0xff]  ;;  %v2003_v48 = vmin.f32 %v1491_v38, 6.0  ;;  %v2004_v49 = vmin.f32 %v1492_v39, 6.0 }
 0x1b6   : > { %v2005_v50 = vmin.f32 %v1493_v40, 6.0  ;;  %v2006_v51 = vmin.f32 %v1494_v41, 6.0  ;;  %v477_v52 = vld [vmem:[%s3615_s3 + $0xa10] sm:$0xff]  ;;  %v478_v53 = vld [vmem:[%s3615_s3 + $0xa18] sm:$0xff]  ;;  %v2007_v54 = vmin.f32 %v1495_v42, 6.0  ;;  %v1497_v56 = vmax.f32 %v985_v44, 0.0 }
 0x1b7   : > { %v2008_v55 = vmin.f32 %v1496_v43, 6.0  ;;  %v1498_v57 = vmax.f32 %v986_v45, 0.0  ;;  %v479_v58 = vld [vmem:[%s3615_s3 + $0xa20] sm:$0xff]  ;;  %v480_v59 = vld [vmem:[%s3615_s3 + $0xa28] sm:$0xff]  ;;  %v2515_v60 = vmul.f32 0.16666667, %v2003_v48 }
 0x1b8   : > { %v2516_v61 = vmul.f32 0.16666667, %v2004_v49  ;;  %v2517_v62 = vmul.f32 0.16666667, %v2005_v50  ;;  %v2518_v63 = vmul.f32 0.16666667, %v2006_v51 }
 0x1b9   : > { %v2519_v0 = vmul.f32 0.16666667, %v2007_v54  ;;  %v2520_v1 = vmul.f32 0.16666667, %v2008_v55  ;;  %3027 = vst [vmem:[%s3637_s16 + $0x9c0] sm:$0xff] %v2515_v60  ;;  %v2009_v2 = vmin.f32 %v1497_v56, 6.0 }
 0x1ba   : > { %3028 = vst [vmem:[%s3637_s16 + $0x9c8] sm:$0xff] %v2516_v61  ;;  %3029 = vst [vmem:[%s3637_s16 + $0x9d0] sm:$0xff] %v2517_v62  ;;  %v2010_v3 = vmin.f32 %v1498_v57, 6.0  ;;  %v987_v4 = vadd.f32 3.0, %v475_v46  ;;  %v988_v5 = vadd.f32 3.0, %v476_v47  ;;  %v989_v6 = vadd.f32 3.0, %v477_v52 }
 0x1bb   : > { %3030 = vst [vmem:[%s3637_s16 + $0x9d8] sm:$0xff] %v2518_v63  ;;  %3031 = vst [vmem:[%s3637_s16 + $0x9e0] sm:$0xff] %v2519_v0  ;;  %v990_v7 = vadd.f32 3.0, %v478_v53  ;;  %v991_v8 = vadd.f32 3.0, %v479_v58  ;;  %v992_v9 = vadd.f32 3.0, %v480_v59  ;;  %v481_v10 = vld [vmem:[%s3615_s3 + $0xa30] sm:$0xff] }
 0x1bc   : > { %3032 = vst [vmem:[%s3637_s16 + $0x9e8] sm:$0xff] %v2520_v1  ;;  %v482_v11 = vld [vmem:[%s3615_s3 + $0xa38] sm:$0xff]  ;;  %v2521_v12 = vmul.f32 0.16666667, %v2009_v2  ;;  %v2522_v13 = vmul.f32 0.16666667, %v2010_v3 }
 0x1bd   : > { %v1499_v14 = vmax.f32 %v987_v4, 0.0  ;;  %v1500_v15 = vmax.f32 %v988_v5, 0.0  ;;  %v1501_v16 = vmax.f32 %v989_v6, 0.0  ;;  %v1502_v17 = vmax.f32 %v990_v7, 0.0  ;;  %v483_v20 = vld [vmem:[%s3615_s3 + $0xa40] sm:$0xff]  ;;  %v484_v25 = vld [vmem:[%s3615_s3 + $0xa48] sm:$0xff] }
 0x1be   : > { %v1503_v18 = vmax.f32 %v991_v8, 0.0  ;;  %v1504_v19 = vmax.f32 %v992_v9, 0.0  ;;  %3033 = vst [vmem:[%s3637_s16 + $0x9f0] sm:$0xff] %v2521_v12  ;;  %3034 = vst [vmem:[%s3637_s16 + $0x9f8] sm:$0xff] %v2522_v13  ;;  %v993_v23 = vadd.f32 3.0, %v481_v10  ;;  %v994_v24 = vadd.f32 3.0, %v482_v11 }
 0x1bf   : > { %v2011_v21 = vmin.f32 %v1499_v14, 6.0  ;;  %v2012_v22 = vmin.f32 %v1500_v15, 6.0  ;;  %v485_v26 = vld [vmem:[%s3615_s3 + $0xa50] sm:$0xff]  ;;  %v486_v27 = vld [vmem:[%s3615_s3 + $0xa58] sm:$0xff]  ;;  %v2013_v28 = vmin.f32 %v1501_v16, 6.0  ;;  %v2014_v29 = vmin.f32 %v1502_v17, 6.0 }
 0x1c0   : > { %v2015_v30 = vmin.f32 %v1503_v18, 6.0  ;;  %v2016_v31 = vmin.f32 %v1504_v19, 6.0  ;;  %v487_v32 = vld [vmem:[%s3615_s3 + $0xa60] sm:$0xff]  ;;  %v488_v33 = vld [vmem:[%s3615_s3 + $0xa68] sm:$0xff]  ;;  %v1505_v36 = vmax.f32 %v993_v23, 0.0  ;;  %v1506_v37 = vmax.f32 %v994_v24, 0.0 }
 0x1c1   : > { %v2523_v34 = vmul.f32 0.16666667, %v2011_v21  ;;  %v2524_v35 = vmul.f32 0.16666667, %v2012_v22  ;;  %v2525_v38 = vmul.f32 0.16666667, %v2013_v28 }
 0x1c2   : > { %v2526_v39 = vmul.f32 0.16666667, %v2014_v29  ;;  %v2527_v40 = vmul.f32 0.16666667, %v2015_v30  ;;  %v2528_v41 = vmul.f32 0.16666667, %v2016_v31 }
 0x1c3   : > { %3035 = vst [vmem:[%s3637_s16 + $0xa00] sm:$0xff] %v2523_v34  ;;  %3036 = vst [vmem:[%s3637_s16 + $0xa08] sm:$0xff] %v2524_v35  ;;  %v2017_v42 = vmin.f32 %v1505_v36, 6.0  ;;  %v2018_v43 = vmin.f32 %v1506_v37, 6.0  ;;  %v995_v44 = vadd.f32 3.0, %v483_v20  ;;  %v996_v45 = vadd.f32 3.0, %v484_v25 }
 0x1c4   : > { %3037 = vst [vmem:[%s3637_s16 + $0xa10] sm:$0xff] %v2525_v38  ;;  %3038 = vst [vmem:[%s3637_s16 + $0xa18] sm:$0xff] %v2526_v39  ;;  %v997_v46 = vadd.f32 3.0, %v485_v26  ;;  %v998_v47 = vadd.f32 3.0, %v486_v27  ;;  %v999_v48 = vadd.f32 3.0, %v487_v32  ;;  %v489_v49 = vld [vmem:[%s3615_s3 + $0xa70] sm:$0xff] }
 0x1c5   : > { %3039 = vst [vmem:[%s3637_s16 + $0xa20] sm:$0xff] %v2527_v40  ;;  %v490_v50 = vld [vmem:[%s3615_s3 + $0xa78] sm:$0xff]  ;;  %3040 = vst [vmem:[%s3637_s16 + $0xa28] sm:$0xff] %v2528_v41  ;;  %v2529_v51 = vmul.f32 0.16666667, %v2017_v42  ;;  %v1507_v53 = vmax.f32 %v995_v44, 0.0 }
 0x1c6   : > { %v2530_v52 = vmul.f32 0.16666667, %v2018_v43  ;;  %v1000_v54 = vadd.f32 3.0, %v488_v33  ;;  %v1508_v55 = vmax.f32 %v996_v45, 0.0  ;;  %v1509_v56 = vmax.f32 %v997_v46, 0.0  ;;  %v491_v63 = vld [vmem:[%s3615_s3 + $0xa80] sm:$0xff] }
 0x1c7   : > { %v1510_v57 = vmax.f32 %v998_v47, 0.0  ;;  %v1511_v58 = vmax.f32 %v999_v48, 0.0  ;;  %3041 = vst [vmem:[%s3637_s16 + $0xa30] sm:$0xff] %v2529_v51  ;;  %v2019_v59 = vmin.f32 %v1507_v53, 6.0  ;;  %v1001_v61 = vadd.f32 3.0, %v489_v49  ;;  %v492_v0 = vld [vmem:[%s3615_s3 + $0xa88] sm:$0xff] }
 0x1c8   : > { %3042 = vst [vmem:[%s3637_s16 + $0xa38] sm:$0xff] %v2530_v52  ;;  %v1512_v60 = vmax.f32 %v1000_v54, 0.0  ;;  %v1002_v62 = vadd.f32 3.0, %v490_v50  ;;  %v493_v1 = vld [vmem:[%s3615_s3 + $0xa90] sm:$0xff]  ;;  %v2020_v2 = vmin.f32 %v1508_v55, 6.0  ;;  %v2021_v3 = vmin.f32 %v1509_v56, 6.0 }
 0x1c9   : > { %v2022_v4 = vmin.f32 %v1510_v57, 6.0  ;;  %v2023_v5 = vmin.f32 %v1511_v58, 6.0  ;;  %v494_v6 = vld [vmem:[%s3615_s3 + $0xa98] sm:$0xff]  ;;  %v495_v7 = vld [vmem:[%s3615_s3 + $0xaa0] sm:$0xff]  ;;  %v2531_v8 = vmul.f32 0.16666667, %v2019_v59 }
 0x1ca   : > { %v2024_v9 = vmin.f32 %v1512_v60, 6.0  ;;  %v1513_v10 = vmax.f32 %v1001_v61, 0.0  ;;  %v1514_v11 = vmax.f32 %v1002_v62, 0.0  ;;  %v496_v12 = vld [vmem:[%s3615_s3 + $0xaa8] sm:$0xff]  ;;  %v2532_v13 = vmul.f32 0.16666667, %v2020_v2 }
 0x1cb   : > { %v2533_v14 = vmul.f32 0.16666667, %v2021_v3  ;;  %v2534_v15 = vmul.f32 0.16666667, %v2022_v4  ;;  %3043 = vst [vmem:[%s3637_s16 + $0xa40] sm:$0xff] %v2531_v8  ;;  %v1003_v20 = vadd.f32 3.0, %v491_v63 }
 0x1cc   : > { %v2535_v16 = vmul.f32 0.16666667, %v2023_v5  ;;  %v2536_v17 = vmul.f32 0.16666667, %v2024_v9  ;;  %v2025_v18 = vmin.f32 %v1513_v10, 6.0  ;;  %v2026_v19 = vmin.f32 %v1514_v11, 6.0 }
 0x1cd   : > { %3044 = vst [vmem:[%s3637_s16 + $0xa48] sm:$0xff] %v2532_v13  ;;  %3045 = vst [vmem:[%s3637_s16 + $0xa50] sm:$0xff] %v2533_v14  ;;  %v1004_v21 = vadd.f32 3.0, %v492_v0  ;;  %v1005_v22 = vadd.f32 3.0, %v493_v1  ;;  %v1006_v23 = vadd.f32 3.0, %v494_v6  ;;  %v497_v24 = vld [vmem:[%s3615_s3 + $0xab0] sm:$0xff] }
 0x1ce   : > { %3046 = vst [vmem:[%s3637_s16 + $0xa58] sm:$0xff] %v2534_v15  ;;  %v498_v25 = vld [vmem:[%s3615_s3 + $0xab8] sm:$0xff]  ;;  %3047 = vst [vmem:[%s3637_s16 + $0xa60] sm:$0xff] %v2535_v16  ;;  %v2537_v26 = vmul.f32 0.16666667, %v2025_v18  ;;  %v1007_v28 = vadd.f32 3.0, %v495_v7 }
 0x1cf   : > { %3048 = vst [vmem:[%s3637_s16 + $0xa68] sm:$0xff] %v2536_v17  ;;  %v2538_v27 = vmul.f32 0.16666667, %v2026_v19  ;;  %v1008_v29 = vadd.f32 3.0, %v496_v12  ;;  %v1515_v30 = vmax.f32 %v1003_v20, 0.0  ;;  %v1516_v31 = vmax.f32 %v1004_v21, 0.0 }
 0x1d0   : > { %v1517_v32 = vmax.f32 %v1005_v22, 0.0  ;;  %v1518_v33 = vmax.f32 %v1006_v23, 0.0  ;;  %3049 = vst [vmem:[%s3637_s16 + $0xa70] sm:$0xff] %v2537_v26  ;;  %v1519_v34 = vmax.f32 %v1007_v28, 0.0  ;;  %v1009_v36 = vadd.f32 3.0, %v497_v24  ;;  %v499_v38 = vld [vmem:[%s3615_s3 + $0xac0] sm:$0xff] }
 0x1d1   : > { %3050 = vst [vmem:[%s3637_s16 + $0xa78] sm:$0xff] %v2538_v27  ;;  %v1520_v35 = vmax.f32 %v1008_v29, 0.0  ;;  %v1010_v37 = vadd.f32 3.0, %v498_v25  ;;  %v500_v39 = vld [vmem:[%s3615_s3 + $0xac8] sm:$0xff]  ;;  %v2027_v40 = vmin.f32 %v1515_v30, 6.0  ;;  %v2028_v41 = vmin.f32 %v1516_v31, 6.0 }
 0x1d2   : > { %v2029_v42 = vmin.f32 %v1517_v32, 6.0  ;;  %v2030_v43 = vmin.f32 %v1518_v33, 6.0  ;;  %v501_v44 = vld [vmem:[%s3615_s3 + $0xad0] sm:$0xff]  ;;  %v502_v45 = vld [vmem:[%s3615_s3 + $0xad8] sm:$0xff]  ;;  %v2031_v46 = vmin.f32 %v1519_v34, 6.0  ;;  %v1521_v48 = vmax.f32 %v1009_v36, 0.0 }
 0x1d3   : > { %v2032_v47 = vmin.f32 %v1520_v35, 6.0  ;;  %v1522_v49 = vmax.f32 %v1010_v37, 0.0  ;;  %v503_v50 = vld [vmem:[%s3615_s3 + $0xae0] sm:$0xff]  ;;  %v504_v51 = vld [vmem:[%s3615_s3 + $0xae8] sm:$0xff]  ;;  %v2539_v52 = vmul.f32 0.16666667, %v2027_v40 }
 0x1d4   : > { %v2540_v53 = vmul.f32 0.16666667, %v2028_v41  ;;  %v2541_v54 = vmul.f32 0.16666667, %v2029_v42  ;;  %v2542_v55 = vmul.f32 0.16666667, %v2030_v43 }
 0x1d5   : > { %v2543_v56 = vmul.f32 0.16666667, %v2031_v46  ;;  %v2544_v57 = vmul.f32 0.16666667, %v2032_v47  ;;  %3051 = vst [vmem:[%s3637_s16 + $0xa80] sm:$0xff] %v2539_v52  ;;  %v2033_v58 = vmin.f32 %v1521_v48, 6.0 }
 0x1d6   : > { %3052 = vst [vmem:[%s3637_s16 + $0xa88] sm:$0xff] %v2540_v53  ;;  %3053 = vst [vmem:[%s3637_s16 + $0xa90] sm:$0xff] %v2541_v54  ;;  %v2034_v59 = vmin.f32 %v1522_v49, 6.0  ;;  %v1011_v60 = vadd.f32 3.0, %v499_v38  ;;  %v1012_v61 = vadd.f32 3.0, %v500_v39  ;;  %v1013_v62 = vadd.f32 3.0, %v501_v44 }
 0x1d7   : > { %3054 = vst [vmem:[%s3637_s16 + $0xa98] sm:$0xff] %v2542_v55  ;;  %3055 = vst [vmem:[%s3637_s16 + $0xaa0] sm:$0xff] %v2543_v56  ;;  %v1014_v63 = vadd.f32 3.0, %v502_v45  ;;  %v1015_v0 = vadd.f32 3.0, %v503_v50  ;;  %v1016_v1 = vadd.f32 3.0, %v504_v51  ;;  %v505_v2 = vld [vmem:[%s3615_s3 + $0xaf0] sm:$0xff] }
 0x1d8   : > { %3056 = vst [vmem:[%s3637_s16 + $0xaa8] sm:$0xff] %v2544_v57  ;;  %v506_v3 = vld [vmem:[%s3615_s3 + $0xaf8] sm:$0xff]  ;;  %v2545_v4 = vmul.f32 0.16666667, %v2033_v58  ;;  %v2546_v5 = vmul.f32 0.16666667, %v2034_v59 }
 0x1d9   : > { %v1523_v6 = vmax.f32 %v1011_v60, 0.0  ;;  %v1524_v7 = vmax.f32 %v1012_v61, 0.0  ;;  %v1525_v8 = vmax.f32 %v1013_v62, 0.0  ;;  %v1526_v9 = vmax.f32 %v1014_v63, 0.0  ;;  %v507_v12 = vld [vmem:[%s3615_s3 + $0xb00] sm:$0xff]  ;;  %v508_v17 = vld [vmem:[%s3615_s3 + $0xb08] sm:$0xff] }
 0x1da   : > { %v1527_v10 = vmax.f32 %v1015_v0, 0.0  ;;  %v1528_v11 = vmax.f32 %v1016_v1, 0.0  ;;  %3057 = vst [vmem:[%s3637_s16 + $0xab0] sm:$0xff] %v2545_v4  ;;  %3058 = vst [vmem:[%s3637_s16 + $0xab8] sm:$0xff] %v2546_v5  ;;  %v1017_v15 = vadd.f32 3.0, %v505_v2  ;;  %v1018_v16 = vadd.f32 3.0, %v506_v3 }
 0x1db   : > { %v2035_v13 = vmin.f32 %v1523_v6, 6.0  ;;  %v2036_v14 = vmin.f32 %v1524_v7, 6.0  ;;  %v509_v18 = vld [vmem:[%s3615_s3 + $0xb10] sm:$0xff]  ;;  %v510_v19 = vld [vmem:[%s3615_s3 + $0xb18] sm:$0xff]  ;;  %v2037_v20 = vmin.f32 %v1525_v8, 6.0  ;;  %v2038_v21 = vmin.f32 %v1526_v9, 6.0 }
 0x1dc   : > { %v2039_v22 = vmin.f32 %v1527_v10, 6.0  ;;  %v2040_v23 = vmin.f32 %v1528_v11, 6.0  ;;  %v511_v24 = vld [vmem:[%s3615_s3 + $0xb20] sm:$0xff]  ;;  %v512_v25 = vld [vmem:[%s3615_s3 + $0xb28] sm:$0xff]  ;;  %v1529_v28 = vmax.f32 %v1017_v15, 0.0  ;;  %v1530_v29 = vmax.f32 %v1018_v16, 0.0 }
 0x1dd   : > { %v2547_v26 = vmul.f32 0.16666667, %v2035_v13  ;;  %v2548_v27 = vmul.f32 0.16666667, %v2036_v14  ;;  %v2549_v30 = vmul.f32 0.16666667, %v2037_v20 }
 0x1de   : > { %v2550_v31 = vmul.f32 0.16666667, %v2038_v21  ;;  %v2551_v32 = vmul.f32 0.16666667, %v2039_v22  ;;  %v2552_v33 = vmul.f32 0.16666667, %v2040_v23 }
 0x1df   : > { %3059 = vst [vmem:[%s3637_s16 + $0xac0] sm:$0xff] %v2547_v26  ;;  %3060 = vst [vmem:[%s3637_s16 + $0xac8] sm:$0xff] %v2548_v27  ;;  %v2041_v34 = vmin.f32 %v1529_v28, 6.0  ;;  %v2042_v35 = vmin.f32 %v1530_v29, 6.0  ;;  %v1019_v36 = vadd.f32 3.0, %v507_v12  ;;  %v1020_v37 = vadd.f32 3.0, %v508_v17 }
 0x1e0   : > { %3061 = vst [vmem:[%s3637_s16 + $0xad0] sm:$0xff] %v2549_v30  ;;  %3062 = vst [vmem:[%s3637_s16 + $0xad8] sm:$0xff] %v2550_v31  ;;  %v1021_v38 = vadd.f32 3.0, %v509_v18  ;;  %v1022_v39 = vadd.f32 3.0, %v510_v19  ;;  %v1023_v40 = vadd.f32 3.0, %v511_v24  ;;  %v513_v41 = vld [vmem:[%s3615_s3 + $0xb30] sm:$0xff] }
 0x1e1   : > { %3063 = vst [vmem:[%s3637_s16 + $0xae0] sm:$0xff] %v2551_v32  ;;  %v514_v42 = vld [vmem:[%s3615_s3 + $0xb38] sm:$0xff]  ;;  %3064 = vst [vmem:[%s3637_s16 + $0xae8] sm:$0xff] %v2552_v33  ;;  %v2553_v43 = vmul.f32 0.16666667, %v2041_v34  ;;  %v1531_v45 = vmax.f32 %v1019_v36, 0.0 }
 0x1e2   : > { %v2554_v44 = vmul.f32 0.16666667, %v2042_v35  ;;  %v1024_v46 = vadd.f32 3.0, %v512_v25  ;;  %v1532_v47 = vmax.f32 %v1020_v37, 0.0  ;;  %v1533_v48 = vmax.f32 %v1021_v38, 0.0  ;;  %v515_v55 = vld [vmem:[%s3615_s3 + $0xb40] sm:$0xff] }
 0x1e3   : > { %v1534_v49 = vmax.f32 %v1022_v39, 0.0  ;;  %v1535_v50 = vmax.f32 %v1023_v40, 0.0  ;;  %3065 = vst [vmem:[%s3637_s16 + $0xaf0] sm:$0xff] %v2553_v43  ;;  %v2043_v51 = vmin.f32 %v1531_v45, 6.0  ;;  %v1025_v53 = vadd.f32 3.0, %v513_v41  ;;  %v516_v56 = vld [vmem:[%s3615_s3 + $0xb48] sm:$0xff] }
 0x1e4   : > { %3066 = vst [vmem:[%s3637_s16 + $0xaf8] sm:$0xff] %v2554_v44  ;;  %v1536_v52 = vmax.f32 %v1024_v46, 0.0  ;;  %v1026_v54 = vadd.f32 3.0, %v514_v42  ;;  %v517_v57 = vld [vmem:[%s3615_s3 + $0xb50] sm:$0xff]  ;;  %v2044_v58 = vmin.f32 %v1532_v47, 6.0  ;;  %v2045_v59 = vmin.f32 %v1533_v48, 6.0 }
 0x1e5   : > { %v2046_v60 = vmin.f32 %v1534_v49, 6.0  ;;  %v2047_v61 = vmin.f32 %v1535_v50, 6.0  ;;  %v518_v62 = vld [vmem:[%s3615_s3 + $0xb58] sm:$0xff]  ;;  %v519_v63 = vld [vmem:[%s3615_s3 + $0xb60] sm:$0xff]  ;;  %v2555_v0 = vmul.f32 0.16666667, %v2043_v51 }
 0x1e6   : > { %v2048_v1 = vmin.f32 %v1536_v52, 6.0  ;;  %v1537_v2 = vmax.f32 %v1025_v53, 0.0  ;;  %v1538_v3 = vmax.f32 %v1026_v54, 0.0  ;;  %v520_v4 = vld [vmem:[%s3615_s3 + $0xb68] sm:$0xff]  ;;  %v2556_v5 = vmul.f32 0.16666667, %v2044_v58 }
 0x1e7   : > { %v2557_v6 = vmul.f32 0.16666667, %v2045_v59  ;;  %v2558_v7 = vmul.f32 0.16666667, %v2046_v60  ;;  %3067 = vst [vmem:[%s3637_s16 + $0xb00] sm:$0xff] %v2555_v0  ;;  %v1027_v12 = vadd.f32 3.0, %v515_v55 }
 0x1e8   : > { %v2559_v8 = vmul.f32 0.16666667, %v2047_v61  ;;  %v2560_v9 = vmul.f32 0.16666667, %v2048_v1  ;;  %v2049_v10 = vmin.f32 %v1537_v2, 6.0  ;;  %v2050_v11 = vmin.f32 %v1538_v3, 6.0 }
 0x1e9   : > { %3068 = vst [vmem:[%s3637_s16 + $0xb08] sm:$0xff] %v2556_v5  ;;  %3069 = vst [vmem:[%s3637_s16 + $0xb10] sm:$0xff] %v2557_v6  ;;  %v1028_v13 = vadd.f32 3.0, %v516_v56  ;;  %v1029_v14 = vadd.f32 3.0, %v517_v57  ;;  %v1030_v15 = vadd.f32 3.0, %v518_v62  ;;  %v521_v16 = vld [vmem:[%s3615_s3 + $0xb70] sm:$0xff] }
 0x1ea   : > { %3070 = vst [vmem:[%s3637_s16 + $0xb18] sm:$0xff] %v2558_v7  ;;  %v522_v17 = vld [vmem:[%s3615_s3 + $0xb78] sm:$0xff]  ;;  %3071 = vst [vmem:[%s3637_s16 + $0xb20] sm:$0xff] %v2559_v8  ;;  %v2561_v18 = vmul.f32 0.16666667, %v2049_v10  ;;  %v1031_v20 = vadd.f32 3.0, %v519_v63 }
 0x1eb   : > { %3072 = vst [vmem:[%s3637_s16 + $0xb28] sm:$0xff] %v2560_v9  ;;  %v2562_v19 = vmul.f32 0.16666667, %v2050_v11  ;;  %v1032_v21 = vadd.f32 3.0, %v520_v4  ;;  %v1539_v22 = vmax.f32 %v1027_v12, 0.0  ;;  %v1540_v23 = vmax.f32 %v1028_v13, 0.0 }
 0x1ec   : > { %v1541_v24 = vmax.f32 %v1029_v14, 0.0  ;;  %v1542_v25 = vmax.f32 %v1030_v15, 0.0  ;;  %3073 = vst [vmem:[%s3637_s16 + $0xb30] sm:$0xff] %v2561_v18  ;;  %v1543_v26 = vmax.f32 %v1031_v20, 0.0  ;;  %v1033_v28 = vadd.f32 3.0, %v521_v16  ;;  %v523_v30 = vld [vmem:[%s3615_s3 + $0xb80] sm:$0xff] }
 0x1ed   : > { %3074 = vst [vmem:[%s3637_s16 + $0xb38] sm:$0xff] %v2562_v19  ;;  %v1544_v27 = vmax.f32 %v1032_v21, 0.0  ;;  %v1034_v29 = vadd.f32 3.0, %v522_v17  ;;  %v524_v31 = vld [vmem:[%s3615_s3 + $0xb88] sm:$0xff]  ;;  %v2051_v32 = vmin.f32 %v1539_v22, 6.0  ;;  %v2052_v33 = vmin.f32 %v1540_v23, 6.0 }
 0x1ee   : > { %v2053_v34 = vmin.f32 %v1541_v24, 6.0  ;;  %v2054_v35 = vmin.f32 %v1542_v25, 6.0  ;;  %v525_v36 = vld [vmem:[%s3615_s3 + $0xb90] sm:$0xff]  ;;  %v526_v37 = vld [vmem:[%s3615_s3 + $0xb98] sm:$0xff]  ;;  %v2055_v38 = vmin.f32 %v1543_v26, 6.0  ;;  %v1545_v40 = vmax.f32 %v1033_v28, 0.0 }
 0x1ef   : > { %v2056_v39 = vmin.f32 %v1544_v27, 6.0  ;;  %v1546_v41 = vmax.f32 %v1034_v29, 0.0  ;;  %v527_v42 = vld [vmem:[%s3615_s3 + $0xba0] sm:$0xff]  ;;  %v528_v43 = vld [vmem:[%s3615_s3 + $0xba8] sm:$0xff]  ;;  %v2563_v44 = vmul.f32 0.16666667, %v2051_v32 }
 0x1f0   : > { %v2564_v45 = vmul.f32 0.16666667, %v2052_v33  ;;  %v2565_v46 = vmul.f32 0.16666667, %v2053_v34  ;;  %v2566_v47 = vmul.f32 0.16666667, %v2054_v35 }
 0x1f1   : > { %v2567_v48 = vmul.f32 0.16666667, %v2055_v38  ;;  %v2568_v49 = vmul.f32 0.16666667, %v2056_v39  ;;  %3075 = vst [vmem:[%s3637_s16 + $0xb40] sm:$0xff] %v2563_v44  ;;  %v2057_v50 = vmin.f32 %v1545_v40, 6.0 }
 0x1f2   : > { %3076 = vst [vmem:[%s3637_s16 + $0xb48] sm:$0xff] %v2564_v45  ;;  %3077 = vst [vmem:[%s3637_s16 + $0xb50] sm:$0xff] %v2565_v46  ;;  %v2058_v51 = vmin.f32 %v1546_v41, 6.0  ;;  %v1035_v52 = vadd.f32 3.0, %v523_v30  ;;  %v1036_v53 = vadd.f32 3.0, %v524_v31  ;;  %v1037_v54 = vadd.f32 3.0, %v525_v36 }
 0x1f3   : > { %3078 = vst [vmem:[%s3637_s16 + $0xb58] sm:$0xff] %v2566_v47  ;;  %3079 = vst [vmem:[%s3637_s16 + $0xb60] sm:$0xff] %v2567_v48  ;;  %v1038_v55 = vadd.f32 3.0, %v526_v37  ;;  %v1039_v56 = vadd.f32 3.0, %v527_v42  ;;  %v1040_v57 = vadd.f32 3.0, %v528_v43  ;;  %v529_v58 = vld [vmem:[%s3615_s3 + $0xbb0] sm:$0xff] }
 0x1f4   : > { %3080 = vst [vmem:[%s3637_s16 + $0xb68] sm:$0xff] %v2568_v49  ;;  %v530_v59 = vld [vmem:[%s3615_s3 + $0xbb8] sm:$0xff]  ;;  %v2569_v60 = vmul.f32 0.16666667, %v2057_v50  ;;  %v2570_v61 = vmul.f32 0.16666667, %v2058_v51 }
 0x1f5   : > { %v1547_v62 = vmax.f32 %v1035_v52, 0.0  ;;  %v1548_v63 = vmax.f32 %v1036_v53, 0.0  ;;  %v1549_v0 = vmax.f32 %v1037_v54, 0.0  ;;  %v1550_v1 = vmax.f32 %v1038_v55, 0.0  ;;  %v531_v4 = vld [vmem:[%s3615_s3 + $0xbc0] sm:$0xff]  ;;  %v532_v9 = vld [vmem:[%s3615_s3 + $0xbc8] sm:$0xff] }
 0x1f6   : > { %v1551_v2 = vmax.f32 %v1039_v56, 0.0  ;;  %v1552_v3 = vmax.f32 %v1040_v57, 0.0  ;;  %3081 = vst [vmem:[%s3637_s16 + $0xb70] sm:$0xff] %v2569_v60  ;;  %3082 = vst [vmem:[%s3637_s16 + $0xb78] sm:$0xff] %v2570_v61  ;;  %v1041_v7 = vadd.f32 3.0, %v529_v58  ;;  %v1042_v8 = vadd.f32 3.0, %v530_v59 }
 0x1f7   : > { %v2059_v5 = vmin.f32 %v1547_v62, 6.0  ;;  %v2060_v6 = vmin.f32 %v1548_v63, 6.0  ;;  %v533_v10 = vld [vmem:[%s3615_s3 + $0xbd0] sm:$0xff]  ;;  %v534_v11 = vld [vmem:[%s3615_s3 + $0xbd8] sm:$0xff]  ;;  %v2061_v12 = vmin.f32 %v1549_v0, 6.0  ;;  %v2062_v13 = vmin.f32 %v1550_v1, 6.0 }
 0x1f8   : > { %v2063_v14 = vmin.f32 %v1551_v2, 6.0  ;;  %v2064_v15 = vmin.f32 %v1552_v3, 6.0  ;;  %v535_v16 = vld [vmem:[%s3615_s3 + $0xbe0] sm:$0xff]  ;;  %v536_v17 = vld [vmem:[%s3615_s3 + $0xbe8] sm:$0xff]  ;;  %v1553_v20 = vmax.f32 %v1041_v7, 0.0  ;;  %v1554_v21 = vmax.f32 %v1042_v8, 0.0 }
 0x1f9   : > { %v2571_v18 = vmul.f32 0.16666667, %v2059_v5  ;;  %v2572_v19 = vmul.f32 0.16666667, %v2060_v6  ;;  %v2573_v22 = vmul.f32 0.16666667, %v2061_v12 }
 0x1fa   : > { %v2574_v23 = vmul.f32 0.16666667, %v2062_v13  ;;  %v2575_v24 = vmul.f32 0.16666667, %v2063_v14  ;;  %v2576_v25 = vmul.f32 0.16666667, %v2064_v15 }
 0x1fb   : > { %3083 = vst [vmem:[%s3637_s16 + $0xb80] sm:$0xff] %v2571_v18  ;;  %3084 = vst [vmem:[%s3637_s16 + $0xb88] sm:$0xff] %v2572_v19  ;;  %v2065_v26 = vmin.f32 %v1553_v20, 6.0  ;;  %v2066_v27 = vmin.f32 %v1554_v21, 6.0  ;;  %v1043_v28 = vadd.f32 3.0, %v531_v4  ;;  %v1044_v29 = vadd.f32 3.0, %v532_v9 }
 0x1fc   : > { %3085 = vst [vmem:[%s3637_s16 + $0xb90] sm:$0xff] %v2573_v22  ;;  %3086 = vst [vmem:[%s3637_s16 + $0xb98] sm:$0xff] %v2574_v23  ;;  %v1045_v30 = vadd.f32 3.0, %v533_v10  ;;  %v1046_v31 = vadd.f32 3.0, %v534_v11  ;;  %v1047_v32 = vadd.f32 3.0, %v535_v16  ;;  %v537_v33 = vld [vmem:[%s3615_s3 + $0xbf0] sm:$0xff] }
 0x1fd   : > { %3087 = vst [vmem:[%s3637_s16 + $0xba0] sm:$0xff] %v2575_v24  ;;  %v538_v34 = vld [vmem:[%s3615_s3 + $0xbf8] sm:$0xff]  ;;  %3088 = vst [vmem:[%s3637_s16 + $0xba8] sm:$0xff] %v2576_v25  ;;  %v2577_v35 = vmul.f32 0.16666667, %v2065_v26  ;;  %v1555_v37 = vmax.f32 %v1043_v28, 0.0 }
 0x1fe   : > { %v2578_v36 = vmul.f32 0.16666667, %v2066_v27  ;;  %v1048_v38 = vadd.f32 3.0, %v536_v17  ;;  %v1556_v39 = vmax.f32 %v1044_v29, 0.0  ;;  %v1557_v40 = vmax.f32 %v1045_v30, 0.0  ;;  %v539_v47 = vld [vmem:[%s3615_s3 + $0xc00] sm:$0xff] }
 0x1ff   : > { %v1558_v41 = vmax.f32 %v1046_v31, 0.0  ;;  %v1559_v42 = vmax.f32 %v1047_v32, 0.0  ;;  %3089 = vst [vmem:[%s3637_s16 + $0xbb0] sm:$0xff] %v2577_v35  ;;  %v2067_v43 = vmin.f32 %v1555_v37, 6.0  ;;  %v1049_v45 = vadd.f32 3.0, %v537_v33  ;;  %v540_v48 = vld [vmem:[%s3615_s3 + $0xc08] sm:$0xff] }
 0x200   : > { %3090 = vst [vmem:[%s3637_s16 + $0xbb8] sm:$0xff] %v2578_v36  ;;  %v1560_v44 = vmax.f32 %v1048_v38, 0.0  ;;  %v1050_v46 = vadd.f32 3.0, %v538_v34  ;;  %v541_v49 = vld [vmem:[%s3615_s3 + $0xc10] sm:$0xff]  ;;  %v2068_v50 = vmin.f32 %v1556_v39, 6.0  ;;  %v2069_v51 = vmin.f32 %v1557_v40, 6.0 }
 0x201   : > { %v2070_v52 = vmin.f32 %v1558_v41, 6.0  ;;  %v2071_v53 = vmin.f32 %v1559_v42, 6.0  ;;  %v542_v54 = vld [vmem:[%s3615_s3 + $0xc18] sm:$0xff]  ;;  %v543_v55 = vld [vmem:[%s3615_s3 + $0xc20] sm:$0xff]  ;;  %v2579_v56 = vmul.f32 0.16666667, %v2067_v43 }
 0x202   : > { %v2072_v57 = vmin.f32 %v1560_v44, 6.0  ;;  %v1561_v58 = vmax.f32 %v1049_v45, 0.0  ;;  %v1562_v59 = vmax.f32 %v1050_v46, 0.0  ;;  %v544_v60 = vld [vmem:[%s3615_s3 + $0xc28] sm:$0xff]  ;;  %v2580_v61 = vmul.f32 0.16666667, %v2068_v50 }
 0x203   : > { %v2581_v62 = vmul.f32 0.16666667, %v2069_v51  ;;  %v2582_v63 = vmul.f32 0.16666667, %v2070_v52  ;;  %3091 = vst [vmem:[%s3637_s16 + $0xbc0] sm:$0xff] %v2579_v56  ;;  %v1051_v4 = vadd.f32 3.0, %v539_v47 }
 0x204   : > { %v2583_v0 = vmul.f32 0.16666667, %v2071_v53  ;;  %v2584_v1 = vmul.f32 0.16666667, %v2072_v57  ;;  %v2073_v2 = vmin.f32 %v1561_v58, 6.0  ;;  %v2074_v3 = vmin.f32 %v1562_v59, 6.0 }
 0x205   : > { %3092 = vst [vmem:[%s3637_s16 + $0xbc8] sm:$0xff] %v2580_v61  ;;  %3093 = vst [vmem:[%s3637_s16 + $0xbd0] sm:$0xff] %v2581_v62  ;;  %v1052_v5 = vadd.f32 3.0, %v540_v48  ;;  %v1053_v6 = vadd.f32 3.0, %v541_v49  ;;  %v1054_v7 = vadd.f32 3.0, %v542_v54  ;;  %v545_v8 = vld [vmem:[%s3615_s3 + $0xc30] sm:$0xff] }
 0x206   : > { %3094 = vst [vmem:[%s3637_s16 + $0xbd8] sm:$0xff] %v2582_v63  ;;  %v546_v9 = vld [vmem:[%s3615_s3 + $0xc38] sm:$0xff]  ;;  %3095 = vst [vmem:[%s3637_s16 + $0xbe0] sm:$0xff] %v2583_v0  ;;  %v2585_v10 = vmul.f32 0.16666667, %v2073_v2  ;;  %v1055_v12 = vadd.f32 3.0, %v543_v55 }
 0x207   : > { %3096 = vst [vmem:[%s3637_s16 + $0xbe8] sm:$0xff] %v2584_v1  ;;  %v2586_v11 = vmul.f32 0.16666667, %v2074_v3  ;;  %v1056_v13 = vadd.f32 3.0, %v544_v60  ;;  %v1563_v14 = vmax.f32 %v1051_v4, 0.0  ;;  %v1564_v15 = vmax.f32 %v1052_v5, 0.0 }
 0x208   : > { %v1565_v16 = vmax.f32 %v1053_v6, 0.0  ;;  %v1566_v17 = vmax.f32 %v1054_v7, 0.0  ;;  %3097 = vst [vmem:[%s3637_s16 + $0xbf0] sm:$0xff] %v2585_v10  ;;  %v1567_v18 = vmax.f32 %v1055_v12, 0.0  ;;  %v1057_v20 = vadd.f32 3.0, %v545_v8  ;;  %v547_v22 = vld [vmem:[%s3615_s3 + $0xc40] sm:$0xff] }
 0x209   : > { %3098 = vst [vmem:[%s3637_s16 + $0xbf8] sm:$0xff] %v2586_v11  ;;  %v1568_v19 = vmax.f32 %v1056_v13, 0.0  ;;  %v1058_v21 = vadd.f32 3.0, %v546_v9  ;;  %v548_v23 = vld [vmem:[%s3615_s3 + $0xc48] sm:$0xff]  ;;  %v2075_v24 = vmin.f32 %v1563_v14, 6.0  ;;  %v2076_v25 = vmin.f32 %v1564_v15, 6.0 }
 0x20a   : > { %v2077_v26 = vmin.f32 %v1565_v16, 6.0  ;;  %v2078_v27 = vmin.f32 %v1566_v17, 6.0  ;;  %v549_v28 = vld [vmem:[%s3615_s3 + $0xc50] sm:$0xff]  ;;  %v550_v29 = vld [vmem:[%s3615_s3 + $0xc58] sm:$0xff]  ;;  %v2079_v30 = vmin.f32 %v1567_v18, 6.0  ;;  %v1569_v32 = vmax.f32 %v1057_v20, 0.0 }
 0x20b   : > { %v2080_v31 = vmin.f32 %v1568_v19, 6.0  ;;  %v1570_v33 = vmax.f32 %v1058_v21, 0.0  ;;  %v551_v34 = vld [vmem:[%s3615_s3 + $0xc60] sm:$0xff]  ;;  %v552_v35 = vld [vmem:[%s3615_s3 + $0xc68] sm:$0xff]  ;;  %v2587_v36 = vmul.f32 0.16666667, %v2075_v24 }
 0x20c   : > { %v2588_v37 = vmul.f32 0.16666667, %v2076_v25  ;;  %v2589_v38 = vmul.f32 0.16666667, %v2077_v26  ;;  %v2590_v39 = vmul.f32 0.16666667, %v2078_v27 }
 0x20d   : > { %v2591_v40 = vmul.f32 0.16666667, %v2079_v30  ;;  %v2592_v41 = vmul.f32 0.16666667, %v2080_v31  ;;  %3099 = vst [vmem:[%s3637_s16 + $0xc00] sm:$0xff] %v2587_v36  ;;  %v2081_v42 = vmin.f32 %v1569_v32, 6.0 }
 0x20e   : > { %3100 = vst [vmem:[%s3637_s16 + $0xc08] sm:$0xff] %v2588_v37  ;;  %3101 = vst [vmem:[%s3637_s16 + $0xc10] sm:$0xff] %v2589_v38  ;;  %v2082_v43 = vmin.f32 %v1570_v33, 6.0  ;;  %v1059_v44 = vadd.f32 3.0, %v547_v22  ;;  %v1060_v45 = vadd.f32 3.0, %v548_v23  ;;  %v1061_v46 = vadd.f32 3.0, %v549_v28 }
 0x20f   : > { %3102 = vst [vmem:[%s3637_s16 + $0xc18] sm:$0xff] %v2590_v39  ;;  %3103 = vst [vmem:[%s3637_s16 + $0xc20] sm:$0xff] %v2591_v40  ;;  %v1062_v47 = vadd.f32 3.0, %v550_v29  ;;  %v1063_v48 = vadd.f32 3.0, %v551_v34  ;;  %v1064_v49 = vadd.f32 3.0, %v552_v35  ;;  %v553_v50 = vld [vmem:[%s3615_s3 + $0xc70] sm:$0xff] }
 0x210   : > { %3104 = vst [vmem:[%s3637_s16 + $0xc28] sm:$0xff] %v2592_v41  ;;  %v554_v51 = vld [vmem:[%s3615_s3 + $0xc78] sm:$0xff]  ;;  %v2593_v52 = vmul.f32 0.16666667, %v2081_v42  ;;  %v2594_v53 = vmul.f32 0.16666667, %v2082_v43 }
 0x211   : > { %v1571_v54 = vmax.f32 %v1059_v44, 0.0  ;;  %v1572_v55 = vmax.f32 %v1060_v45, 0.0  ;;  %v1573_v56 = vmax.f32 %v1061_v46, 0.0  ;;  %v1574_v57 = vmax.f32 %v1062_v47, 0.0  ;;  %v555_v60 = vld [vmem:[%s3615_s3 + $0xc80] sm:$0xff]  ;;  %v556_v1 = vld [vmem:[%s3615_s3 + $0xc88] sm:$0xff] }
 0x212   : > { %v1575_v58 = vmax.f32 %v1063_v48, 0.0  ;;  %v1576_v59 = vmax.f32 %v1064_v49, 0.0  ;;  %3105 = vst [vmem:[%s3637_s16 + $0xc30] sm:$0xff] %v2593_v52  ;;  %3106 = vst [vmem:[%s3637_s16 + $0xc38] sm:$0xff] %v2594_v53  ;;  %v1065_v63 = vadd.f32 3.0, %v553_v50  ;;  %v1066_v0 = vadd.f32 3.0, %v554_v51 }
 0x213   : > { %v2083_v61 = vmin.f32 %v1571_v54, 6.0  ;;  %v2084_v62 = vmin.f32 %v1572_v55, 6.0  ;;  %v557_v2 = vld [vmem:[%s3615_s3 + $0xc90] sm:$0xff]  ;;  %v558_v3 = vld [vmem:[%s3615_s3 + $0xc98] sm:$0xff]  ;;  %v2085_v4 = vmin.f32 %v1573_v56, 6.0  ;;  %v2086_v5 = vmin.f32 %v1574_v57, 6.0 }
 0x214   : > { %v2087_v6 = vmin.f32 %v1575_v58, 6.0  ;;  %v2088_v7 = vmin.f32 %v1576_v59, 6.0  ;;  %v559_v8 = vld [vmem:[%s3615_s3 + $0xca0] sm:$0xff]  ;;  %v560_v9 = vld [vmem:[%s3615_s3 + $0xca8] sm:$0xff]  ;;  %v1577_v12 = vmax.f32 %v1065_v63, 0.0  ;;  %v1578_v13 = vmax.f32 %v1066_v0, 0.0 }
 0x215   : > { %v2595_v10 = vmul.f32 0.16666667, %v2083_v61  ;;  %v2596_v11 = vmul.f32 0.16666667, %v2084_v62  ;;  %v2597_v14 = vmul.f32 0.16666667, %v2085_v4 }
 0x216   : > { %v2598_v15 = vmul.f32 0.16666667, %v2086_v5  ;;  %v2599_v16 = vmul.f32 0.16666667, %v2087_v6  ;;  %v2600_v17 = vmul.f32 0.16666667, %v2088_v7 }
 0x217   : > { %3107 = vst [vmem:[%s3637_s16 + $0xc40] sm:$0xff] %v2595_v10  ;;  %3108 = vst [vmem:[%s3637_s16 + $0xc48] sm:$0xff] %v2596_v11  ;;  %v2089_v18 = vmin.f32 %v1577_v12, 6.0  ;;  %v2090_v19 = vmin.f32 %v1578_v13, 6.0  ;;  %v1067_v20 = vadd.f32 3.0, %v555_v60  ;;  %v1068_v21 = vadd.f32 3.0, %v556_v1 }
 0x218   : > { %3109 = vst [vmem:[%s3637_s16 + $0xc50] sm:$0xff] %v2597_v14  ;;  %3110 = vst [vmem:[%s3637_s16 + $0xc58] sm:$0xff] %v2598_v15  ;;  %v1069_v22 = vadd.f32 3.0, %v557_v2  ;;  %v1070_v23 = vadd.f32 3.0, %v558_v3  ;;  %v1071_v24 = vadd.f32 3.0, %v559_v8  ;;  %v561_v25 = vld [vmem:[%s3615_s3 + $0xcb0] sm:$0xff] }
 0x219   : > { %3111 = vst [vmem:[%s3637_s16 + $0xc60] sm:$0xff] %v2599_v16  ;;  %v562_v26 = vld [vmem:[%s3615_s3 + $0xcb8] sm:$0xff]  ;;  %3112 = vst [vmem:[%s3637_s16 + $0xc68] sm:$0xff] %v2600_v17  ;;  %v2601_v27 = vmul.f32 0.16666667, %v2089_v18  ;;  %v1579_v29 = vmax.f32 %v1067_v20, 0.0 }
 0x21a   : > { %v2602_v28 = vmul.f32 0.16666667, %v2090_v19  ;;  %v1072_v30 = vadd.f32 3.0, %v560_v9  ;;  %v1580_v31 = vmax.f32 %v1068_v21, 0.0  ;;  %v1581_v32 = vmax.f32 %v1069_v22, 0.0  ;;  %v563_v39 = vld [vmem:[%s3615_s3 + $0xcc0] sm:$0xff] }
 0x21b   : > { %v1582_v33 = vmax.f32 %v1070_v23, 0.0  ;;  %v1583_v34 = vmax.f32 %v1071_v24, 0.0  ;;  %3113 = vst [vmem:[%s3637_s16 + $0xc70] sm:$0xff] %v2601_v27  ;;  %v2091_v35 = vmin.f32 %v1579_v29, 6.0  ;;  %v1073_v37 = vadd.f32 3.0, %v561_v25  ;;  %v564_v40 = vld [vmem:[%s3615_s3 + $0xcc8] sm:$0xff] }
 0x21c   : > { %3114 = vst [vmem:[%s3637_s16 + $0xc78] sm:$0xff] %v2602_v28  ;;  %v1584_v36 = vmax.f32 %v1072_v30, 0.0  ;;  %v1074_v38 = vadd.f32 3.0, %v562_v26  ;;  %v565_v41 = vld [vmem:[%s3615_s3 + $0xcd0] sm:$0xff]  ;;  %v2092_v42 = vmin.f32 %v1580_v31, 6.0  ;;  %v2093_v43 = vmin.f32 %v1581_v32, 6.0 }
 0x21d   : > { %v2094_v44 = vmin.f32 %v1582_v33, 6.0  ;;  %v2095_v45 = vmin.f32 %v1583_v34, 6.0  ;;  %v566_v46 = vld [vmem:[%s3615_s3 + $0xcd8] sm:$0xff]  ;;  %v567_v47 = vld [vmem:[%s3615_s3 + $0xce0] sm:$0xff]  ;;  %v2603_v48 = vmul.f32 0.16666667, %v2091_v35 }
 0x21e   : > { %v2096_v49 = vmin.f32 %v1584_v36, 6.0  ;;  %v1585_v50 = vmax.f32 %v1073_v37, 0.0  ;;  %v1586_v51 = vmax.f32 %v1074_v38, 0.0  ;;  %v568_v52 = vld [vmem:[%s3615_s3 + $0xce8] sm:$0xff]  ;;  %v2604_v53 = vmul.f32 0.16666667, %v2092_v42 }
 0x21f   : > { %v2605_v54 = vmul.f32 0.16666667, %v2093_v43  ;;  %v2606_v55 = vmul.f32 0.16666667, %v2094_v44  ;;  %3115 = vst [vmem:[%s3637_s16 + $0xc80] sm:$0xff] %v2603_v48  ;;  %v1075_v60 = vadd.f32 3.0, %v563_v39 }
 0x220   : > { %v2607_v56 = vmul.f32 0.16666667, %v2095_v45  ;;  %v2608_v57 = vmul.f32 0.16666667, %v2096_v49  ;;  %v2097_v58 = vmin.f32 %v1585_v50, 6.0  ;;  %v2098_v59 = vmin.f32 %v1586_v51, 6.0 }
 0x221   : > { %3116 = vst [vmem:[%s3637_s16 + $0xc88] sm:$0xff] %v2604_v53  ;;  %3117 = vst [vmem:[%s3637_s16 + $0xc90] sm:$0xff] %v2605_v54  ;;  %v1076_v61 = vadd.f32 3.0, %v564_v40  ;;  %v1077_v62 = vadd.f32 3.0, %v565_v41  ;;  %v1078_v63 = vadd.f32 3.0, %v566_v46  ;;  %v569_v0 = vld [vmem:[%s3615_s3 + $0xcf0] sm:$0xff] }
 0x222   : > { %3118 = vst [vmem:[%s3637_s16 + $0xc98] sm:$0xff] %v2606_v55  ;;  %v570_v1 = vld [vmem:[%s3615_s3 + $0xcf8] sm:$0xff]  ;;  %3119 = vst [vmem:[%s3637_s16 + $0xca0] sm:$0xff] %v2607_v56  ;;  %v2609_v2 = vmul.f32 0.16666667, %v2097_v58  ;;  %v1079_v4 = vadd.f32 3.0, %v567_v47 }
 0x223   : > { %3120 = vst [vmem:[%s3637_s16 + $0xca8] sm:$0xff] %v2608_v57  ;;  %v2610_v3 = vmul.f32 0.16666667, %v2098_v59  ;;  %v1080_v5 = vadd.f32 3.0, %v568_v52  ;;  %v1587_v6 = vmax.f32 %v1075_v60, 0.0  ;;  %v1588_v7 = vmax.f32 %v1076_v61, 0.0 }
 0x224   : > { %v1589_v8 = vmax.f32 %v1077_v62, 0.0  ;;  %v1590_v9 = vmax.f32 %v1078_v63, 0.0  ;;  %3121 = vst [vmem:[%s3637_s16 + $0xcb0] sm:$0xff] %v2609_v2  ;;  %v1591_v10 = vmax.f32 %v1079_v4, 0.0  ;;  %v1081_v12 = vadd.f32 3.0, %v569_v0  ;;  %v571_v14 = vld [vmem:[%s3615_s3 + $0xd00] sm:$0xff] }
 0x225   : > { %3122 = vst [vmem:[%s3637_s16 + $0xcb8] sm:$0xff] %v2610_v3  ;;  %v1592_v11 = vmax.f32 %v1080_v5, 0.0  ;;  %v1082_v13 = vadd.f32 3.0, %v570_v1  ;;  %v572_v15 = vld [vmem:[%s3615_s3 + $0xd08] sm:$0xff]  ;;  %v2099_v16 = vmin.f32 %v1587_v6, 6.0  ;;  %v2100_v17 = vmin.f32 %v1588_v7, 6.0 }
 0x226   : > { %v2101_v18 = vmin.f32 %v1589_v8, 6.0  ;;  %v2102_v19 = vmin.f32 %v1590_v9, 6.0  ;;  %v573_v20 = vld [vmem:[%s3615_s3 + $0xd10] sm:$0xff]  ;;  %v574_v21 = vld [vmem:[%s3615_s3 + $0xd18] sm:$0xff]  ;;  %v2103_v22 = vmin.f32 %v1591_v10, 6.0  ;;  %v1593_v24 = vmax.f32 %v1081_v12, 0.0 }
 0x227   : > { %v2104_v23 = vmin.f32 %v1592_v11, 6.0  ;;  %v1594_v25 = vmax.f32 %v1082_v13, 0.0  ;;  %v575_v26 = vld [vmem:[%s3615_s3 + $0xd20] sm:$0xff]  ;;  %v576_v27 = vld [vmem:[%s3615_s3 + $0xd28] sm:$0xff]  ;;  %v2611_v28 = vmul.f32 0.16666667, %v2099_v16 }
 0x228   : > { %v2612_v29 = vmul.f32 0.16666667, %v2100_v17  ;;  %v2613_v30 = vmul.f32 0.16666667, %v2101_v18  ;;  %v2614_v31 = vmul.f32 0.16666667, %v2102_v19 }
 0x229   : > { %v2615_v32 = vmul.f32 0.16666667, %v2103_v22  ;;  %v2616_v33 = vmul.f32 0.16666667, %v2104_v23  ;;  %3123 = vst [vmem:[%s3637_s16 + $0xcc0] sm:$0xff] %v2611_v28  ;;  %v2105_v34 = vmin.f32 %v1593_v24, 6.0 }
 0x22a   : > { %3124 = vst [vmem:[%s3637_s16 + $0xcc8] sm:$0xff] %v2612_v29  ;;  %3125 = vst [vmem:[%s3637_s16 + $0xcd0] sm:$0xff] %v2613_v30  ;;  %v2106_v35 = vmin.f32 %v1594_v25, 6.0  ;;  %v1083_v36 = vadd.f32 3.0, %v571_v14  ;;  %v1084_v37 = vadd.f32 3.0, %v572_v15  ;;  %v1085_v38 = vadd.f32 3.0, %v573_v20 }
 0x22b   : > { %3126 = vst [vmem:[%s3637_s16 + $0xcd8] sm:$0xff] %v2614_v31  ;;  %3127 = vst [vmem:[%s3637_s16 + $0xce0] sm:$0xff] %v2615_v32  ;;  %v1086_v39 = vadd.f32 3.0, %v574_v21  ;;  %v1087_v40 = vadd.f32 3.0, %v575_v26  ;;  %v1088_v41 = vadd.f32 3.0, %v576_v27  ;;  %v577_v42 = vld [vmem:[%s3615_s3 + $0xd30] sm:$0xff] }
 0x22c   : > { %3128 = vst [vmem:[%s3637_s16 + $0xce8] sm:$0xff] %v2616_v33  ;;  %v578_v43 = vld [vmem:[%s3615_s3 + $0xd38] sm:$0xff]  ;;  %v2617_v44 = vmul.f32 0.16666667, %v2105_v34  ;;  %v2618_v45 = vmul.f32 0.16666667, %v2106_v35 }
 0x22d   : > { %v1595_v46 = vmax.f32 %v1083_v36, 0.0  ;;  %v1596_v47 = vmax.f32 %v1084_v37, 0.0  ;;  %v1597_v48 = vmax.f32 %v1085_v38, 0.0  ;;  %v1598_v49 = vmax.f32 %v1086_v39, 0.0  ;;  %v579_v52 = vld [vmem:[%s3615_s3 + $0xd40] sm:$0xff]  ;;  %v580_v57 = vld [vmem:[%s3615_s3 + $0xd48] sm:$0xff] }
 0x22e   : > { %v1599_v50 = vmax.f32 %v1087_v40, 0.0  ;;  %v1600_v51 = vmax.f32 %v1088_v41, 0.0  ;;  %3129 = vst [vmem:[%s3637_s16 + $0xcf0] sm:$0xff] %v2617_v44  ;;  %3130 = vst [vmem:[%s3637_s16 + $0xcf8] sm:$0xff] %v2618_v45  ;;  %v1089_v55 = vadd.f32 3.0, %v577_v42  ;;  %v1090_v56 = vadd.f32 3.0, %v578_v43 }
 0x22f   : > { %v2107_v53 = vmin.f32 %v1595_v46, 6.0  ;;  %v2108_v54 = vmin.f32 %v1596_v47, 6.0  ;;  %v581_v58 = vld [vmem:[%s3615_s3 + $0xd50] sm:$0xff]  ;;  %v582_v59 = vld [vmem:[%s3615_s3 + $0xd58] sm:$0xff]  ;;  %v2109_v60 = vmin.f32 %v1597_v48, 6.0  ;;  %v2110_v61 = vmin.f32 %v1598_v49, 6.0 }
 0x230   : > { %v2111_v62 = vmin.f32 %v1599_v50, 6.0  ;;  %v2112_v63 = vmin.f32 %v1600_v51, 6.0  ;;  %v583_v0 = vld [vmem:[%s3615_s3 + $0xd60] sm:$0xff]  ;;  %v584_v1 = vld [vmem:[%s3615_s3 + $0xd68] sm:$0xff]  ;;  %v1601_v4 = vmax.f32 %v1089_v55, 0.0  ;;  %v1602_v5 = vmax.f32 %v1090_v56, 0.0 }
 0x231   : > { %v2619_v2 = vmul.f32 0.16666667, %v2107_v53  ;;  %v2620_v3 = vmul.f32 0.16666667, %v2108_v54  ;;  %v2621_v6 = vmul.f32 0.16666667, %v2109_v60 }
 0x232   : > { %v2622_v7 = vmul.f32 0.16666667, %v2110_v61  ;;  %v2623_v8 = vmul.f32 0.16666667, %v2111_v62  ;;  %v2624_v9 = vmul.f32 0.16666667, %v2112_v63 }
 0x233   : > { %3131 = vst [vmem:[%s3637_s16 + $0xd00] sm:$0xff] %v2619_v2  ;;  %3132 = vst [vmem:[%s3637_s16 + $0xd08] sm:$0xff] %v2620_v3  ;;  %v2113_v10 = vmin.f32 %v1601_v4, 6.0  ;;  %v2114_v11 = vmin.f32 %v1602_v5, 6.0  ;;  %v1091_v12 = vadd.f32 3.0, %v579_v52  ;;  %v1092_v13 = vadd.f32 3.0, %v580_v57 }
 0x234   : > { %3133 = vst [vmem:[%s3637_s16 + $0xd10] sm:$0xff] %v2621_v6  ;;  %3134 = vst [vmem:[%s3637_s16 + $0xd18] sm:$0xff] %v2622_v7  ;;  %v1093_v14 = vadd.f32 3.0, %v581_v58  ;;  %v1094_v15 = vadd.f32 3.0, %v582_v59  ;;  %v1095_v16 = vadd.f32 3.0, %v583_v0  ;;  %v585_v17 = vld [vmem:[%s3615_s3 + $0xd70] sm:$0xff] }
 0x235   : > { %3135 = vst [vmem:[%s3637_s16 + $0xd20] sm:$0xff] %v2623_v8  ;;  %v586_v18 = vld [vmem:[%s3615_s3 + $0xd78] sm:$0xff]  ;;  %3136 = vst [vmem:[%s3637_s16 + $0xd28] sm:$0xff] %v2624_v9  ;;  %v2625_v19 = vmul.f32 0.16666667, %v2113_v10  ;;  %v1603_v21 = vmax.f32 %v1091_v12, 0.0 }
 0x236   : > { %v2626_v20 = vmul.f32 0.16666667, %v2114_v11  ;;  %v1096_v22 = vadd.f32 3.0, %v584_v1  ;;  %v1604_v23 = vmax.f32 %v1092_v13, 0.0  ;;  %v1605_v24 = vmax.f32 %v1093_v14, 0.0  ;;  %v587_v31 = vld [vmem:[%s3615_s3 + $0xd80] sm:$0xff] }
 0x237   : > { %v1606_v25 = vmax.f32 %v1094_v15, 0.0  ;;  %v1607_v26 = vmax.f32 %v1095_v16, 0.0  ;;  %3137 = vst [vmem:[%s3637_s16 + $0xd30] sm:$0xff] %v2625_v19  ;;  %v2115_v27 = vmin.f32 %v1603_v21, 6.0  ;;  %v1097_v29 = vadd.f32 3.0, %v585_v17  ;;  %v588_v32 = vld [vmem:[%s3615_s3 + $0xd88] sm:$0xff] }
 0x238   : > { %3138 = vst [vmem:[%s3637_s16 + $0xd38] sm:$0xff] %v2626_v20  ;;  %v1608_v28 = vmax.f32 %v1096_v22, 0.0  ;;  %v1098_v30 = vadd.f32 3.0, %v586_v18  ;;  %v589_v33 = vld [vmem:[%s3615_s3 + $0xd90] sm:$0xff]  ;;  %v2116_v34 = vmin.f32 %v1604_v23, 6.0  ;;  %v2117_v35 = vmin.f32 %v1605_v24, 6.0 }
 0x239   : > { %v2118_v36 = vmin.f32 %v1606_v25, 6.0  ;;  %v2119_v37 = vmin.f32 %v1607_v26, 6.0  ;;  %v590_v38 = vld [vmem:[%s3615_s3 + $0xd98] sm:$0xff]  ;;  %v591_v39 = vld [vmem:[%s3615_s3 + $0xda0] sm:$0xff]  ;;  %v2627_v40 = vmul.f32 0.16666667, %v2115_v27 }
 0x23a   : > { %v2120_v41 = vmin.f32 %v1608_v28, 6.0  ;;  %v1609_v42 = vmax.f32 %v1097_v29, 0.0  ;;  %v1610_v43 = vmax.f32 %v1098_v30, 0.0  ;;  %v592_v44 = vld [vmem:[%s3615_s3 + $0xda8] sm:$0xff]  ;;  %v2628_v45 = vmul.f32 0.16666667, %v2116_v34 }
 0x23b   : > { %v2629_v46 = vmul.f32 0.16666667, %v2117_v35  ;;  %v2630_v47 = vmul.f32 0.16666667, %v2118_v36  ;;  %3139 = vst [vmem:[%s3637_s16 + $0xd40] sm:$0xff] %v2627_v40  ;;  %v1099_v52 = vadd.f32 3.0, %v587_v31 }
 0x23c   : > { %v2631_v48 = vmul.f32 0.16666667, %v2119_v37  ;;  %v2632_v49 = vmul.f32 0.16666667, %v2120_v41  ;;  %v2121_v50 = vmin.f32 %v1609_v42, 6.0  ;;  %v2122_v51 = vmin.f32 %v1610_v43, 6.0 }
 0x23d   : > { %3140 = vst [vmem:[%s3637_s16 + $0xd48] sm:$0xff] %v2628_v45  ;;  %3141 = vst [vmem:[%s3637_s16 + $0xd50] sm:$0xff] %v2629_v46  ;;  %v1100_v53 = vadd.f32 3.0, %v588_v32  ;;  %v1101_v54 = vadd.f32 3.0, %v589_v33  ;;  %v1102_v55 = vadd.f32 3.0, %v590_v38  ;;  %v593_v56 = vld [vmem:[%s3615_s3 + $0xdb0] sm:$0xff] }
 0x23e   : > { %3142 = vst [vmem:[%s3637_s16 + $0xd58] sm:$0xff] %v2630_v47  ;;  %v594_v57 = vld [vmem:[%s3615_s3 + $0xdb8] sm:$0xff]  ;;  %3143 = vst [vmem:[%s3637_s16 + $0xd60] sm:$0xff] %v2631_v48  ;;  %v2633_v58 = vmul.f32 0.16666667, %v2121_v50  ;;  %v1103_v60 = vadd.f32 3.0, %v591_v39 }
 0x23f   : > { %3144 = vst [vmem:[%s3637_s16 + $0xd68] sm:$0xff] %v2632_v49  ;;  %v2634_v59 = vmul.f32 0.16666667, %v2122_v51  ;;  %v1104_v61 = vadd.f32 3.0, %v592_v44  ;;  %v1611_v62 = vmax.f32 %v1099_v52, 0.0  ;;  %v1612_v63 = vmax.f32 %v1100_v53, 0.0 }
 0x240   : > { %v1613_v0 = vmax.f32 %v1101_v54, 0.0  ;;  %v1614_v1 = vmax.f32 %v1102_v55, 0.0  ;;  %3145 = vst [vmem:[%s3637_s16 + $0xd70] sm:$0xff] %v2633_v58  ;;  %v1615_v2 = vmax.f32 %v1103_v60, 0.0  ;;  %v1105_v4 = vadd.f32 3.0, %v593_v56  ;;  %v595_v6 = vld [vmem:[%s3615_s3 + $0xdc0] sm:$0xff] }
 0x241   : > { %3146 = vst [vmem:[%s3637_s16 + $0xd78] sm:$0xff] %v2634_v59  ;;  %v1616_v3 = vmax.f32 %v1104_v61, 0.0  ;;  %v1106_v5 = vadd.f32 3.0, %v594_v57  ;;  %v596_v7 = vld [vmem:[%s3615_s3 + $0xdc8] sm:$0xff]  ;;  %v2123_v8 = vmin.f32 %v1611_v62, 6.0  ;;  %v2124_v9 = vmin.f32 %v1612_v63, 6.0 }
 0x242   : > { %v2125_v10 = vmin.f32 %v1613_v0, 6.0  ;;  %v2126_v11 = vmin.f32 %v1614_v1, 6.0  ;;  %v597_v12 = vld [vmem:[%s3615_s3 + $0xdd0] sm:$0xff]  ;;  %v598_v13 = vld [vmem:[%s3615_s3 + $0xdd8] sm:$0xff]  ;;  %v2127_v14 = vmin.f32 %v1615_v2, 6.0  ;;  %v1617_v16 = vmax.f32 %v1105_v4, 0.0 }
 0x243   : > { %v2128_v15 = vmin.f32 %v1616_v3, 6.0  ;;  %v1618_v17 = vmax.f32 %v1106_v5, 0.0  ;;  %v599_v18 = vld [vmem:[%s3615_s3 + $0xde0] sm:$0xff]  ;;  %v600_v19 = vld [vmem:[%s3615_s3 + $0xde8] sm:$0xff]  ;;  %v2635_v20 = vmul.f32 0.16666667, %v2123_v8 }
 0x244   : > { %v2636_v21 = vmul.f32 0.16666667, %v2124_v9  ;;  %v2637_v22 = vmul.f32 0.16666667, %v2125_v10  ;;  %v2638_v23 = vmul.f32 0.16666667, %v2126_v11 }
 0x245   : > { %v2639_v24 = vmul.f32 0.16666667, %v2127_v14  ;;  %v2640_v25 = vmul.f32 0.16666667, %v2128_v15  ;;  %3147 = vst [vmem:[%s3637_s16 + $0xd80] sm:$0xff] %v2635_v20  ;;  %v2129_v26 = vmin.f32 %v1617_v16, 6.0 }
 0x246   : > { %3148 = vst [vmem:[%s3637_s16 + $0xd88] sm:$0xff] %v2636_v21  ;;  %3149 = vst [vmem:[%s3637_s16 + $0xd90] sm:$0xff] %v2637_v22  ;;  %v2130_v27 = vmin.f32 %v1618_v17, 6.0  ;;  %v1107_v28 = vadd.f32 3.0, %v595_v6  ;;  %v1108_v29 = vadd.f32 3.0, %v596_v7  ;;  %v1109_v30 = vadd.f32 3.0, %v597_v12 }
 0x247   : > { %3150 = vst [vmem:[%s3637_s16 + $0xd98] sm:$0xff] %v2638_v23  ;;  %3151 = vst [vmem:[%s3637_s16 + $0xda0] sm:$0xff] %v2639_v24  ;;  %v1110_v31 = vadd.f32 3.0, %v598_v13  ;;  %v1111_v32 = vadd.f32 3.0, %v599_v18  ;;  %v1112_v33 = vadd.f32 3.0, %v600_v19  ;;  %v601_v34 = vld [vmem:[%s3615_s3 + $0xdf0] sm:$0xff] }
 0x248   : > { %3152 = vst [vmem:[%s3637_s16 + $0xda8] sm:$0xff] %v2640_v25  ;;  %v602_v35 = vld [vmem:[%s3615_s3 + $0xdf8] sm:$0xff]  ;;  %v2641_v36 = vmul.f32 0.16666667, %v2129_v26  ;;  %v2642_v37 = vmul.f32 0.16666667, %v2130_v27 }
 0x249   : > { %v1619_v38 = vmax.f32 %v1107_v28, 0.0  ;;  %v1620_v39 = vmax.f32 %v1108_v29, 0.0  ;;  %v1621_v40 = vmax.f32 %v1109_v30, 0.0  ;;  %v1622_v41 = vmax.f32 %v1110_v31, 0.0  ;;  %v603_v44 = vld [vmem:[%s3615_s3 + $0xe00] sm:$0xff]  ;;  %v604_v49 = vld [vmem:[%s3615_s3 + $0xe08] sm:$0xff] }
 0x24a   : > { %v1623_v42 = vmax.f32 %v1111_v32, 0.0  ;;  %v1624_v43 = vmax.f32 %v1112_v33, 0.0  ;;  %3153 = vst [vmem:[%s3637_s16 + $0xdb0] sm:$0xff] %v2641_v36  ;;  %3154 = vst [vmem:[%s3637_s16 + $0xdb8] sm:$0xff] %v2642_v37  ;;  %v1113_v47 = vadd.f32 3.0, %v601_v34  ;;  %v1114_v48 = vadd.f32 3.0, %v602_v35 }
 0x24b   : > { %v2131_v45 = vmin.f32 %v1619_v38, 6.0  ;;  %v2132_v46 = vmin.f32 %v1620_v39, 6.0  ;;  %v605_v50 = vld [vmem:[%s3615_s3 + $0xe10] sm:$0xff]  ;;  %v606_v51 = vld [vmem:[%s3615_s3 + $0xe18] sm:$0xff]  ;;  %v2133_v52 = vmin.f32 %v1621_v40, 6.0  ;;  %v2134_v53 = vmin.f32 %v1622_v41, 6.0 }
 0x24c   : > { %v2135_v54 = vmin.f32 %v1623_v42, 6.0  ;;  %v2136_v55 = vmin.f32 %v1624_v43, 6.0  ;;  %v607_v56 = vld [vmem:[%s3615_s3 + $0xe20] sm:$0xff]  ;;  %v608_v57 = vld [vmem:[%s3615_s3 + $0xe28] sm:$0xff]  ;;  %v1625_v60 = vmax.f32 %v1113_v47, 0.0  ;;  %v1626_v61 = vmax.f32 %v1114_v48, 0.0 }
 0x24d   : > { %v2643_v58 = vmul.f32 0.16666667, %v2131_v45  ;;  %v2644_v59 = vmul.f32 0.16666667, %v2132_v46  ;;  %v2645_v62 = vmul.f32 0.16666667, %v2133_v52 }
 0x24e   : > { %v2646_v63 = vmul.f32 0.16666667, %v2134_v53  ;;  %v2647_v0 = vmul.f32 0.16666667, %v2135_v54  ;;  %v2648_v1 = vmul.f32 0.16666667, %v2136_v55 }
 0x24f   : > { %3155 = vst [vmem:[%s3637_s16 + $0xdc0] sm:$0xff] %v2643_v58  ;;  %3156 = vst [vmem:[%s3637_s16 + $0xdc8] sm:$0xff] %v2644_v59  ;;  %v2137_v2 = vmin.f32 %v1625_v60, 6.0  ;;  %v2138_v3 = vmin.f32 %v1626_v61, 6.0  ;;  %v1115_v4 = vadd.f32 3.0, %v603_v44  ;;  %v1116_v5 = vadd.f32 3.0, %v604_v49 }
 0x250   : > { %3157 = vst [vmem:[%s3637_s16 + $0xdd0] sm:$0xff] %v2645_v62  ;;  %3158 = vst [vmem:[%s3637_s16 + $0xdd8] sm:$0xff] %v2646_v63  ;;  %v1117_v6 = vadd.f32 3.0, %v605_v50  ;;  %v1118_v7 = vadd.f32 3.0, %v606_v51  ;;  %v1119_v8 = vadd.f32 3.0, %v607_v56  ;;  %v609_v9 = vld [vmem:[%s3615_s3 + $0xe30] sm:$0xff] }
 0x251   : > { %3159 = vst [vmem:[%s3637_s16 + $0xde0] sm:$0xff] %v2647_v0  ;;  %v610_v10 = vld [vmem:[%s3615_s3 + $0xe38] sm:$0xff]  ;;  %3160 = vst [vmem:[%s3637_s16 + $0xde8] sm:$0xff] %v2648_v1  ;;  %v2649_v11 = vmul.f32 0.16666667, %v2137_v2  ;;  %v1627_v13 = vmax.f32 %v1115_v4, 0.0 }
 0x252   : > { %v2650_v12 = vmul.f32 0.16666667, %v2138_v3  ;;  %v1120_v14 = vadd.f32 3.0, %v608_v57  ;;  %v1628_v15 = vmax.f32 %v1116_v5, 0.0  ;;  %v1629_v16 = vmax.f32 %v1117_v6, 0.0  ;;  %v611_v23 = vld [vmem:[%s3615_s3 + $0xe40] sm:$0xff] }
 0x253   : > { %v1630_v17 = vmax.f32 %v1118_v7, 0.0  ;;  %v1631_v18 = vmax.f32 %v1119_v8, 0.0  ;;  %3161 = vst [vmem:[%s3637_s16 + $0xdf0] sm:$0xff] %v2649_v11  ;;  %v2139_v19 = vmin.f32 %v1627_v13, 6.0  ;;  %v1121_v21 = vadd.f32 3.0, %v609_v9  ;;  %v612_v24 = vld [vmem:[%s3615_s3 + $0xe48] sm:$0xff] }
 0x254   : > { %3162 = vst [vmem:[%s3637_s16 + $0xdf8] sm:$0xff] %v2650_v12  ;;  %v1632_v20 = vmax.f32 %v1120_v14, 0.0  ;;  %v1122_v22 = vadd.f32 3.0, %v610_v10  ;;  %v613_v25 = vld [vmem:[%s3615_s3 + $0xe50] sm:$0xff]  ;;  %v2140_v26 = vmin.f32 %v1628_v15, 6.0  ;;  %v2141_v27 = vmin.f32 %v1629_v16, 6.0 }
 0x255   : > { %v2142_v28 = vmin.f32 %v1630_v17, 6.0  ;;  %v2143_v29 = vmin.f32 %v1631_v18, 6.0  ;;  %v614_v30 = vld [vmem:[%s3615_s3 + $0xe58] sm:$0xff]  ;;  %v615_v31 = vld [vmem:[%s3615_s3 + $0xe60] sm:$0xff]  ;;  %v2651_v32 = vmul.f32 0.16666667, %v2139_v19 }
 0x256   : > { %v2144_v33 = vmin.f32 %v1632_v20, 6.0  ;;  %v1633_v34 = vmax.f32 %v1121_v21, 0.0  ;;  %v1634_v35 = vmax.f32 %v1122_v22, 0.0  ;;  %v616_v36 = vld [vmem:[%s3615_s3 + $0xe68] sm:$0xff]  ;;  %v2652_v37 = vmul.f32 0.16666667, %v2140_v26 }
 0x257   : > { %v2653_v38 = vmul.f32 0.16666667, %v2141_v27  ;;  %v2654_v39 = vmul.f32 0.16666667, %v2142_v28  ;;  %3163 = vst [vmem:[%s3637_s16 + $0xe00] sm:$0xff] %v2651_v32  ;;  %v1123_v44 = vadd.f32 3.0, %v611_v23 }
 0x258   : > { %v2655_v40 = vmul.f32 0.16666667, %v2143_v29  ;;  %v2656_v41 = vmul.f32 0.16666667, %v2144_v33  ;;  %v2145_v42 = vmin.f32 %v1633_v34, 6.0  ;;  %v2146_v43 = vmin.f32 %v1634_v35, 6.0 }
 0x259   : > { %3164 = vst [vmem:[%s3637_s16 + $0xe08] sm:$0xff] %v2652_v37  ;;  %3165 = vst [vmem:[%s3637_s16 + $0xe10] sm:$0xff] %v2653_v38  ;;  %v1124_v45 = vadd.f32 3.0, %v612_v24  ;;  %v1125_v46 = vadd.f32 3.0, %v613_v25  ;;  %v1126_v47 = vadd.f32 3.0, %v614_v30  ;;  %v617_v48 = vld [vmem:[%s3615_s3 + $0xe70] sm:$0xff] }
 0x25a   : > { %3166 = vst [vmem:[%s3637_s16 + $0xe18] sm:$0xff] %v2654_v39  ;;  %v618_v49 = vld [vmem:[%s3615_s3 + $0xe78] sm:$0xff]  ;;  %3167 = vst [vmem:[%s3637_s16 + $0xe20] sm:$0xff] %v2655_v40  ;;  %v2657_v50 = vmul.f32 0.16666667, %v2145_v42  ;;  %v1127_v52 = vadd.f32 3.0, %v615_v31 }
 0x25b   : > { %3168 = vst [vmem:[%s3637_s16 + $0xe28] sm:$0xff] %v2656_v41  ;;  %v2658_v51 = vmul.f32 0.16666667, %v2146_v43  ;;  %v1128_v53 = vadd.f32 3.0, %v616_v36  ;;  %v1635_v54 = vmax.f32 %v1123_v44, 0.0  ;;  %v1636_v55 = vmax.f32 %v1124_v45, 0.0 }
 0x25c   : > { %v1637_v56 = vmax.f32 %v1125_v46, 0.0  ;;  %v1638_v57 = vmax.f32 %v1126_v47, 0.0  ;;  %3169 = vst [vmem:[%s3637_s16 + $0xe30] sm:$0xff] %v2657_v50  ;;  %v1639_v58 = vmax.f32 %v1127_v52, 0.0  ;;  %v1129_v60 = vadd.f32 3.0, %v617_v48  ;;  %v619_v62 = vld [vmem:[%s3615_s3 + $0xe80] sm:$0xff] }
 0x25d   : > { %3170 = vst [vmem:[%s3637_s16 + $0xe38] sm:$0xff] %v2658_v51  ;;  %v1640_v59 = vmax.f32 %v1128_v53, 0.0  ;;  %v1130_v61 = vadd.f32 3.0, %v618_v49  ;;  %v620_v63 = vld [vmem:[%s3615_s3 + $0xe88] sm:$0xff]  ;;  %v2147_v0 = vmin.f32 %v1635_v54, 6.0  ;;  %v2148_v1 = vmin.f32 %v1636_v55, 6.0 }
 0x25e   : > { %v2149_v2 = vmin.f32 %v1637_v56, 6.0  ;;  %v2150_v3 = vmin.f32 %v1638_v57, 6.0  ;;  %v621_v4 = vld [vmem:[%s3615_s3 + $0xe90] sm:$0xff]  ;;  %v622_v5 = vld [vmem:[%s3615_s3 + $0xe98] sm:$0xff]  ;;  %v2151_v6 = vmin.f32 %v1639_v58, 6.0  ;;  %v1641_v8 = vmax.f32 %v1129_v60, 0.0 }
 0x25f   : > { %v2152_v7 = vmin.f32 %v1640_v59, 6.0  ;;  %v1642_v9 = vmax.f32 %v1130_v61, 0.0  ;;  %v623_v10 = vld [vmem:[%s3615_s3 + $0xea0] sm:$0xff]  ;;  %v624_v11 = vld [vmem:[%s3615_s3 + $0xea8] sm:$0xff]  ;;  %v2659_v12 = vmul.f32 0.16666667, %v2147_v0 }
 0x260   : > { %v2660_v13 = vmul.f32 0.16666667, %v2148_v1  ;;  %v2661_v14 = vmul.f32 0.16666667, %v2149_v2  ;;  %v2662_v15 = vmul.f32 0.16666667, %v2150_v3 }
 0x261   : > { %v2663_v16 = vmul.f32 0.16666667, %v2151_v6  ;;  %v2664_v17 = vmul.f32 0.16666667, %v2152_v7  ;;  %3171 = vst [vmem:[%s3637_s16 + $0xe40] sm:$0xff] %v2659_v12  ;;  %v2153_v18 = vmin.f32 %v1641_v8, 6.0 }
 0x262   : > { %3172 = vst [vmem:[%s3637_s16 + $0xe48] sm:$0xff] %v2660_v13  ;;  %3173 = vst [vmem:[%s3637_s16 + $0xe50] sm:$0xff] %v2661_v14  ;;  %v2154_v19 = vmin.f32 %v1642_v9, 6.0  ;;  %v1131_v20 = vadd.f32 3.0, %v619_v62  ;;  %v1132_v21 = vadd.f32 3.0, %v620_v63  ;;  %v1133_v22 = vadd.f32 3.0, %v621_v4 }
 0x263   : > { %3174 = vst [vmem:[%s3637_s16 + $0xe58] sm:$0xff] %v2662_v15  ;;  %3175 = vst [vmem:[%s3637_s16 + $0xe60] sm:$0xff] %v2663_v16  ;;  %v1134_v23 = vadd.f32 3.0, %v622_v5  ;;  %v1135_v24 = vadd.f32 3.0, %v623_v10  ;;  %v1136_v25 = vadd.f32 3.0, %v624_v11  ;;  %v625_v26 = vld [vmem:[%s3615_s3 + $0xeb0] sm:$0xff] }
 0x264   : > { %3176 = vst [vmem:[%s3637_s16 + $0xe68] sm:$0xff] %v2664_v17  ;;  %v626_v27 = vld [vmem:[%s3615_s3 + $0xeb8] sm:$0xff]  ;;  %v2665_v28 = vmul.f32 0.16666667, %v2153_v18  ;;  %v2666_v29 = vmul.f32 0.16666667, %v2154_v19 }
 0x265   : > { %v1643_v30 = vmax.f32 %v1131_v20, 0.0  ;;  %v1644_v31 = vmax.f32 %v1132_v21, 0.0  ;;  %v1645_v32 = vmax.f32 %v1133_v22, 0.0  ;;  %v1646_v33 = vmax.f32 %v1134_v23, 0.0  ;;  %v627_v36 = vld [vmem:[%s3615_s3 + $0xec0] sm:$0xff]  ;;  %v628_v41 = vld [vmem:[%s3615_s3 + $0xec8] sm:$0xff] }
 0x266   : > { %v1647_v34 = vmax.f32 %v1135_v24, 0.0  ;;  %v1648_v35 = vmax.f32 %v1136_v25, 0.0  ;;  %3177 = vst [vmem:[%s3637_s16 + $0xe70] sm:$0xff] %v2665_v28  ;;  %3178 = vst [vmem:[%s3637_s16 + $0xe78] sm:$0xff] %v2666_v29  ;;  %v1137_v39 = vadd.f32 3.0, %v625_v26  ;;  %v1138_v40 = vadd.f32 3.0, %v626_v27 }
 0x267   : > { %v2155_v37 = vmin.f32 %v1643_v30, 6.0  ;;  %v2156_v38 = vmin.f32 %v1644_v31, 6.0  ;;  %v629_v42 = vld [vmem:[%s3615_s3 + $0xed0] sm:$0xff]  ;;  %v630_v43 = vld [vmem:[%s3615_s3 + $0xed8] sm:$0xff]  ;;  %v2157_v44 = vmin.f32 %v1645_v32, 6.0  ;;  %v2158_v45 = vmin.f32 %v1646_v33, 6.0 }
 0x268   : > { %v2159_v46 = vmin.f32 %v1647_v34, 6.0  ;;  %v2160_v47 = vmin.f32 %v1648_v35, 6.0  ;;  %v631_v48 = vld [vmem:[%s3615_s3 + $0xee0] sm:$0xff]  ;;  %v632_v49 = vld [vmem:[%s3615_s3 + $0xee8] sm:$0xff]  ;;  %v1649_v52 = vmax.f32 %v1137_v39, 0.0  ;;  %v1650_v53 = vmax.f32 %v1138_v40, 0.0 }
 0x269   : > { %v2667_v50 = vmul.f32 0.16666667, %v2155_v37  ;;  %v2668_v51 = vmul.f32 0.16666667, %v2156_v38  ;;  %v2669_v54 = vmul.f32 0.16666667, %v2157_v44 }
 0x26a   : > { %v2670_v55 = vmul.f32 0.16666667, %v2158_v45  ;;  %v2671_v56 = vmul.f32 0.16666667, %v2159_v46  ;;  %v2672_v57 = vmul.f32 0.16666667, %v2160_v47 }
 0x26b   : > { %3179 = vst [vmem:[%s3637_s16 + $0xe80] sm:$0xff] %v2667_v50  ;;  %3180 = vst [vmem:[%s3637_s16 + $0xe88] sm:$0xff] %v2668_v51  ;;  %v2161_v58 = vmin.f32 %v1649_v52, 6.0  ;;  %v2162_v59 = vmin.f32 %v1650_v53, 6.0  ;;  %v1139_v60 = vadd.f32 3.0, %v627_v36  ;;  %v1140_v61 = vadd.f32 3.0, %v628_v41 }
 0x26c   : > { %3181 = vst [vmem:[%s3637_s16 + $0xe90] sm:$0xff] %v2669_v54  ;;  %3182 = vst [vmem:[%s3637_s16 + $0xe98] sm:$0xff] %v2670_v55  ;;  %v1141_v62 = vadd.f32 3.0, %v629_v42  ;;  %v1142_v63 = vadd.f32 3.0, %v630_v43  ;;  %v1143_v0 = vadd.f32 3.0, %v631_v48  ;;  %v633_v1 = vld [vmem:[%s3615_s3 + $0xef0] sm:$0xff] }
 0x26d   : > { %3183 = vst [vmem:[%s3637_s16 + $0xea0] sm:$0xff] %v2671_v56  ;;  %v634_v2 = vld [vmem:[%s3615_s3 + $0xef8] sm:$0xff]  ;;  %3184 = vst [vmem:[%s3637_s16 + $0xea8] sm:$0xff] %v2672_v57  ;;  %v2673_v3 = vmul.f32 0.16666667, %v2161_v58  ;;  %v1651_v5 = vmax.f32 %v1139_v60, 0.0 }
 0x26e   : > { %v2674_v4 = vmul.f32 0.16666667, %v2162_v59  ;;  %v1144_v6 = vadd.f32 3.0, %v632_v49  ;;  %v1652_v7 = vmax.f32 %v1140_v61, 0.0  ;;  %v1653_v8 = vmax.f32 %v1141_v62, 0.0  ;;  %v635_v15 = vld [vmem:[%s3615_s3 + $0xf00] sm:$0xff] }
 0x26f   : > { %v1654_v9 = vmax.f32 %v1142_v63, 0.0  ;;  %v1655_v10 = vmax.f32 %v1143_v0, 0.0  ;;  %3185 = vst [vmem:[%s3637_s16 + $0xeb0] sm:$0xff] %v2673_v3  ;;  %v2163_v11 = vmin.f32 %v1651_v5, 6.0  ;;  %v1145_v13 = vadd.f32 3.0, %v633_v1  ;;  %v636_v16 = vld [vmem:[%s3615_s3 + $0xf08] sm:$0xff] }
 0x270   : > { %3186 = vst [vmem:[%s3637_s16 + $0xeb8] sm:$0xff] %v2674_v4  ;;  %v1656_v12 = vmax.f32 %v1144_v6, 0.0  ;;  %v1146_v14 = vadd.f32 3.0, %v634_v2  ;;  %v637_v17 = vld [vmem:[%s3615_s3 + $0xf10] sm:$0xff]  ;;  %v2164_v18 = vmin.f32 %v1652_v7, 6.0  ;;  %v2165_v19 = vmin.f32 %v1653_v8, 6.0 }
 0x271   : > { %v2166_v20 = vmin.f32 %v1654_v9, 6.0  ;;  %v2167_v21 = vmin.f32 %v1655_v10, 6.0  ;;  %v638_v22 = vld [vmem:[%s3615_s3 + $0xf18] sm:$0xff]  ;;  %v639_v23 = vld [vmem:[%s3615_s3 + $0xf20] sm:$0xff]  ;;  %v2675_v24 = vmul.f32 0.16666667, %v2163_v11 }
 0x272   : > { %v2168_v25 = vmin.f32 %v1656_v12, 6.0  ;;  %v1657_v26 = vmax.f32 %v1145_v13, 0.0  ;;  %v1658_v27 = vmax.f32 %v1146_v14, 0.0  ;;  %v640_v28 = vld [vmem:[%s3615_s3 + $0xf28] sm:$0xff]  ;;  %v2676_v29 = vmul.f32 0.16666667, %v2164_v18 }
 0x273   : > { %v2677_v30 = vmul.f32 0.16666667, %v2165_v19  ;;  %v2678_v31 = vmul.f32 0.16666667, %v2166_v20  ;;  %3187 = vst [vmem:[%s3637_s16 + $0xec0] sm:$0xff] %v2675_v24  ;;  %v1147_v36 = vadd.f32 3.0, %v635_v15 }
 0x274   : > { %v2679_v32 = vmul.f32 0.16666667, %v2167_v21  ;;  %v2680_v33 = vmul.f32 0.16666667, %v2168_v25  ;;  %v2169_v34 = vmin.f32 %v1657_v26, 6.0  ;;  %v2170_v35 = vmin.f32 %v1658_v27, 6.0 }
 0x275   : > { %3188 = vst [vmem:[%s3637_s16 + $0xec8] sm:$0xff] %v2676_v29  ;;  %3189 = vst [vmem:[%s3637_s16 + $0xed0] sm:$0xff] %v2677_v30  ;;  %v1148_v37 = vadd.f32 3.0, %v636_v16  ;;  %v1149_v38 = vadd.f32 3.0, %v637_v17  ;;  %v1150_v39 = vadd.f32 3.0, %v638_v22  ;;  %v641_v40 = vld [vmem:[%s3615_s3 + $0xf30] sm:$0xff] }
 0x276   : > { %3190 = vst [vmem:[%s3637_s16 + $0xed8] sm:$0xff] %v2678_v31  ;;  %v642_v41 = vld [vmem:[%s3615_s3 + $0xf38] sm:$0xff]  ;;  %3191 = vst [vmem:[%s3637_s16 + $0xee0] sm:$0xff] %v2679_v32  ;;  %v2681_v42 = vmul.f32 0.16666667, %v2169_v34  ;;  %v1151_v44 = vadd.f32 3.0, %v639_v23 }
 0x277   : > { %3192 = vst [vmem:[%s3637_s16 + $0xee8] sm:$0xff] %v2680_v33  ;;  %v2682_v43 = vmul.f32 0.16666667, %v2170_v35  ;;  %v1152_v45 = vadd.f32 3.0, %v640_v28  ;;  %v1659_v46 = vmax.f32 %v1147_v36, 0.0  ;;  %v1660_v47 = vmax.f32 %v1148_v37, 0.0 }
 0x278   : > { %v1661_v48 = vmax.f32 %v1149_v38, 0.0  ;;  %v1662_v49 = vmax.f32 %v1150_v39, 0.0  ;;  %3193 = vst [vmem:[%s3637_s16 + $0xef0] sm:$0xff] %v2681_v42  ;;  %v1663_v50 = vmax.f32 %v1151_v44, 0.0  ;;  %v1153_v52 = vadd.f32 3.0, %v641_v40  ;;  %v643_v54 = vld [vmem:[%s3615_s3 + $0xf40] sm:$0xff] }
 0x279   : > { %3194 = vst [vmem:[%s3637_s16 + $0xef8] sm:$0xff] %v2682_v43  ;;  %v1664_v51 = vmax.f32 %v1152_v45, 0.0  ;;  %v1154_v53 = vadd.f32 3.0, %v642_v41  ;;  %v644_v55 = vld [vmem:[%s3615_s3 + $0xf48] sm:$0xff]  ;;  %v2171_v56 = vmin.f32 %v1659_v46, 6.0  ;;  %v2172_v57 = vmin.f32 %v1660_v47, 6.0 }
 0x27a   : > { %v2173_v58 = vmin.f32 %v1661_v48, 6.0  ;;  %v2174_v59 = vmin.f32 %v1662_v49, 6.0  ;;  %v645_v60 = vld [vmem:[%s3615_s3 + $0xf50] sm:$0xff]  ;;  %v646_v61 = vld [vmem:[%s3615_s3 + $0xf58] sm:$0xff]  ;;  %v2175_v62 = vmin.f32 %v1663_v50, 6.0  ;;  %v1665_v0 = vmax.f32 %v1153_v52, 0.0 }
 0x27b   : > { %v2176_v63 = vmin.f32 %v1664_v51, 6.0  ;;  %v1666_v1 = vmax.f32 %v1154_v53, 0.0  ;;  %v647_v2 = vld [vmem:[%s3615_s3 + $0xf60] sm:$0xff]  ;;  %v648_v3 = vld [vmem:[%s3615_s3 + $0xf68] sm:$0xff]  ;;  %v2683_v4 = vmul.f32 0.16666667, %v2171_v56 }
 0x27c   : > { %v2684_v5 = vmul.f32 0.16666667, %v2172_v57  ;;  %v2685_v6 = vmul.f32 0.16666667, %v2173_v58  ;;  %v2686_v7 = vmul.f32 0.16666667, %v2174_v59 }
 0x27d   : > { %v2687_v8 = vmul.f32 0.16666667, %v2175_v62  ;;  %v2688_v9 = vmul.f32 0.16666667, %v2176_v63  ;;  %3195 = vst [vmem:[%s3637_s16 + $0xf00] sm:$0xff] %v2683_v4  ;;  %v2177_v10 = vmin.f32 %v1665_v0, 6.0 }
 0x27e   : > { %3196 = vst [vmem:[%s3637_s16 + $0xf08] sm:$0xff] %v2684_v5  ;;  %3197 = vst [vmem:[%s3637_s16 + $0xf10] sm:$0xff] %v2685_v6  ;;  %v2178_v11 = vmin.f32 %v1666_v1, 6.0  ;;  %v1155_v12 = vadd.f32 3.0, %v643_v54  ;;  %v1156_v13 = vadd.f32 3.0, %v644_v55  ;;  %v1157_v14 = vadd.f32 3.0, %v645_v60 }
 0x27f   : > { %3198 = vst [vmem:[%s3637_s16 + $0xf18] sm:$0xff] %v2686_v7  ;;  %3199 = vst [vmem:[%s3637_s16 + $0xf20] sm:$0xff] %v2687_v8  ;;  %v1158_v15 = vadd.f32 3.0, %v646_v61  ;;  %v1159_v16 = vadd.f32 3.0, %v647_v2  ;;  %v1160_v17 = vadd.f32 3.0, %v648_v3  ;;  %v649_v18 = vld [vmem:[%s3615_s3 + $0xf70] sm:$0xff] }
 0x280   : > { %3200 = vst [vmem:[%s3637_s16 + $0xf28] sm:$0xff] %v2688_v9  ;;  %v650_v19 = vld [vmem:[%s3615_s3 + $0xf78] sm:$0xff]  ;;  %v2689_v20 = vmul.f32 0.16666667, %v2177_v10  ;;  %v2690_v21 = vmul.f32 0.16666667, %v2178_v11 }
 0x281   : > { %v1667_v22 = vmax.f32 %v1155_v12, 0.0  ;;  %v1668_v23 = vmax.f32 %v1156_v13, 0.0  ;;  %v1669_v24 = vmax.f32 %v1157_v14, 0.0  ;;  %v1670_v25 = vmax.f32 %v1158_v15, 0.0  ;;  %v651_v28 = vld [vmem:[%s3615_s3 + $0xf80] sm:$0xff]  ;;  %v652_v33 = vld [vmem:[%s3615_s3 + $0xf88] sm:$0xff] }
 0x282   : > { %v1671_v26 = vmax.f32 %v1159_v16, 0.0  ;;  %v1672_v27 = vmax.f32 %v1160_v17, 0.0  ;;  %3201 = vst [vmem:[%s3637_s16 + $0xf30] sm:$0xff] %v2689_v20  ;;  %3202 = vst [vmem:[%s3637_s16 + $0xf38] sm:$0xff] %v2690_v21  ;;  %v1161_v31 = vadd.f32 3.0, %v649_v18  ;;  %v1162_v32 = vadd.f32 3.0, %v650_v19 }
 0x283   : > { %v2179_v29 = vmin.f32 %v1667_v22, 6.0  ;;  %v2180_v30 = vmin.f32 %v1668_v23, 6.0  ;;  %v653_v34 = vld [vmem:[%s3615_s3 + $0xf90] sm:$0xff]  ;;  %v654_v35 = vld [vmem:[%s3615_s3 + $0xf98] sm:$0xff]  ;;  %v2181_v36 = vmin.f32 %v1669_v24, 6.0  ;;  %v2182_v37 = vmin.f32 %v1670_v25, 6.0 }
 0x284   : > { %v2183_v38 = vmin.f32 %v1671_v26, 6.0  ;;  %v2184_v39 = vmin.f32 %v1672_v27, 6.0  ;;  %v655_v40 = vld [vmem:[%s3615_s3 + $0xfa0] sm:$0xff]  ;;  %v656_v41 = vld [vmem:[%s3615_s3 + $0xfa8] sm:$0xff]  ;;  %v1673_v44 = vmax.f32 %v1161_v31, 0.0  ;;  %v1674_v45 = vmax.f32 %v1162_v32, 0.0 }
 0x285   : > { %v2691_v42 = vmul.f32 0.16666667, %v2179_v29  ;;  %v2692_v43 = vmul.f32 0.16666667, %v2180_v30  ;;  %v2693_v46 = vmul.f32 0.16666667, %v2181_v36 }
 0x286   : > { %v2694_v47 = vmul.f32 0.16666667, %v2182_v37  ;;  %v2695_v48 = vmul.f32 0.16666667, %v2183_v38  ;;  %v2696_v49 = vmul.f32 0.16666667, %v2184_v39 }
 0x287   : > { %3203 = vst [vmem:[%s3637_s16 + $0xf40] sm:$0xff] %v2691_v42  ;;  %3204 = vst [vmem:[%s3637_s16 + $0xf48] sm:$0xff] %v2692_v43  ;;  %v2185_v50 = vmin.f32 %v1673_v44, 6.0  ;;  %v2186_v51 = vmin.f32 %v1674_v45, 6.0  ;;  %v1163_v52 = vadd.f32 3.0, %v651_v28  ;;  %v1164_v53 = vadd.f32 3.0, %v652_v33 }
 0x288   : > { %3205 = vst [vmem:[%s3637_s16 + $0xf50] sm:$0xff] %v2693_v46  ;;  %3206 = vst [vmem:[%s3637_s16 + $0xf58] sm:$0xff] %v2694_v47  ;;  %v1165_v54 = vadd.f32 3.0, %v653_v34  ;;  %v1166_v55 = vadd.f32 3.0, %v654_v35  ;;  %v1167_v56 = vadd.f32 3.0, %v655_v40  ;;  %v657_v57 = vld [vmem:[%s3615_s3 + $0xfb0] sm:$0xff] }
 0x289   : > { %3207 = vst [vmem:[%s3637_s16 + $0xf60] sm:$0xff] %v2695_v48  ;;  %v658_v58 = vld [vmem:[%s3615_s3 + $0xfb8] sm:$0xff]  ;;  %3208 = vst [vmem:[%s3637_s16 + $0xf68] sm:$0xff] %v2696_v49  ;;  %v2697_v59 = vmul.f32 0.16666667, %v2185_v50  ;;  %v1675_v61 = vmax.f32 %v1163_v52, 0.0 }
 0x28a   : > { %v2698_v60 = vmul.f32 0.16666667, %v2186_v51  ;;  %v1168_v62 = vadd.f32 3.0, %v656_v41  ;;  %v1676_v63 = vmax.f32 %v1164_v53, 0.0  ;;  %v1677_v0 = vmax.f32 %v1165_v54, 0.0  ;;  %v659_v7 = vld [vmem:[%s3615_s3 + $0xfc0] sm:$0xff] }
 0x28b   : > { %v1678_v1 = vmax.f32 %v1166_v55, 0.0  ;;  %v1679_v2 = vmax.f32 %v1167_v56, 0.0  ;;  %3209 = vst [vmem:[%s3637_s16 + $0xf70] sm:$0xff] %v2697_v59  ;;  %v2187_v3 = vmin.f32 %v1675_v61, 6.0  ;;  %v1169_v5 = vadd.f32 3.0, %v657_v57  ;;  %v660_v8 = vld [vmem:[%s3615_s3 + $0xfc8] sm:$0xff] }
 0x28c   : > { %3210 = vst [vmem:[%s3637_s16 + $0xf78] sm:$0xff] %v2698_v60  ;;  %v1680_v4 = vmax.f32 %v1168_v62, 0.0  ;;  %v1170_v6 = vadd.f32 3.0, %v658_v58  ;;  %v661_v9 = vld [vmem:[%s3615_s3 + $0xfd0] sm:$0xff]  ;;  %v2188_v10 = vmin.f32 %v1676_v63, 6.0  ;;  %v2189_v11 = vmin.f32 %v1677_v0, 6.0 }
 0x28d   : > { %v2190_v12 = vmin.f32 %v1678_v1, 6.0  ;;  %v2191_v13 = vmin.f32 %v1679_v2, 6.0  ;;  %v662_v14 = vld [vmem:[%s3615_s3 + $0xfd8] sm:$0xff]  ;;  %v663_v15 = vld [vmem:[%s3615_s3 + $0xfe0] sm:$0xff]  ;;  %v2699_v16 = vmul.f32 0.16666667, %v2187_v3 }
 0x28e   : > { %v2192_v17 = vmin.f32 %v1680_v4, 6.0  ;;  %v1681_v18 = vmax.f32 %v1169_v5, 0.0  ;;  %v1682_v19 = vmax.f32 %v1170_v6, 0.0  ;;  %v664_v20 = vld [vmem:[%s3615_s3 + $0xfe8] sm:$0xff]  ;;  %v2700_v21 = vmul.f32 0.16666667, %v2188_v10 }
 0x28f   : > { %v2701_v22 = vmul.f32 0.16666667, %v2189_v11  ;;  %v2702_v23 = vmul.f32 0.16666667, %v2190_v12  ;;  %3211 = vst [vmem:[%s3637_s16 + $0xf80] sm:$0xff] %v2699_v16  ;;  %v1171_v28 = vadd.f32 3.0, %v659_v7 }
 0x290   : > { %v2703_v24 = vmul.f32 0.16666667, %v2191_v13  ;;  %v2704_v25 = vmul.f32 0.16666667, %v2192_v17  ;;  %v2193_v26 = vmin.f32 %v1681_v18, 6.0  ;;  %v2194_v27 = vmin.f32 %v1682_v19, 6.0 }
 0x291   : > { %3212 = vst [vmem:[%s3637_s16 + $0xf88] sm:$0xff] %v2700_v21  ;;  %3213 = vst [vmem:[%s3637_s16 + $0xf90] sm:$0xff] %v2701_v22  ;;  %v1172_v29 = vadd.f32 3.0, %v660_v8  ;;  %v1173_v30 = vadd.f32 3.0, %v661_v9  ;;  %v1174_v31 = vadd.f32 3.0, %v662_v14  ;;  %v665_v32 = vld [vmem:[%s3615_s3 + $0xff0] sm:$0xff] }
 0x292   : > { %3214 = vst [vmem:[%s3637_s16 + $0xf98] sm:$0xff] %v2702_v23  ;;  %v666_v33 = vld [vmem:[%s3615_s3 + $0xff8] sm:$0xff]  ;;  %3215 = vst [vmem:[%s3637_s16 + $0xfa0] sm:$0xff] %v2703_v24  ;;  %v2705_v34 = vmul.f32 0.16666667, %v2193_v26  ;;  %v1175_v36 = vadd.f32 3.0, %v663_v15 }
 0x293   : > { %3216 = vst [vmem:[%s3637_s16 + $0xfa8] sm:$0xff] %v2704_v25  ;;  %v2706_v35 = vmul.f32 0.16666667, %v2194_v27  ;;  %v1176_v37 = vadd.f32 3.0, %v664_v20  ;;  %v1683_v38 = vmax.f32 %v1171_v28, 0.0  ;;  %v1684_v39 = vmax.f32 %v1172_v29, 0.0 }
 0x294   : > { %v1685_v40 = vmax.f32 %v1173_v30, 0.0  ;;  %v1686_v41 = vmax.f32 %v1174_v31, 0.0  ;;  %3217 = vst [vmem:[%s3637_s16 + $0xfb0] sm:$0xff] %v2705_v34  ;;  %v1687_v42 = vmax.f32 %v1175_v36, 0.0  ;;  %v1177_v44 = vadd.f32 3.0, %v665_v32  ;;  %s3236_s30 = ssub.s32 (%p3553_p9), 96, %s3338_s25 }
 0x295   : > { %3218 = vst [vmem:[%s3637_s16 + $0xfb8] sm:$0xff] %v2706_v35  ;;  %v1688_v43 = vmax.f32 %v1176_v37, 0.0  ;;  %v1178_v45 = vadd.f32 3.0, %v666_v33  ;;  %v2195_v46 = vmin.f32 %v1683_v38, 6.0  ;;  %v2196_v47 = vmin.f32 %v1684_v39, 6.0  ;;  %p3237_p6 = scmp.lt.s32.totalorder (%p3553_p9), %s3236_s30, 64 }
 0x296   : > { %v2197_v48 = vmin.f32 %v1685_v40, 6.0  ;;  %v2198_v49 = vmin.f32 %v1686_v41, 6.0  ;;  %v2199_v50 = vmin.f32 %v1687_v42, 6.0  ;;  %v1689_v52 = vmax.f32 %v1177_v44, 0.0 }
 0x297   : > { %v2200_v51 = vmin.f32 %v1688_v43, 6.0  ;;  %v1690_v53 = vmax.f32 %v1178_v45, 0.0  ;;  %v2707_v54 = vmul.f32 0.16666667, %v2195_v46  ;;  %v2708_v55 = vmul.f32 0.16666667, %v2196_v47 }
 0x298   : > { %v2709_v56 = vmul.f32 0.16666667, %v2197_v48  ;;  %v2710_v57 = vmul.f32 0.16666667, %v2198_v49  ;;  %v2711_v58 = vmul.f32 0.16666667, %v2199_v50 }
 0x299   : > { %v2712_v59 = vmul.f32 0.16666667, %v2200_v51  ;;  %3219 = vst [vmem:[%s3637_s16 + $0xfc0] sm:$0xff] %v2707_v54  ;;  %3220 = vst [vmem:[%s3637_s16 + $0xfc8] sm:$0xff] %v2708_v55  ;;  %v2201_v60 = vmin.f32 %v1689_v52, 6.0  ;;  %v2202_v61 = vmin.f32 %v1690_v53, 6.0 }
 0x29a   : > { %3221 = vst [vmem:[%s3637_s16 + $0xfd0] sm:$0xff] %v2709_v56  ;;  %3222 = vst [vmem:[%s3637_s16 + $0xfd8] sm:$0xff] %v2710_v57  ;;  %3234 = sbr.rel (!%p3553_p9) target bundleno = 701 (0x2bd), region = 32 }
 0x29b   : > { %3223 = vst [vmem:[%s3637_s16 + $0xfe0] sm:$0xff] %v2711_v58  ;;  %3224 = vst [vmem:[%s3637_s16 + $0xfe8] sm:$0xff] %v2712_v59  ;;  %v2713_v62 = vmul.f32 0.16666667, %v2201_v60  ;;  %v2714_v63 = vmul.f32 0.16666667, %v2202_v61 }
 0x29d   : > { %3225 = vst [vmem:[%s3637_s16 + $0xff0] sm:$0xff] %v2713_v62  ;;  %3226 = vst [vmem:[%s3637_s16 + $0xff8] sm:$0xff] %v2714_v63 }
 0x2a1   : > { %s4727_s30 = smov (!%p3237_p6, %s3236_s30), 64 }
 0x2a2   : > { %s4653_s2 = sshll.u32 %s4727_s30, 10 }
 0x2a3   : > { %s3242_s4 = ssub.s32 65536, %s4653_s2 }
 0x2a4   : > { %3243 = vsyncadd %s3228_s23, %s3242_s4  ;;  %p3341_p10 = scmp.ne.s32.totalorder %s4653_s2, 0  ;;  %s3353_s17 = sshll.u32 %s3530_s10, 16 }
 0x2a5   : > { %s4663_s13 = scalar_lea.hbm %s4713_s1, %s3353_s17  ;;  %s3249_s14 = sshll.u32 %s3637_s16, 4  ;;  %s4666_s14 = int_to_ptr.vmem [resolvable:$true] %s3249_s14 }
 0x2a6   : > { %s3425_s19 = scalar_lea.vmem %s4666_s14, %s4653_s2  ;;  %s3496_s20 = smov [#allocation5]  }
 0x2a7   : > { %p3426_p9 = scmp.ne.s32.totalorder %s4666_s14, %s3425_s19  ;;  %s3429_s21 = sshll.u32 %s3496_s20, 4  ;;  %s3430_s21 = int_to_ptr.vmem [resolvable:$false] %s3429_s21 }
 0x2a8   : > { %s3431_s10 = scalar_lea.vmem %s3430_s21, 131072  ;;  %p3432_p12 = scmp.lt.s32.totalorder %s4666_s14, %s3430_s21 }
 0x2a9   : > { %p3427_p11 = pnand %p3426_p9, %p3341_p10  ;;  %p3433_p0 = scmp.lt.s32.totalorder %s3431_s10, %s3425_s19 }
 0x2ab   : > { %p3428_p13 = pneg %p3427_p11  ;;  %p3434_p1 = por %p3433_p0, %p3432_p12 }
 0x2ad   : > { %p3435_p3 = pnand %p3434_p1, %p3428_p13 }
 0x2af   : > { %3438 = shalt.err (!%p3435_p3)
}
 0x2b0   : > { %s3439_s22 = scalar_lea.hbm %s4663_s13, %s4653_s2  ;;  %s3443_s28 = scalar_lea.hbm %s4713_s1, 98304 }
 0x2b1   : > { %p3440_p4 = scmp.ne.s32.totalorder %s4663_s13, %s3439_s22  ;;  %p3444_p7 = scmp.lt.u32.totalorder %s4663_s13, %s4713_s1 }
 0x2b2   : > { %p3445_p8 = scmp.lt.u32.totalorder %s3443_s28, %s3439_s22  ;;  %p3447_p9 = scmp.lt.u32.totalorder %s3439_s22, %s4663_s13 }
 0x2b3   : > { %p3441_p5 = pnand %p3440_p4, %p3341_p10 }
 0x2b4   : > { %p3446_p6 = por %p3445_p8, %p3444_p7 }
 0x2b5   : > { %p3442_p2 = pneg %p3441_p5 }
 0x2b6   : > { %p3448_p11 = por %p3447_p9, %p3446_p6 }
 0x2b8   : > { %p3449_p13 = pnand %p3448_p11, %p3442_p2 }
 0x2ba   : > { %3452 = shalt.err (!%p3449_p13)
}
 0x2bb   : > { %s3497_s16 = smov 1024   ;;  %s3498_s25 = smov 64  }
 0x2bc   : > { %3255 = dma.vmem_to_hbm [thread:$0]  (%p3341_p10), %s4666_s14, %s4653_s2, %s4663_s13, %s3228_s23, %s3497_s16, %s3497_s16, %s3498_s25  }
 0x2bd PF: > { %s3264_s30 = sand.u32 1, %s3479_s6   ;;  %p4718_p12 = scmp.ne.s32.totalorder %s4717_s18, 0 }
 0x2be   : > { %p4719_p0 = scmp.ge.s32.totalorder %s3491_s9, 2  ;;  %s3265_s4 = scalar_lea.sflag [#allocation4], %s3264_s30 }
 0x2c0   : > { %p3357_p1 = pnand %p4719_p0, %p4718_p12 }
 0x2c2   : > { %3474 = dma.done.wait (!%p3357_p1), %s3265_s4, 65536  }
 0x2c3   : > { %3476 = vsyncadd (!%p3357_p1), %s3265_s4, 4294901760  ;;  %p14_p3 = scmp.ge.s32.totalorder %s3534_s12, 4   ;;  %s4720_s6 = smov %s3483_s7 }
 0x2c4   : > { %s4721_s7 = smov %s3487_s8  ;;  %s4722_s8 = smov %s3546_s15 }
 0x2c5   : > { %s4723_s9 = smov %s3534_s12  ;;  %16 = sbr.rel (!%p14_p3) target bundleno = 5 (0x5), region = 69 }
 0x2cc   :  { %3270 = vsyncpa [#allocation3], 1 }
 0x2cd   :  { %3272 = vsyncpa [#allocation3 + $0x1], 1 }
 0x2ce   :  { %3273 = vsyncpa [#allocation4], 1 }
 0x2cf   :  { %3275 = vsyncpa [#allocation4 + $0x1], 1 }

</bundles_post_ra>
